<compile_context>
chip_gen: v5e
topology: v5e:2x2
jax: 0.10.0
libtpu: 0.0.40
codegen_flags: <defaults>
</compile_context>

<pallas_src>
import functools

import jax
import jax.numpy as jnp
from jax.experimental import pallas as pl
from jax.experimental.pallas import tpu as pltpu

HI = 1024     # full-resolution mask size (hard-coded in the PyTorch module)
LO = 256      # pooled mask size
POOL = 4      # 4x4 average pooling factor


# ---------------------------------------------------------------------------
# Kernels
# ---------------------------------------------------------------------------
def _compute_dtype(out_dtype):
    # bf16 activations stay bf16 (v6e/v7x have bf16 VALU); everything else f32.
    return jnp.bfloat16 if out_dtype == jnp.bfloat16 else jnp.float32


def _mask_mul_kernel(m_ref, x_ref, o_ref):
    # out = mask1 * x       (the 1024 branch of forward)
    cdt = _compute_dtype(o_ref.dtype)
    m = m_ref[...].astype(cdt)                    # (tr, W), int8/bf16/f32 -> cdt
    x = x_ref[...].astype(cdt)                    # (tb, tr, W)
    o_ref[...] = (m * x).astype(o_ref.dtype)      # broadcast over batch tile


def _blend_kernel(m_ref, x_ref, g_ref, o_ref):
    # out = mask2 * x + (1 - mask2) * gen_image   (the 256 branch)
    cdt = _compute_dtype(o_ref.dtype)
    m = m_ref[...].astype(cdt)                    # (tr, W)
    x = x_ref[...].astype(cdt)                    # (tb, tr, W)
    g = g_ref[...].astype(cdt)                    # (tb, tr, W)
    one = jnp.asarray(1, cdt)
    o_ref[...] = (m * x + (one - m) * g).astype(o_ref.dtype)


# ---------------------------------------------------------------------------
# Tiling helpers
# ---------------------------------------------------------------------------
def _flatten_leading(x, H, W):
    lead = x.shape[:-2]
    B = functools.reduce(lambda a, b: a * b, lead, 1)
    return x.reshape(B, H, W), B


def _vmem_capacity_bytes():
    """Per-core VMEM capacity (v5e/v6e: 128 MiB, v7x: 64 MiB). Conservative
    fallback if the query is unavailable."""
    try:
        return int(pltpu.get_tpu_info().vmem_capacity_bytes)
    except Exception:
        return 64 << 20


def _choose_tiles(B, H, W, x_itemsize, m_itemsize, *, n_act, min_row_steps=4):
    """Pick (batch_tile, row_tile, vmem_need).

    - Row tile chosen so the row grid axis has >= min_row_steps steps
      (pipelining + v7x megacore balance) and stays (8,128)-friendly.
    - Batch tile shrinks (divisors of B) before the row tile ever does, so
      blocks stay large and lane/sublane-dense for big N*C.
    - Footprint is the double-buffered VMEM need: n_act activation-sized
      blocks (inputs + output) plus the mask block, kept under capacity/3.
    """
    budget = _vmem_capacity_bytes() // 3

    def footprint(tb, tr):
        return 2 * (n_act * tb * tr * W * x_itemsize + tr * W * m_itemsize)

    row_cands = [tr for tr in (512, 256, 128, 64, 32, 16, 8)
                 if tr <= H and H % tr == 0]
    if not row_cands:
        row_cands = [H]
    preferred = [tr for tr in row_cands if H // tr >= min_row_steps] or row_cands
    tr = preferred[0]

    tb = B
    if footprint(tb, tr) > budget:
        tb = 1
        for cand in range(B, 0, -1):
            if B % cand == 0 and footprint(cand, tr) <= budget:
                tb = cand
                break
    # Last resort: shrink the row tile.
    while footprint(tb, tr) > budget and tr > 8:
        smaller = [c for c in row_cands if c < tr]
        if not smaller:
            break
        tr = smaller[0]

    return tb, tr, footprint(tb, tr)


def _vmem_limit(need):
    cap = _vmem_capacity_bytes()
    limit = min(max(need + (2 << 20), 8 << 20), cap // 2)
    return int(max(limit, need))   # never clamp below the real footprint


# ---------------------------------------------------------------------------
# pallas_call wrappers
# ---------------------------------------------------------------------------
def apply_mask(mask, x):
    H, W = mask.shape
    xf, B = _flatten_leading(x, H, W)
    tb, tr, need = _choose_tiles(B, H, W, xf.dtype.itemsize, mask.dtype.itemsize,
                                 n_act=2)          # x block + out block
    out = pl.pallas_call(
        _mask_mul_kernel,
        out_shape=jax.ShapeDtypeStruct((B, H, W), x.dtype),
        grid=(B // tb, H // tr),
        in_specs=[
            pl.BlockSpec((tr, W), lambda b, i: (i, 0)),          # mask row tile
            pl.BlockSpec((tb, tr, W), lambda b, i: (b, i, 0)),   # x tile
        ],
        out_specs=pl.BlockSpec((tb, tr, W), lambda b, i: (b, i, 0)),
        compiler_params=pltpu.CompilerParams(
            dimension_semantics=("parallel", "parallel"),
            vmem_limit_bytes=_vmem_limit(need)),
    )(mask, xf)
    return out.reshape(x.shape)


def apply_blend(mask, x, gen):
    H, W = mask.shape
    xf, B = _flatten_leading(x, H, W)
    gf, _ = _flatten_leading(gen, H, W)
    tb, tr, need = _choose_tiles(B, H, W, xf.dtype.itemsize, mask.dtype.itemsize,
                                 n_act=3)          # x + gen + out blocks
    out = pl.pallas_call(
        _blend_kernel,
        out_shape=jax.ShapeDtypeStruct((B, H, W), x.dtype),
        grid=(B // tb, H // tr),
        in_specs=[
            pl.BlockSpec((tr, W), lambda b, i: (i, 0)),
            pl.BlockSpec((tb, tr, W), lambda b, i: (b, i, 0)),
            pl.BlockSpec((tb, tr, W), lambda b, i: (b, i, 0)),
        ],
        out_specs=pl.BlockSpec((tb, tr, W), lambda b, i: (b, i, 0)),
        compiler_params=pltpu.CompilerParams(
            dimension_semantics=("parallel", "parallel"),
            vmem_limit_bytes=_vmem_limit(need)),
    )(mask, xf, gf)
    return out.reshape(x.shape)


# ---------------------------------------------------------------------------
# Wrapper mirroring the PyTorch mask_function module.
# ---------------------------------------------------------------------------
def _compact_mask(m_f32):
    """Smallest HBM representation that is numerically exact; else keep f32."""
    if bool(jnp.all((m_f32 == 0.0) | (m_f32 == 1.0))):
        return m_f32.astype(jnp.int8)
    if bool(jnp.all(m_f32.astype(jnp.bfloat16).astype(jnp.float32) == m_f32)):
        return m_f32.astype(jnp.bfloat16)
    return m_f32


class MaskFunctionPallas:
    def __init__(self, mask):
        self.gen_image = None
        self.mask1 = jnp.asarray(mask, jnp.float32)                            # (1024, 1024)
        self.mask2 = self.mask1.reshape(LO, POOL, LO, POOL).mean(axis=(1, 3))  # (256, 256)
        # opp masks are folded into the blend kernel as (1 - mask).
        self._mask1_k = _compact_mask(self.mask1)   # int8 for binary masks
        self._mask2_k = _compact_mask(self.mask2)   # bf16 for k/16 values

    def set_gen(self, x):
        self.gen_image = x

    def __call__(self, x):
        if x.shape[-1] == HI:
            return apply_mask(self._mask1_k, x)
        elif x.shape[-1] == LO:
            if self.gen_image is None:
                raise ValueError("call set_gen(...) before the 256-resolution branch")
            return apply_blend(self._mask2_k, x, self.gen_image)
        return None


if __name__ == "__main__":
    key = jax.random.PRNGKey(0)
    k1, k2, k3, k4 = jax.random.split(key, 4)

    # Deterministic synthetic binary mask (stands in for the numpy mask arg).
    mask = (jax.random.uniform(k1, (HI, HI)) > 0.5).astype(jnp.float32)
    mf = MaskFunctionPallas(mask)

    # 1024 branch: small leading dims (N=1, C=2); spatial fixed by the module.
    x_hi = jax.random.normal(k2, (1, 2, HI, HI), jnp.float32)
    out_hi = mf(x_hi)

    # 256 branch: needs gen_image of matching shape (N=1, C=3).
    x_lo = jax.random.normal(k3, (1, 3, LO, LO), jnp.float32)
    gen = jax.random.normal(k4, (1, 3, LO, LO), jnp.float32)
    mf.set_gen(gen)
    out_lo = mf(x_lo)

    jax.block_until_ready((out_hi, out_lo))

    # Reference checks (plain JAX).
    ref_hi = mask * x_hi
    mask2_ref = mask.reshape(LO, POOL, LO, POOL).mean(axis=(1, 3))
    ref_lo = mask2_ref * x_lo + (1.0 - mask2_ref) * gen
    assert jnp.allclose(mf.mask2, mask2_ref, atol=1e-6)
    assert jnp.allclose(out_hi, ref_hi, atol=1e-5)
    assert jnp.allclose(out_lo, ref_lo, atol=1e-5)
    print("KERNEL_OK")
</pallas_src>

<mosaic_0001>
module attributes {stable_mosaic.version = 11 : i64} {
  func.func @_mask_mul_kernel(%arg0: i32, %arg1: i32, %arg2: memref<256x1024xi8, #tpu.memory_space<vmem>>, %arg3: memref<2x256x1024xf32, #tpu.memory_space<vmem>>, %arg4: memref<2x256x1024xf32, #tpu.memory_space<vmem>>) attributes {dimension_semantics = [#tpu.dimension_semantics<parallel>, #tpu.dimension_semantics<parallel>], iteration_bounds = array<i64: 1, 4>, scalar_prefetch = 0 : i64, scratch_operands = 0 : i64, tpu.core_type = #tpu.core_type<tc>, window_params = [{transform_indices = @transform_0, window_bounds = array<i64: 256, 1024>}, {transform_indices = @transform_1, window_bounds = array<i64: 2, 256, 1024>}, {transform_indices = @transform_2, window_bounds = array<i64: 2, 256, 1024>}]} {
    %c0 = arith.constant 0 : index
    %c0_0 = arith.constant 0 : index
    %0 = vector.load %arg2[%c0, %c0_0] : memref<256x1024xi8, #tpu.memory_space<vmem>>, vector<256x1024xi8>
    %1 = arith.sitofp %0 : vector<256x1024xi8> to vector<256x1024xf32>
    %c0_1 = arith.constant 0 : index
    %c0_2 = arith.constant 0 : index
    %c0_3 = arith.constant 0 : index
    %2 = vector.load %arg3[%c0_1, %c0_2, %c0_3] : memref<2x256x1024xf32, #tpu.memory_space<vmem>>, vector<2x256x1024xf32>
    %3 = vector.shape_cast %1 : vector<256x1024xf32> to vector<1x256x1024xf32>
    %4 = vector.broadcast %3 : vector<1x256x1024xf32> to vector<2x256x1024xf32>
    %5 = arith.mulf %4, %2 : vector<2x256x1024xf32>
    %c0_4 = arith.constant 0 : index
    %c0_5 = arith.constant 0 : index
    %c0_6 = arith.constant 0 : index
    %6 = vector.load %arg4[%c0_4, %c0_5, %c0_6] : memref<2x256x1024xf32, #tpu.memory_space<vmem>>, vector<2x256x1024xf32>
    tpu.vector_store %arg4[%c0_4, %c0_5, %c0_6], %5 {strides = array<i32>} : memref<2x256x1024xf32, #tpu.memory_space<vmem>>, vector<2x256x1024xf32>,
    return
  }
  func.func @transform_0(%arg0: i32, %arg1: i32) -> (i32, i32) {
    %c0_i32 = arith.constant 0 : i32
    %c0_i32_0 = arith.constant 0 : i32
    return %arg1, %c0_i32 : i32, i32
  }
  func.func @transform_1(%arg0: i32, %arg1: i32) -> (i32, i32, i32) {
    %c0_i32 = arith.constant 0 : i32
    %c0_i32_0 = arith.constant 0 : i32
    return %arg0, %arg1, %c0_i32 : i32, i32, i32
  }
  func.func @transform_2(%arg0: i32, %arg1: i32) -> (i32, i32, i32) {
    %c0_i32 = arith.constant 0 : i32
    %c0_i32_0 = arith.constant 0 : i32
    return %arg0, %arg1, %c0_i32 : i32, i32, i32
  }
}

</mosaic_0001>

<bundles_post_ra>
// kernel: tpu_custom_call.1
= control target key start
LH: loop header
LB: loop body
LE: loop exit
PB: predicated region body
PF: predicated region fallthrough
CT: control target
= control target key end

     0   :  { %7 = vsyncpa [#allocation3], 0  ;;  %s5418_s0 = inlined_call_operand.hbm [shape: s8[1024,1024], index: 0, kind: input, shape index: {}]   ;;  %s5419_s1 = inlined_call_operand.hbm [shape: f32[2,1024,1024], index: 1, kind: input, shape index: {}]   ;;  %s5420_s2 = inlined_call_operand.hbm [shape: f32[2,1024,1024], index: 2, kind: output, shape index: {}]  }
   0x1   :  { %9 = vsyncpa [#allocation3 + $0x1], 0 }
   0x2   :  { %10 = vsyncpa [#allocation6], 0 }
   0x3   :  { %12 = vsyncpa [#allocation6 + $0x1], 0 }
   0x4   :  { %13 = vsyncpa [#allocation4], 0 }
   0x5   :  { %15 = vsyncpa [#allocation4 + $0x1], 0  ;;  %s2757_s9 = smov 0   ;;  %s2759_s10 = smov 0  }
   0x6   :  { %s2761_s11 = smov 0   ;;  %s2763_s12 = smov 0  }
   0x7   :  { %s2765_s13 = smov 0   ;;  %s2767_s14 = smov 0  }
   0x8 LB: > { %s2522_s15 = sadd.s32 4294967295, %s2725_s14   ;;  %s2523_s16 = sadd.s32 4294967294, %s2725_s14   ;;  %s2725_s14 = sphi %s2767_s14, %s21_s14   ;;  %s2721_s13 = sphi %s2765_s13, %s6050_s13   ;;  %s2717_s12 = sphi %s2763_s12, %s6049_s12   ;;  %s2713_s11 = sphi %s2761_s11, %s6048_s11   ;;  %s2709_s10 = sphi %s2759_s10, %s6047_s10   ;;  %s2705_s9 = sphi %s2757_s9, %s6046_s9  }
   0x9   : > { %s30_s17 = sadd.s32 1, %s2721_s13  ;;  %s40_s18 = sadd.s32 1, %s2713_s11 }
   0xa   : > { %p31_p0 = scmp.ge.s32.totalorder %s30_s17, 4  ;;  %p47_p1 = scmp.ne.s32.totalorder %s2713_s11, %s2709_s10 }
   0xb   : > { %p48_p2 = scmp.eq.s32.totalorder %s2725_s14, 0  ;;  %p53_p3 = scmp.ne.s32.totalorder %s2709_s10, %s2705_s9 }
   0xc   : > { %s6052_s17 = smov (%p31_p0, %s30_s17), 0  ;;  %p54_p5 = scmp.eq.s32.totalorder %s2522_s15, 0 }
   0xd   : > { %p2798_p4 = por %p48_p2, %p47_p1  ;;  %s37_s20 = ssub.s32 %s2721_s13, %s6052_s17 }
   0xe   : > { %p107_p6 = scmp.eq.s32.totalorder %s2522_s15, 3  ;;  %p38_p7 = scmp.eq.s32.totalorder %s37_s20, 0 }
   0xf   : > { %p2804_p8 = por %p54_p5, %p53_p3  ;;  %p113_p10 = scmp.eq.s32.totalorder %s2523_s16, 3 }
  0x10   : > { %p2808_p9 = por %p107_p6, %p47_p1  ;;  %p2525_p12 = scmp.ge.s32.totalorder %s2725_s14, 4 }
  0x11   : > { %s2813_s23 = scalar_select %p38_p7, %s2713_s11, %s40_s18  }
  0x12   : > { %p2815_p11 = por %p113_p10, %p53_p3  ;;  %129 = sbr.rel (%p2525_p12) target bundleno = 39 (0x27), region = 16 }
  0x13   : > { %s2821_s25 = sand.u32 (!%p2525_p12), 1, %s2713_s11   ;;  %s2547_s26 = sshll.u32 (!%p2525_p12), %s2721_s13, 9 }
  0x14   : > { %s2526_s27 = sshll.u32 (!%p2525_p12), %s2821_s25, 9  ;;  %s143_s30 = scalar_lea.hbm (!%p2525_p12), %s5418_s0, %s2547_s26 }
  0x15   : > { %s144_s3 = sshll.u32 (!%p2525_p12), %s143_s30, 4  ;;  %s137_s4 = scalar_lea.vmem (!%p2525_p12), [#allocation2], %s2526_s27  ;;  %s145_s3 = int_to_ptr.hbm [resolvable:$true] %s144_s3 }
  0x16   : > { %s146_s5 = sshll.u32 (!%p2525_p12), %s137_s4, 4  ;;  %s134_s6 = scalar_lea.sflag (!%p2525_p12), [#allocation3], %s2821_s25  ;;  %s147_s5 = int_to_ptr.vmem [resolvable:$true] %s146_s5 }
  0x17   : > { %s2727_s7 = smov 1024   ;;  %s2728_s8 = smov 64  }
  0x18   : > { %2552 = dma.hbm_to_vmem [thread:$0]  (%p2798_p4), %s145_s3, 8192, %s147_s5, %s134_s6, %s2727_s7, %s2727_s7, %s2728_s8  }
  0x19   : > { %s2530_s15 = sshll.u32 %s2821_s25, 12  ;;  %s2549_s16 = sshll.u32 %s2721_s13, 11 }
  0x1a   : > { %s169_s26 = scalar_lea.hbm %s5419_s1, %s2549_s16  ;;  %s160_s27 = scalar_lea.vmem [#allocation5], %s2530_s15 }
  0x1b   : > { %s184_s28 = sshll.u32 %s160_s27, 4  ;;  %s182_s30 = sshll.u32 %s169_s26, 4  ;;  %s185_s28 = int_to_ptr.vmem [resolvable:$true] %s184_s28  ;;  %s183_s30 = int_to_ptr.hbm [resolvable:$true] %s182_s30 }
  0x1c   : > { %s2553_s29 = scalar_select %p2798_p4, [#allocation0], [#allocation12] }
  0x1d   : > { %s2729_s4 = smov 131072   ;;  %s2730_s5 = smov 32768  }
  0x1e   : > { %s174_s3 = sld [smem:[%s2553_s29]]   ;;  %s2731_s6 = smov 32  }
  0x1f   : > { %2554 = sst [smem:[#allocation9]] (%p2798_p4), %s2729_s4  ;;  %s2732_s7 = smov 1024  }
  0x20   : > { %2555 = sst [smem:[#allocation9 + $0x1]] (%p2798_p4), %s2730_s5  ;;  %s2733_s16 = smov 64  }
  0x21   : > { %2556 = sst [smem:[#allocation9 + $0x2]] (%p2798_p4), %s2731_s6  ;;  %s157_s18 = scalar_lea.sflag [#allocation6], %s2821_s25 }
  0x22   : > { %2557 = sst [smem:[#allocation9 + $0x3]] (%p2798_p4), %s2732_s7  ;;  %s2734_s20 = smov [#allocation8]  }
  0x23   : > { %2558 = sst [smem:[#allocation9 + $0x4]] (%p2798_p4), %s2732_s7 }
  0x24   : > { %s2534_s8 = sshll.u32 %s174_s3, 26  ;;  %2559 = sst [smem:[#allocation9 + $0x5]] (%p2798_p4), %s2733_s16 }
  0x25   : > { %s2535_s15 = sadd.s32 134217728, %s2534_s8 }
  0x26   : > { %2560 = dma.general (%p2798_p4), %s183_s30, 65536, %s185_s28, %s157_s18, %s2734_s20, [#allocation9], %s2535_s15, 0  }
  0x27 PF: > { %p2536_p13 = scmp.ge.s32.totalorder %s2725_s14, 1  ;;  %p205_p0 = scmp.lt.s32.totalorder %s2725_s14, 5 }
  0x29   : > { %p206_p1 = pnand %p2536_p13, %p205_p0 }
  0x2b   : > { %209 = sbr.rel (%p206_p1) target bundleno = 791 (0x317), region = 28 }
  0x30   : > { %s2856_s26 = sand.u32 1, %s2709_s10  }
  0x31   : > { %s2537_s27 = sshll.u32 %s2856_s26, 9  ;;  %s212_s29 = scalar_lea.sflag [#allocation3], %s2856_s26 }
  0x32   : > { %s2860_s3 = scalar_lea.vmem [#allocation2], %s2537_s27 }
  0x33   : > { %2692 = dma.done.wait (%p2804_p8), %s212_s29, 8192  }
  0x34   : > { %2694 = vsyncadd (%p2804_p8), %s212_s29, 4294959104  ;;  %s2538_s19 = sshll.u32 %s2856_s26, 12  ;;  %s222_s25 = scalar_lea.sflag [#allocation6], %s2856_s26 }
  0x35   : > { %s2870_s28 = scalar_lea.vmem [#allocation5], %s2538_s19 }
  0x36   : > { %2696 = dma.done.wait (%p2804_p8), %s222_s25, 65536  }
  0x37   : > { %2698 = vsyncadd (%p2804_p8), %s222_s25, 4294901760  ;;  %v2877_v0 = vld [vmem:[%s2860_s3] sm:$0xff]  ;;  %v2880_v1 = vld [vmem:[%s2860_s3 + $0x8] sm:$0xff]  ;;  %s2934_s21 = scalar_lea.vmem [#allocation7], %s2538_s19  ;;  %s2370_s30 = scalar_lea.sflag [#allocation4], %s2856_s26 }
  0x38   : > { %v321_v2 = vunpack.c.0.s8 %v2877_v0  ;;  %v833_v3 = vld [vmem:[%s2870_s28] sm:$0xff]  ;;  %v322_v4 = vunpack.c.0.s8 %v2880_v1  ;;  %v2886_v5 = vld [vmem:[%s2860_s3 + $0x10] sm:$0xff]  ;;  %v834_v6 = vld [vmem:[%s2870_s28 + $0x8] sm:$0xff]  ;;  %v329_v10 = vunpack.c.1.s8 %v2877_v0  ;;  %v330_v11 = vunpack.c.1.s8 %v2880_v1 }
  0x39   : > { %v323_v7 = vunpack.c.0.s8 %v2886_v5  ;;  %v2891_v8 = vld [vmem:[%s2860_s3 + $0x18] sm:$0xff]  ;;  %v2894_v9 = vld [vmem:[%s2860_s3 + $0x20] sm:$0xff]  ;;  %v835_v14 = vld [vmem:[%s2870_s28 + $0x10] sm:$0xff]  ;;  %v331_v24 = vunpack.c.1.s8 %v2886_v5  ;;  %v337_v58 = vunpack.c.2.s8 %v2877_v0  ;;  %v338_v62 = vunpack.c.2.s8 %v2880_v1 }
  0x3a   : > { %v2898_v12 = vcvt.s32.f32 %v321_v2  ;;  %v2900_v13 = vcvt.s32.f32 %v322_v4  ;;  %v324_v15 = vunpack.c.0.s8 %v2891_v8  ;;  %v836_v16 = vld [vmem:[%s2870_s28 + $0x18] sm:$0xff]  ;;  %v325_v17 = vunpack.c.0.s8 %v2894_v9  ;;  %v2907_v18 = vld [vmem:[%s2860_s3 + $0x28] sm:$0xff]  ;;  %v837_v20 = vld [vmem:[%s2870_s28 + $0x20] sm:$0xff] }
  0x3b   : > { %v2909_v19 = vcvt.s32.f32 %v323_v7  ;;  %v326_v21 = vunpack.c.0.s8 %v2907_v18  ;;  %v2914_v22 = vld [vmem:[%s2860_s3 + $0x30] sm:$0xff]  ;;  %v2917_v23 = vld [vmem:[%s2860_s3 + $0x38] sm:$0xff]  ;;  %v838_v29 = vld [vmem:[%s2870_s28 + $0x28] sm:$0xff]  ;;  %v2941_v38 = vcvt.s32.f32 %v329_v10  ;;  %v2943_v39 = vcvt.s32.f32 %v330_v11 }
  0x3c   : > { %v1345_v25 = vmul.f32 %v833_v3, %v2898_v12  ;;  %v1346_v26 = vmul.f32 %v834_v6, %v2900_v13  ;;  %v2922_v27 = vcvt.s32.f32 %v324_v15  ;;  %v2924_v28 = vcvt.s32.f32 %v325_v17  ;;  %v839_v36 = vld [vmem:[%s2870_s28 + $0x30] sm:$0xff]  ;;  %v840_v37 = vld [vmem:[%s2870_s28 + $0x38] sm:$0xff]  ;;  %v841_v43 = vld [vmem:[%s2870_s28 + $0x40] sm:$0xff] }
  0x3d   : > { %v1347_v30 = vmul.f32 %v835_v14, %v2909_v19  ;;  %v2928_v31 = vcvt.s32.f32 %v326_v21  ;;  %v327_v32 = vunpack.c.0.s8 %v2914_v22  ;;  %v328_v33 = vunpack.c.0.s8 %v2917_v23  ;;  %v842_v45 = vld [vmem:[%s2870_s28 + $0x48] sm:$0xff]  ;;  %v843_v52 = vld [vmem:[%s2870_s28 + $0x50] sm:$0xff]  ;;  %v844_v56 = vld [vmem:[%s2870_s28 + $0x58] sm:$0xff] }
  0x3e   : > { %1857 = vst [vmem:[%s2934_s21] sm:$0xff] %v1345_v25  ;;  %v1348_v34 = vmul.f32 %v836_v16, %v2922_v27  ;;  %v1349_v35 = vmul.f32 %v837_v20, %v2924_v28  ;;  %v2952_v44 = vcvt.s32.f32 %v331_v24  ;;  %v332_v46 = vunpack.c.1.s8 %v2891_v8  ;;  %v845_v60 = vld [vmem:[%s2870_s28 + $0x60] sm:$0xff]  ;;  %v846_v2 = vld [vmem:[%s2870_s28 + $0x68] sm:$0xff]  ;;  %v847_v7 = vld [vmem:[%s2870_s28 + $0x70] sm:$0xff] }
  0x3f   : > { %1858 = vst [vmem:[%s2934_s21 + $0x8] sm:$0xff] %v1346_v26  ;;  %v1350_v40 = vmul.f32 %v838_v29, %v2928_v31  ;;  %v2947_v41 = vcvt.s32.f32 %v327_v32  ;;  %v2949_v42 = vcvt.s32.f32 %v328_v33  ;;  %v333_v47 = vunpack.c.1.s8 %v2894_v9  ;;  %v848_v14 = vld [vmem:[%s2870_s28 + $0x78] sm:$0xff]  ;;  %v849_v21 = vld [vmem:[%s2870_s28 + $0x80] sm:$0xff]  ;;  %v850_v29 = vld [vmem:[%s2870_s28 + $0x88] sm:$0xff] }
  0x40   : > { %1859 = vst [vmem:[%s2934_s21 + $0x10] sm:$0xff] %v1347_v30  ;;  %v334_v48 = vunpack.c.1.s8 %v2907_v18  ;;  %v335_v49 = vunpack.c.1.s8 %v2914_v22  ;;  %v336_v53 = vunpack.c.1.s8 %v2917_v23  ;;  %v1353_v54 = vmul.f32 %v841_v43, %v2941_v38 }
  0x41   : > { %1860 = vst [vmem:[%s2934_s21 + $0x18] sm:$0xff] %v1348_v34  ;;  %v1351_v50 = vmul.f32 %v839_v36, %v2947_v41  ;;  %v1352_v51 = vmul.f32 %v840_v37, %v2949_v42  ;;  %v2967_v55 = vcvt.s32.f32 %v332_v46  ;;  %v2970_v57 = vcvt.s32.f32 %v333_v47  ;;  %v851_v34 = vld [vmem:[%s2870_s28 + $0x90] sm:$0xff]  ;;  %v853_v47 = vld [vmem:[%s2870_s28 + $0xa0] sm:$0xff] }
  0x42   : > { %1861 = vst [vmem:[%s2934_s21 + $0x20] sm:$0xff] %v1349_v35  ;;  %v1354_v59 = vmul.f32 %v842_v45, %v2943_v39  ;;  %v2976_v61 = vcvt.s32.f32 %v334_v48  ;;  %v1355_v63 = vmul.f32 %v843_v52, %v2952_v44  ;;  %v2982_v3 = vcvt.s32.f32 %v335_v49 }
  0x43   : > { %1862 = vst [vmem:[%s2934_s21 + $0x28] sm:$0xff] %v1350_v40  ;;  %v339_v4 = vunpack.c.2.s8 %v2886_v5  ;;  %v1356_v6 = vmul.f32 %v844_v56, %v2967_v55  ;;  %v2988_v10 = vcvt.s32.f32 %v336_v53  ;;  %v1357_v11 = vmul.f32 %v845_v60, %v2970_v57  ;;  %v852_v40 = vld [vmem:[%s2870_s28 + $0x98] sm:$0xff] }
  0x44   : > { %1863 = vst [vmem:[%s2934_s21 + $0x30] sm:$0xff] %v1351_v50  ;;  %v2993_v15 = vcvt.s32.f32 %v337_v58  ;;  %v340_v16 = vunpack.c.2.s8 %v2891_v8  ;;  %v341_v17 = vunpack.c.2.s8 %v2894_v9  ;;  %v1358_v20 = vmul.f32 %v846_v2, %v2976_v61 }
  0x45   : > { %1864 = vst [vmem:[%s2934_s21 + $0x38] sm:$0xff] %v1352_v51  ;;  %v3000_v24 = vcvt.s32.f32 %v338_v62  ;;  %v342_v25 = vunpack.c.2.s8 %v2907_v18  ;;  %v1359_v26 = vmul.f32 %v847_v7, %v2982_v3  ;;  %v3006_v30 = vcvt.s32.f32 %v339_v4  ;;  %v854_v51 = vld [vmem:[%s2870_s28 + $0xa8] sm:$0xff]  ;;  %v3052_v4 = vld [vmem:[%s2860_s3 + $0x40] sm:$0xff] }
  0x46   : > { %1865 = vst [vmem:[%s2934_s21 + $0x40] sm:$0xff] %v1353_v54  ;;  %v343_v32 = vunpack.c.2.s8 %v2914_v22  ;;  %v1360_v33 = vmul.f32 %v848_v14, %v2988_v10  ;;  %v3012_v35 = vcvt.s32.f32 %v340_v16  ;;  %v344_v36 = vunpack.c.2.s8 %v2917_v23  ;;  %v855_v54 = vld [vmem:[%s2870_s28 + $0xb0] sm:$0xff]  ;;  %v858_v7 = vld [vmem:[%s2870_s28 + $0xc8] sm:$0xff] }
  0x47   : > { %1866 = vst [vmem:[%s2934_s21 + $0x48] sm:$0xff] %v1354_v59  ;;  %v1361_v37 = vmul.f32 %v849_v21, %v2993_v15  ;;  %v3018_v43 = vcvt.s32.f32 %v341_v17  ;;  %v345_v45 = vunpack.c.3.s8 %v2877_v0  ;;  %v1362_v46 = vmul.f32 %v850_v29, %v3000_v24  ;;  %v856_v59 = vld [vmem:[%s2870_s28 + $0xb8] sm:$0xff]  ;;  %v3061_v14 = vld [vmem:[%s2860_s3 + $0x48] sm:$0xff]  ;;  %v3070_v21 = vld [vmem:[%s2860_s3 + $0x50] sm:$0xff] }
  0x48   : > { %1867 = vst [vmem:[%s2934_s21 + $0x50] sm:$0xff] %v1355_v63  ;;  %v3024_v48 = vcvt.s32.f32 %v342_v25  ;;  %v346_v49 = vunpack.c.3.s8 %v2880_v1  ;;  %v1363_v50 = vmul.f32 %v851_v34, %v3006_v30  ;;  %v3030_v52 = vcvt.s32.f32 %v343_v32  ;;  %v857_v63 = vld [vmem:[%s2870_s28 + $0xc0] sm:$0xff]  ;;  %v3079_v32 = vld [vmem:[%s2860_s3 + $0x58] sm:$0xff] }
  0x49   : > { %1868 = vst [vmem:[%s2934_s21 + $0x58] sm:$0xff] %v1356_v6  ;;  %v347_v0 = vunpack.c.3.s8 %v2886_v5  ;;  %v1364_v53 = vmul.f32 %v852_v40, %v3012_v35  ;;  %v3036_v56 = vcvt.s32.f32 %v344_v36  ;;  %v348_v1 = vunpack.c.3.s8 %v2891_v8 }
  0x4a   : > { %1869 = vst [vmem:[%s2934_s21 + $0x60] sm:$0xff] %v1357_v11  ;;  %v1365_v58 = vmul.f32 %v853_v47, %v3018_v43  ;;  %v3042_v60 = vcvt.s32.f32 %v345_v45  ;;  %v349_v5 = vunpack.c.3.s8 %v2894_v9  ;;  %v1366_v62 = vmul.f32 %v854_v51, %v3024_v48  ;;  %v862_v45 = vld [vmem:[%s2870_s28 + $0xe8] sm:$0xff]  ;;  %v863_v51 = vld [vmem:[%s2870_s28 + $0xf0] sm:$0xff] }
  0x4b   : > { %1870 = vst [vmem:[%s2934_s21 + $0x68] sm:$0xff] %v1358_v20  ;;  %v3048_v2 = vcvt.s32.f32 %v346_v49  ;;  %v350_v8 = vunpack.c.3.s8 %v2907_v18  ;;  %v1367_v6 = vmul.f32 %v855_v54, %v3030_v52  ;;  %v3057_v9 = vcvt.s32.f32 %v347_v0  ;;  %v859_v18 = vld [vmem:[%s2870_s28 + $0xd0] sm:$0xff]  ;;  %v3097_v49 = vld [vmem:[%s2860_s3 + $0x68] sm:$0xff] }
  0x4c   : > { %1871 = vst [vmem:[%s2934_s21 + $0x70] sm:$0xff] %v1359_v26  ;;  %v351_v11 = vunpack.c.3.s8 %v2914_v22  ;;  %v1368_v16 = vmul.f32 %v856_v59, %v3036_v56  ;;  %v3066_v17 = vcvt.s32.f32 %v348_v1  ;;  %v352_v20 = vunpack.c.3.s8 %v2917_v23  ;;  %v860_v22 = vld [vmem:[%s2870_s28 + $0xd8] sm:$0xff]  ;;  %v861_v23 = vld [vmem:[%s2870_s28 + $0xe0] sm:$0xff]  ;;  %v3106_v54 = vld [vmem:[%s2860_s3 + $0x70] sm:$0xff] }
  0x4d   : > { %1872 = vst [vmem:[%s2934_s21 + $0x78] sm:$0xff] %v1360_v33  ;;  %v1369_v25 = vmul.f32 %v857_v63, %v3042_v60  ;;  %v3075_v26 = vcvt.s32.f32 %v349_v5  ;;  %v353_v29 = vunpack.c.0.s8 %v3052_v4  ;;  %v1370_v33 = vmul.f32 %v858_v7, %v3048_v2 }
  0x4e   : > { %1873 = vst [vmem:[%s2934_s21 + $0x80] sm:$0xff] %v1361_v37  ;;  %v3084_v34 = vcvt.s32.f32 %v350_v8  ;;  %v354_v36 = vunpack.c.0.s8 %v3061_v14  ;;  %v3088_v37 = vld [vmem:[%s2860_s3 + $0x60] sm:$0xff]  ;;  %v1371_v40 = vmul.f32 %v859_v18, %v3057_v9  ;;  %v355_v47 = vunpack.c.0.s8 %v3070_v21 }
  0x4f   : > { %1874 = vst [vmem:[%s2934_s21 + $0x88] sm:$0xff] %v1362_v46  ;;  %v3093_v46 = vcvt.s32.f32 %v351_v11  ;;  %v3102_v0 = vcvt.s32.f32 %v352_v20  ;;  %v1373_v1 = vmul.f32 %v861_v23, %v3075_v26  ;;  %v3111_v59 = vcvt.s32.f32 %v353_v29  ;;  %v865_v8 = vld [vmem:[%s2870_s28 + $0x100] sm:$0xff] }
  0x50   : > { %1875 = vst [vmem:[%s2934_s21 + $0x90] sm:$0xff] %v1363_v50  ;;  %v1372_v50 = vmul.f32 %v860_v22, %v3066_v17  ;;  %v357_v5 = vunpack.c.0.s8 %v3088_v37  ;;  %v1374_v63 = vmul.f32 %v862_v45, %v3084_v34  ;;  %v358_v7 = vunpack.c.0.s8 %v3097_v49  ;;  %v867_v22 = vld [vmem:[%s2870_s28 + $0x110] sm:$0xff] }
  0x51   : > { %1876 = vst [vmem:[%s2934_s21 + $0x98] sm:$0xff] %v1364_v53  ;;  %v356_v53 = vunpack.c.0.s8 %v3079_v32  ;;  %v1375_v11 = vmul.f32 %v863_v51, %v3093_v46  ;;  %v3126_v18 = vcvt.s32.f32 %v355_v47  ;;  %v359_v20 = vunpack.c.0.s8 %v3106_v54 }
  0x52   : > { %1877 = vst [vmem:[%s2934_s21 + $0xa0] sm:$0xff] %v1365_v58  ;;  %v864_v58 = vld [vmem:[%s2870_s28 + $0xf8] sm:$0xff]  ;;  %v1377_v23 = vmul.f32 %v865_v8, %v3111_v59  ;;  %v361_v45 = vunpack.c.1.s8 %v3052_v4  ;;  %v3144_v51 = vcvt.s32.f32 %v358_v7  ;;  %v363_v8 = vunpack.c.1.s8 %v3070_v21 }
  0x53   : > { %1878 = vst [vmem:[%s2934_s21 + $0xa8] sm:$0xff] %v1366_v62  ;;  %v3115_v62 = vld [vmem:[%s2860_s3 + $0x78] sm:$0xff]  ;;  %v3132_v29 = vcvt.s32.f32 %v356_v53  ;;  %v362_v53 = vunpack.c.1.s8 %v3061_v14 }
  0x54   : > { %1879 = vst [vmem:[%s2934_s21 + $0xb0] sm:$0xff] %v1367_v6  ;;  %v3120_v6 = vcvt.s32.f32 %v354_v36  ;;  %v868_v36 = vld [vmem:[%s2870_s28 + $0x118] sm:$0xff] }
  0x55   : > { %1880 = vst [vmem:[%s2934_s21 + $0xb8] sm:$0xff] %v1368_v16  ;;  %v866_v16 = vld [vmem:[%s2870_s28 + $0x108] sm:$0xff] }
  0x56   : > { %1881 = vst [vmem:[%s2934_s21 + $0xc0] sm:$0xff] %v1369_v25  ;;  %v1376_v25 = vmul.f32 %v864_v58, %v3102_v0  ;;  %v1378_v47 = vmul.f32 %v866_v16, %v3120_v6  ;;  %v870_v58 = vld [vmem:[%s2870_s28 + $0x128] sm:$0xff]  ;;  %v871_v16 = vld [vmem:[%s2870_s28 + $0x130] sm:$0xff] }
  0x57   : > { %1882 = vst [vmem:[%s2934_s21 + $0xc8] sm:$0xff] %v1370_v33  ;;  %v360_v33 = vunpack.c.0.s8 %v3115_v62 }
  0x58   : > { %5632 = vst [vmem:[#allocation16_spill] sm:$0xff] %v3120_v6  ;;  %v364_v6 = vunpack.c.1.s8 %v3079_v32 }
  0x59   : > { %1883 = vst [vmem:[%s2934_s21 + $0xd0] sm:$0xff] %v1371_v40  ;;  %v3138_v40 = vcvt.s32.f32 %v357_v5  ;;  %v3150_v5 = vcvt.s32.f32 %v359_v20  ;;  %v3156_v7 = vcvt.s32.f32 %v360_v33  ;;  %v3162_v20 = vcvt.s32.f32 %v361_v45 }
  0x5a   : > { %5633 = vst [vmem:[#allocation17_spill] sm:$0xff] %v3126_v18  ;;  %v3168_v33 = vcvt.s32.f32 %v362_v53  ;;  %v3174_v45 = vcvt.s32.f32 %v363_v8  ;;  %v3180_v53 = vcvt.s32.f32 %v364_v6 }
  0x5b   : > { %1884 = vst [vmem:[%s2934_s21 + $0xd8] sm:$0xff] %v1372_v50  ;;  %v869_v50 = vld [vmem:[%s2870_s28 + $0x120] sm:$0xff] }
  0x5c   : > { %5634 = vst [vmem:[#allocation18_spill] sm:$0xff] %v3132_v29 }
  0x5d   : > { %1885 = vst [vmem:[%s2934_s21 + $0xe0] sm:$0xff] %v1373_v1  ;;  %v1379_v1 = vmul.f32 %v867_v22, %v3126_v18  ;;  %v872_v22 = vld [vmem:[%s2870_s28 + $0x138] sm:$0xff]  ;;  %v365_v18 = vunpack.c.1.s8 %v3088_v37 }
  0x5e   : > { %5635 = vst [vmem:[#allocation19_spill] sm:$0xff] %v3138_v40 }
  0x5f   : > { %1886 = vst [vmem:[%s2934_s21 + $0xe8] sm:$0xff] %v1374_v63  ;;  %v1380_v63 = vmul.f32 %v868_v36, %v3132_v29  ;;  %v873_v36 = vld [vmem:[%s2870_s28 + $0x140] sm:$0xff]  ;;  %v366_v29 = vunpack.c.1.s8 %v3097_v49  ;;  %v3186_v8 = vcvt.s32.f32 %v365_v18 }
  0x60   : > { %5636 = vst [vmem:[#allocation20_spill] sm:$0xff] %v3144_v51 }
  0x61   : > { %1887 = vst [vmem:[%s2934_s21 + $0xf0] sm:$0xff] %v1375_v11  ;;  %v1381_v11 = vmul.f32 %v869_v50, %v3138_v40  ;;  %v874_v50 = vld [vmem:[%s2870_s28 + $0x148] sm:$0xff]  ;;  %v367_v40 = vunpack.c.1.s8 %v3106_v54  ;;  %v3192_v6 = vcvt.s32.f32 %v366_v29 }
  0x62   : > { %5637 = vst [vmem:[#allocation21_spill] sm:$0xff] %v3150_v5 }
  0x63   : > { %1888 = vst [vmem:[%s2934_s21 + $0xf8] sm:$0xff] %v1376_v25  ;;  %v1382_v25 = vmul.f32 %v870_v58, %v3144_v51  ;;  %v875_v58 = vld [vmem:[%s2870_s28 + $0x150] sm:$0xff]  ;;  %v368_v51 = vunpack.c.1.s8 %v3115_v62  ;;  %v3198_v18 = vcvt.s32.f32 %v367_v40 }
  0x64   : > { %5638 = vst [vmem:[#allocation22_spill] sm:$0xff] %v3156_v7 }
  0x65   : > { %1889 = vst [vmem:[%s2934_s21 + $0x100] sm:$0xff] %v1377_v23  ;;  %v1383_v23 = vmul.f32 %v871_v16, %v3150_v5  ;;  %v876_v16 = vld [vmem:[%s2870_s28 + $0x158] sm:$0xff]  ;;  %v369_v5 = vunpack.c.2.s8 %v3052_v4  ;;  %v3204_v29 = vcvt.s32.f32 %v368_v51 }
  0x66   : > { %5639 = vst [vmem:[#allocation23_spill] sm:$0xff] %v3162_v20 }
  0x67   : > { %1890 = vst [vmem:[%s2934_s21 + $0x108] sm:$0xff] %v1378_v47  ;;  %v1384_v47 = vmul.f32 %v872_v22, %v3156_v7  ;;  %v877_v22 = vld [vmem:[%s2870_s28 + $0x160] sm:$0xff]  ;;  %v370_v7 = vunpack.c.2.s8 %v3061_v14  ;;  %v3210_v40 = vcvt.s32.f32 %v369_v5 }
  0x68   : > { %5640 = vst [vmem:[#allocation24_spill] sm:$0xff] %v3168_v33 }
  0x69   : > { %1891 = vst [vmem:[%s2934_s21 + $0x110] sm:$0xff] %v1379_v1  ;;  %v1385_v1 = vmul.f32 %v873_v36, %v3162_v20  ;;  %v878_v36 = vld [vmem:[%s2870_s28 + $0x168] sm:$0xff]  ;;  %v371_v20 = vunpack.c.2.s8 %v3070_v21  ;;  %v3216_v51 = vcvt.s32.f32 %v370_v7 }
  0x6a   : > { %5641 = vst [vmem:[#allocation25_spill] sm:$0xff] %v3174_v45 }
  0x6b   : > { %1892 = vst [vmem:[%s2934_s21 + $0x118] sm:$0xff] %v1380_v63  ;;  %v1386_v63 = vmul.f32 %v874_v50, %v3168_v33  ;;  %v879_v50 = vld [vmem:[%s2870_s28 + $0x170] sm:$0xff]  ;;  %v372_v33 = vunpack.c.2.s8 %v3079_v32  ;;  %v3222_v5 = vcvt.s32.f32 %v371_v20 }
  0x6c   : > { %5642 = vst [vmem:[#allocation26_spill] sm:$0xff] %v3180_v53 }
  0x6d   : > { %1893 = vst [vmem:[%s2934_s21 + $0x120] sm:$0xff] %v1381_v11  ;;  %v1387_v11 = vmul.f32 %v875_v58, %v3174_v45  ;;  %v880_v58 = vld [vmem:[%s2870_s28 + $0x178] sm:$0xff]  ;;  %v373_v45 = vunpack.c.2.s8 %v3088_v37  ;;  %v3228_v7 = vcvt.s32.f32 %v372_v33 }
  0x6e   : > { %5643 = vst [vmem:[#allocation27_spill] sm:$0xff] %v3186_v8 }
  0x6f   : > { %1894 = vst [vmem:[%s2934_s21 + $0x128] sm:$0xff] %v1382_v25  ;;  %v1388_v25 = vmul.f32 %v876_v16, %v3180_v53  ;;  %v881_v16 = vld [vmem:[%s2870_s28 + $0x180] sm:$0xff]  ;;  %v374_v53 = vunpack.c.2.s8 %v3097_v49  ;;  %v3234_v20 = vcvt.s32.f32 %v373_v45 }
  0x70   : > { %5644 = vst [vmem:[#allocation28_spill] sm:$0xff] %v3192_v6 }
  0x71   : > { %1895 = vst [vmem:[%s2934_s21 + $0x130] sm:$0xff] %v1383_v23  ;;  %v1389_v23 = vmul.f32 %v877_v22, %v3186_v8  ;;  %v882_v22 = vld [vmem:[%s2870_s28 + $0x188] sm:$0xff]  ;;  %v375_v8 = vunpack.c.2.s8 %v3106_v54  ;;  %v3240_v33 = vcvt.s32.f32 %v374_v53 }
  0x72   : > { %5645 = vst [vmem:[#allocation29_spill] sm:$0xff] %v3198_v18 }
  0x73   : > { %1896 = vst [vmem:[%s2934_s21 + $0x138] sm:$0xff] %v1384_v47  ;;  %v1390_v47 = vmul.f32 %v878_v36, %v3192_v6  ;;  %v883_v36 = vld [vmem:[%s2870_s28 + $0x190] sm:$0xff]  ;;  %v376_v6 = vunpack.c.2.s8 %v3115_v62  ;;  %v3246_v45 = vcvt.s32.f32 %v375_v8  ;;  %v888_v8 = vld [vmem:[%s2870_s28 + $0x1b8] sm:$0xff] }
  0x74   : > { %5646 = vst [vmem:[#allocation30_spill] sm:$0xff] %v3204_v29 }
  0x75   : > { %1897 = vst [vmem:[%s2934_s21 + $0x140] sm:$0xff] %v1385_v1  ;;  %v1391_v1 = vmul.f32 %v879_v50, %v3198_v18  ;;  %v884_v50 = vld [vmem:[%s2870_s28 + $0x198] sm:$0xff]  ;;  %v377_v18 = vunpack.c.3.s8 %v3052_v4  ;;  %v379_v4 = vunpack.c.3.s8 %v3070_v21  ;;  %v3252_v53 = vcvt.s32.f32 %v376_v6 }
  0x76   : > { %5647 = vst [vmem:[#allocation31_spill] sm:$0xff] %v3210_v40  ;;  %v381_v21 = vunpack.c.3.s8 %v3088_v37 }
  0x77   : > { %1898 = vst [vmem:[%s2934_s21 + $0x148] sm:$0xff] %v1386_v63  ;;  %v1392_v63 = vmul.f32 %v880_v58, %v3204_v29  ;;  %v885_v58 = vld [vmem:[%s2870_s28 + $0x1a0] sm:$0xff]  ;;  %v378_v29 = vunpack.c.3.s8 %v3061_v14  ;;  %v380_v14 = vunpack.c.3.s8 %v3079_v32  ;;  %v382_v32 = vunpack.c.3.s8 %v3097_v49  ;;  %v891_v49 = vld [vmem:[%s2870_s28 + $0x1d0] sm:$0xff] }
  0x78   : > { %5648 = vst [vmem:[#allocation32_spill] sm:$0xff] %v3216_v51  ;;  %v3273_v37 = vcvt.s32.f32 %v379_v4 }
  0x79   : > { %1899 = vst [vmem:[%s2934_s21 + $0x150] sm:$0xff] %v1387_v11  ;;  %v1393_v11 = vmul.f32 %v881_v16, %v3210_v40  ;;  %v886_v16 = vld [vmem:[%s2870_s28 + $0x1a8] sm:$0xff]  ;;  %v3264_v6 = vcvt.s32.f32 %v378_v29  ;;  %v1400_v29 = vmul.f32 %v888_v8, %v3252_v53  ;;  %v3295_v8 = vld [vmem:[%s2860_s3 + $0x98] sm:$0xff] }
  0x7a   : > { %5649 = vst [vmem:[#allocation33_spill] sm:$0xff] %v3222_v5 }
  0x7b   : > { %1900 = vst [vmem:[%s2934_s21 + $0x158] sm:$0xff] %v1388_v25  ;;  %v1394_v25 = vmul.f32 %v882_v22, %v3216_v51  ;;  %v887_v22 = vld [vmem:[%s2870_s28 + $0x1b0] sm:$0xff] }
  0x7c   : > { %5650 = vst [vmem:[#allocation34_spill] sm:$0xff] %v3228_v7 }
  0x7d   : > { %1901 = vst [vmem:[%s2934_s21 + $0x160] sm:$0xff] %v1389_v23  ;;  %v1395_v23 = vmul.f32 %v883_v36, %v3222_v5  ;;  %v3258_v36 = vcvt.s32.f32 %v377_v18  ;;  %v1399_v18 = vmul.f32 %v887_v22, %v3246_v45  ;;  %v3286_v22 = vld [vmem:[%s2860_s3 + $0x90] sm:$0xff] }
  0x7e   : > { %5651 = vst [vmem:[#allocation35_spill] sm:$0xff] %v3234_v20 }
  0x7f   : > { %1902 = vst [vmem:[%s2934_s21 + $0x168] sm:$0xff] %v1390_v47  ;;  %v1396_v47 = vmul.f32 %v884_v50, %v3228_v7  ;;  %v889_v50 = vld [vmem:[%s2870_s28 + $0x1c0] sm:$0xff] }
  0x80   : > { %5652 = vst [vmem:[#allocation36_spill] sm:$0xff] %v3240_v33  ;;  %v1401_v4 = vmul.f32 %v889_v50, %v3258_v36  ;;  %v3304_v50 = vld [vmem:[%s2860_s3 + $0xa0] sm:$0xff] }
  0x81   : > { %1903 = vst [vmem:[%s2934_s21 + $0x170] sm:$0xff] %v1391_v1  ;;  %v1397_v1 = vmul.f32 %v885_v58, %v3234_v20  ;;  %v890_v58 = vld [vmem:[%s2870_s28 + $0x1c8] sm:$0xff] }
  0x82   : > { %5653 = vst [vmem:[#allocation37_spill] sm:$0xff] %v3246_v45  ;;  %v3291_v45 = vcvt.s32.f32 %v381_v21  ;;  %v1403_v21 = vmul.f32 %v891_v49, %v3273_v37  ;;  %v3322_v49 = vld [vmem:[%s2860_s3 + $0xb0] sm:$0xff] }
  0x83   : > { %1904 = vst [vmem:[%s2934_s21 + $0x178] sm:$0xff] %v1392_v63  ;;  %v1398_v63 = vmul.f32 %v886_v16, %v3240_v33  ;;  %v3277_v16 = vld [vmem:[%s2860_s3 + $0x88] sm:$0xff]  ;;  %v3282_v33 = vcvt.s32.f32 %v380_v14  ;;  %v1402_v14 = vmul.f32 %v890_v58, %v3264_v6  ;;  %v391_v40 = vunpack.c.0.s8 %v3322_v49 }
  0x84   : > { %5654 = vst [vmem:[#allocation38_spill] sm:$0xff] %v3252_v53  ;;  %v3300_v53 = vcvt.s32.f32 %v382_v32  ;;  %v3313_v58 = vld [vmem:[%s2860_s3 + $0xa8] sm:$0xff] }
  0x85   : > { %1905 = vst [vmem:[%s2934_s21 + $0x180] sm:$0xff] %v1393_v11  ;;  %v3268_v11 = vld [vmem:[%s2860_s3 + $0x80] sm:$0xff] }
  0x86   : > { %5655 = vst [vmem:[#allocation39_spill] sm:$0xff] %v3258_v36  ;;  %v894_v36 = vld [vmem:[%s2870_s28 + $0x1e8] sm:$0xff] }
  0x87   : > { %1906 = vst [vmem:[%s2934_s21 + $0x188] sm:$0xff] %v1394_v25  ;;  %v383_v25 = vunpack.c.3.s8 %v3106_v54  ;;  %v892_v54 = vld [vmem:[%s2870_s28 + $0x1d8] sm:$0xff] }
  0x88   : > { %5656 = vst [vmem:[#allocation40_spill] sm:$0xff] %v3264_v6  ;;  %v1404_v32 = vmul.f32 %v892_v54, %v3282_v33  ;;  %v895_v6 = vld [vmem:[%s2870_s28 + $0x1f0] sm:$0xff]  ;;  %v3331_v54 = vld [vmem:[%s2860_s3 + $0xb8] sm:$0xff] }
  0x89   : > { %1907 = vst [vmem:[%s2934_s21 + $0x190] sm:$0xff] %v1395_v23  ;;  %v384_v23 = vunpack.c.3.s8 %v3115_v62  ;;  %v893_v62 = vld [vmem:[%s2870_s28 + $0x1e0] sm:$0xff]  ;;  %v3309_v20 = vcvt.s32.f32 %v383_v25 }
  0x8a   : > { %5657 = vst [vmem:[#allocation41_spill] sm:$0xff] %v3273_v37  ;;  %v1405_v25 = vmul.f32 %v893_v62, %v3291_v45  ;;  %v896_v37 = vld [vmem:[%s2870_s28 + $0x1f8] sm:$0xff] }
  0x8b   : > { %1908 = vst [vmem:[%s2934_s21 + $0x198] sm:$0xff] %v1396_v47  ;;  %v385_v47 = vunpack.c.0.s8 %v3268_v11  ;;  %v3318_v7 = vcvt.s32.f32 %v384_v23  ;;  %v1406_v23 = vmul.f32 %v894_v36, %v3300_v53  ;;  %v1407_v62 = vmul.f32 %v895_v6, %v3309_v20 }
  0x8c   : > { %5658 = vst [vmem:[#allocation42_spill] sm:$0xff] %v3282_v33  ;;  %v897_v33 = vld [vmem:[%s2870_s28 + $0x200] sm:$0xff] }
  0x8d   : > { %1909 = vst [vmem:[%s2934_s21 + $0x1a0] sm:$0xff] %v1397_v1  ;;  %v386_v1 = vunpack.c.0.s8 %v3277_v16  ;;  %v3327_v5 = vcvt.s32.f32 %v385_v47  ;;  %v898_v47 = vld [vmem:[%s2870_s28 + $0x208] sm:$0xff]  ;;  %v1408_v36 = vmul.f32 %v896_v37, %v3318_v7 }
  0x8e   : > { %5659 = vst [vmem:[#allocation43_spill] sm:$0xff] %v3291_v45 }
  0x8f   : > { %1910 = vst [vmem:[%s2934_s21 + $0x1a8] sm:$0xff] %v1398_v63  ;;  %v387_v63 = vunpack.c.0.s8 %v3286_v22  ;;  %v3336_v51 = vcvt.s32.f32 %v386_v1  ;;  %v1409_v6 = vmul.f32 %v897_v33, %v3327_v5 }
  0x90   : > { %5660 = vst [vmem:[#allocation44_spill] sm:$0xff] %v3300_v53  ;;  %v392_v53 = vunpack.c.0.s8 %v3331_v54 }
  0x91   : > { %1911 = vst [vmem:[%s2934_s21 + $0x1b0] sm:$0xff] %v1399_v18  ;;  %v388_v18 = vunpack.c.0.s8 %v3295_v8  ;;  %v3342_v45 = vcvt.s32.f32 %v387_v63  ;;  %v1410_v37 = vmul.f32 %v898_v47, %v3336_v51  ;;  %v903_v47 = vld [vmem:[%s2870_s28 + $0x230] sm:$0xff] }
  0x92   : > { %5661 = vst [vmem:[#allocation45_spill] sm:$0xff] %v3309_v20  ;;  %v393_v20 = vunpack.c.1.s8 %v3268_v11 }
  0x93   : > { %1912 = vst [vmem:[%s2934_s21 + $0x1b8] sm:$0xff] %v1400_v29  ;;  %v389_v29 = vunpack.c.0.s8 %v3304_v50  ;;  %v3348_v1 = vcvt.s32.f32 %v388_v18 }
  0x94   : > { %5662 = vst [vmem:[#allocation46_spill] sm:$0xff] %v3318_v7  ;;  %v394_v7 = vunpack.c.1.s8 %v3277_v16 }
  0x95   : > { %1913 = vst [vmem:[%s2934_s21 + $0x1c0] sm:$0xff] %v1401_v4  ;;  %v390_v4 = vunpack.c.0.s8 %v3313_v58  ;;  %v3354_v63 = vcvt.s32.f32 %v389_v29  ;;  %v3366_v29 = vcvt.s32.f32 %v391_v40  ;;  %v3378_v40 = vcvt.s32.f32 %v393_v20 }
  0x96   : > { %5663 = vst [vmem:[#allocation47_spill] sm:$0xff] %v3327_v5  ;;  %v395_v5 = vunpack.c.1.s8 %v3286_v22 }
  0x97   : > { %1914 = vst [vmem:[%s2934_s21 + $0x1c8] sm:$0xff] %v1402_v14  ;;  %v899_v14 = vld [vmem:[%s2870_s28 + $0x210] sm:$0xff]  ;;  %v3360_v18 = vcvt.s32.f32 %v390_v4  ;;  %v3372_v4 = vcvt.s32.f32 %v392_v53  ;;  %v3384_v53 = vcvt.s32.f32 %v394_v7 }
  0x98   : > { %5664 = vst [vmem:[#allocation48_spill] sm:$0xff] %v3336_v51  ;;  %v1411_v33 = vmul.f32 %v899_v14, %v3342_v45  ;;  %v396_v51 = vunpack.c.1.s8 %v3295_v8  ;;  %v904_v14 = vld [vmem:[%s2870_s28 + $0x238] sm:$0xff]  ;;  %v3390_v20 = vcvt.s32.f32 %v395_v5 }
  0x99   : > { %1915 = vst [vmem:[%s2934_s21 + $0x1d0] sm:$0xff] %v1403_v21  ;;  %v900_v21 = vld [vmem:[%s2870_s28 + $0x218] sm:$0xff] }
  0x9a   : > { %5665 = vst [vmem:[#allocation49_spill] sm:$0xff] %v3342_v45  ;;  %v397_v45 = vunpack.c.1.s8 %v3304_v50  ;;  %v3396_v7 = vcvt.s32.f32 %v396_v51 }
  0x9b   : > { %1916 = vst [vmem:[%s2934_s21 + $0x1d8] sm:$0xff] %v1404_v32  ;;  %v901_v32 = vld [vmem:[%s2870_s28 + $0x220] sm:$0xff] }
  0x9c   : > { %5666 = vst [vmem:[#allocation50_spill] sm:$0xff] %v3348_v1  ;;  %v3402_v5 = vcvt.s32.f32 %v397_v45 }
  0x9d   : > { %1917 = vst [vmem:[%s2934_s21 + $0x1e0] sm:$0xff] %v1405_v25  ;;  %v902_v25 = vld [vmem:[%s2870_s28 + $0x228] sm:$0xff] }
  0x9e   : > { %5667 = vst [vmem:[#allocation51_spill] sm:$0xff] %v3354_v63 }
  0x9f   : > { %1918 = vst [vmem:[%s2934_s21 + $0x1e8] sm:$0xff] %v1406_v23  ;;  %v1412_v23 = vmul.f32 %v900_v21, %v3348_v1  ;;  %v905_v21 = vld [vmem:[%s2870_s28 + $0x240] sm:$0xff]  ;;  %v398_v1 = vunpack.c.1.s8 %v3313_v58 }
  0xa0   : > { %5668 = vst [vmem:[#allocation52_spill] sm:$0xff] %v3360_v18 }
  0xa1   : > { %1919 = vst [vmem:[%s2934_s21 + $0x1f0] sm:$0xff] %v1407_v62  ;;  %v1413_v62 = vmul.f32 %v901_v32, %v3354_v63  ;;  %v906_v32 = vld [vmem:[%s2870_s28 + $0x248] sm:$0xff]  ;;  %v399_v63 = vunpack.c.1.s8 %v3322_v49  ;;  %v3408_v51 = vcvt.s32.f32 %v398_v1 }
  0xa2   : > { %5669 = vst [vmem:[#allocation53_spill] sm:$0xff] %v3366_v29 }
  0xa3   : > { %1920 = vst [vmem:[%s2934_s21 + $0x1f8] sm:$0xff] %v1408_v36  ;;  %v1414_v36 = vmul.f32 %v902_v25, %v3360_v18  ;;  %v907_v25 = vld [vmem:[%s2870_s28 + $0x250] sm:$0xff]  ;;  %v400_v18 = vunpack.c.1.s8 %v3331_v54  ;;  %v3414_v45 = vcvt.s32.f32 %v399_v63 }
  0xa4   : > { %5670 = vst [vmem:[#allocation54_spill] sm:$0xff] %v3372_v4 }
  0xa5   : > { %1921 = vst [vmem:[%s2934_s21 + $0x200] sm:$0xff] %v1409_v6  ;;  %v1415_v6 = vmul.f32 %v903_v47, %v3366_v29  ;;  %v908_v47 = vld [vmem:[%s2870_s28 + $0x258] sm:$0xff]  ;;  %v401_v29 = vunpack.c.2.s8 %v3268_v11  ;;  %v3420_v1 = vcvt.s32.f32 %v400_v18 }
  0xa6   : > { %5671 = vst [vmem:[#allocation55_spill] sm:$0xff] %v3378_v40 }
  0xa7   : > { %1922 = vst [vmem:[%s2934_s21 + $0x208] sm:$0xff] %v1410_v37  ;;  %v1416_v37 = vmul.f32 %v904_v14, %v3372_v4  ;;  %v909_v14 = vld [vmem:[%s2870_s28 + $0x260] sm:$0xff]  ;;  %v402_v4 = vunpack.c.2.s8 %v3277_v16  ;;  %v3426_v63 = vcvt.s32.f32 %v401_v29 }
  0xa8   : > { %5672 = vst [vmem:[#allocation56_spill] sm:$0xff] %v3384_v53 }
  0xa9   : > { %1923 = vst [vmem:[%s2934_s21 + $0x210] sm:$0xff] %v1411_v33  ;;  %v1417_v33 = vmul.f32 %v905_v21, %v3378_v40  ;;  %v910_v21 = vld [vmem:[%s2870_s28 + $0x268] sm:$0xff]  ;;  %v403_v40 = vunpack.c.2.s8 %v3286_v22  ;;  %v3432_v18 = vcvt.s32.f32 %v402_v4 }
  0xaa   : > { %5673 = vst [vmem:[#allocation57_spill] sm:$0xff] %v3390_v20 }
  0xab   : > { %1924 = vst [vmem:[%s2934_s21 + $0x218] sm:$0xff] %v1412_v23  ;;  %v1418_v23 = vmul.f32 %v906_v32, %v3384_v53  ;;  %v911_v32 = vld [vmem:[%s2870_s28 + $0x270] sm:$0xff]  ;;  %v404_v53 = vunpack.c.2.s8 %v3295_v8  ;;  %v3438_v29 = vcvt.s32.f32 %v403_v40 }
  0xac   : > { %5674 = vst [vmem:[#allocation58_spill] sm:$0xff] %v3396_v7 }
  0xad   : > { %1925 = vst [vmem:[%s2934_s21 + $0x220] sm:$0xff] %v1413_v62  ;;  %v1419_v62 = vmul.f32 %v907_v25, %v3390_v20  ;;  %v912_v25 = vld [vmem:[%s2870_s28 + $0x278] sm:$0xff]  ;;  %v405_v20 = vunpack.c.2.s8 %v3304_v50  ;;  %v3444_v4 = vcvt.s32.f32 %v404_v53 }
  0xae   : > { %5675 = vst [vmem:[#allocation59_spill] sm:$0xff] %v3402_v5 }
  0xaf   : > { %1926 = vst [vmem:[%s2934_s21 + $0x228] sm:$0xff] %v1414_v36  ;;  %v1420_v36 = vmul.f32 %v908_v47, %v3396_v7  ;;  %v913_v47 = vld [vmem:[%s2870_s28 + $0x280] sm:$0xff]  ;;  %v406_v7 = vunpack.c.2.s8 %v3313_v58  ;;  %v3450_v40 = vcvt.s32.f32 %v405_v20 }
  0xb0   : > { %5676 = vst [vmem:[#allocation60_spill] sm:$0xff] %v3408_v51 }
  0xb1   : > { %1927 = vst [vmem:[%s2934_s21 + $0x230] sm:$0xff] %v1415_v6  ;;  %v1421_v6 = vmul.f32 %v909_v14, %v3402_v5  ;;  %v914_v14 = vld [vmem:[%s2870_s28 + $0x288] sm:$0xff]  ;;  %v407_v5 = vunpack.c.2.s8 %v3322_v49  ;;  %v3456_v53 = vcvt.s32.f32 %v406_v7 }
  0xb2   : > { %5677 = vst [vmem:[#allocation61_spill] sm:$0xff] %v3414_v45 }
  0xb3   : > { %1928 = vst [vmem:[%s2934_s21 + $0x238] sm:$0xff] %v1416_v37  ;;  %v1422_v37 = vmul.f32 %v910_v21, %v3408_v51  ;;  %v915_v21 = vld [vmem:[%s2870_s28 + $0x290] sm:$0xff]  ;;  %v408_v51 = vunpack.c.2.s8 %v3331_v54  ;;  %v3462_v20 = vcvt.s32.f32 %v407_v5  ;;  %v920_v5 = vld [vmem:[%s2870_s28 + $0x2b8] sm:$0xff] }
  0xb4   : > { %5678 = vst [vmem:[#allocation62_spill] sm:$0xff] %v3420_v1 }
  0xb5   : > { %1929 = vst [vmem:[%s2934_s21 + $0x240] sm:$0xff] %v1417_v33  ;;  %v1423_v33 = vmul.f32 %v911_v32, %v3414_v45  ;;  %v916_v32 = vld [vmem:[%s2870_s28 + $0x298] sm:$0xff]  ;;  %v409_v45 = vunpack.c.3.s8 %v3268_v11  ;;  %v411_v11 = vunpack.c.3.s8 %v3286_v22  ;;  %v3468_v7 = vcvt.s32.f32 %v408_v51 }
  0xb6   : > { %5679 = vst [vmem:[#allocation63_spill] sm:$0xff] %v3426_v63  ;;  %v413_v22 = vunpack.c.3.s8 %v3304_v50 }
  0xb7   : > { %1930 = vst [vmem:[%s2934_s21 + $0x248] sm:$0xff] %v1418_v23  ;;  %v1424_v23 = vmul.f32 %v912_v25, %v3420_v1  ;;  %v917_v25 = vld [vmem:[%s2870_s28 + $0x2a0] sm:$0xff]  ;;  %v410_v1 = vunpack.c.3.s8 %v3277_v16  ;;  %v412_v16 = vunpack.c.3.s8 %v3295_v8  ;;  %v414_v8 = vunpack.c.3.s8 %v3313_v58  ;;  %v923_v58 = vld [vmem:[%s2870_s28 + $0x2d0] sm:$0xff] }
  0xb8   : > { %5680 = vst [vmem:[#allocation64_spill] sm:$0xff] %v3432_v18  ;;  %v3489_v50 = vcvt.s32.f32 %v411_v11 }
  0xb9   : > { %1931 = vst [vmem:[%s2934_s21 + $0x250] sm:$0xff] %v1419_v62  ;;  %v1425_v62 = vmul.f32 %v913_v47, %v3426_v63  ;;  %v918_v47 = vld [vmem:[%s2870_s28 + $0x2a8] sm:$0xff]  ;;  %v3480_v51 = vcvt.s32.f32 %v410_v1  ;;  %v1432_v1 = vmul.f32 %v920_v5, %v3468_v7  ;;  %v3511_v5 = vld [vmem:[%s2860_s3 + $0xd8] sm:$0xff] }
  0xba   : > { %5681 = vst [vmem:[#allocation65_spill] sm:$0xff] %v3438_v29 }
  0xbb   : > { %1932 = vst [vmem:[%s2934_s21 + $0x258] sm:$0xff] %v1420_v36  ;;  %v1426_v36 = vmul.f32 %v914_v14, %v3432_v18  ;;  %v919_v14 = vld [vmem:[%s2870_s28 + $0x2b0] sm:$0xff] }
  0xbc   : > { %5682 = vst [vmem:[#allocation66_spill] sm:$0xff] %v3444_v4 }
  0xbd   : > { %1933 = vst [vmem:[%s2934_s21 + $0x260] sm:$0xff] %v1421_v6  ;;  %v1427_v6 = vmul.f32 %v915_v21, %v3438_v29  ;;  %v3474_v21 = vcvt.s32.f32 %v409_v45  ;;  %v1431_v45 = vmul.f32 %v919_v14, %v3462_v20  ;;  %v3502_v14 = vld [vmem:[%s2860_s3 + $0xd0] sm:$0xff] }
  0xbe   : > { %5683 = vst [vmem:[#allocation67_spill] sm:$0xff] %v3450_v40 }
  0xbf   : > { %1934 = vst [vmem:[%s2934_s21 + $0x268] sm:$0xff] %v1422_v37  ;;  %v1428_v37 = vmul.f32 %v916_v32, %v3444_v4  ;;  %v921_v32 = vld [vmem:[%s2870_s28 + $0x2c0] sm:$0xff] }
  0xc0   : > { %5684 = vst [vmem:[#allocation68_spill] sm:$0xff] %v3456_v53  ;;  %v1433_v11 = vmul.f32 %v921_v32, %v3474_v21  ;;  %v3520_v32 = vld [vmem:[%s2860_s3 + $0xe0] sm:$0xff] }
  0xc1   : > { %1935 = vst [vmem:[%s2934_s21 + $0x270] sm:$0xff] %v1423_v33  ;;  %v1429_v33 = vmul.f32 %v917_v25, %v3450_v40  ;;  %v922_v25 = vld [vmem:[%s2870_s28 + $0x2c8] sm:$0xff] }
  0xc2   : > { %5685 = vst [vmem:[#allocation69_spill] sm:$0xff] %v3462_v20  ;;  %v3507_v20 = vcvt.s32.f32 %v413_v22  ;;  %v1435_v22 = vmul.f32 %v923_v58, %v3489_v50  ;;  %v3538_v58 = vld [vmem:[%s2860_s3 + $0xf0] sm:$0xff] }
  0xc3   : > { %1936 = vst [vmem:[%s2934_s21 + $0x278] sm:$0xff] %v1424_v23  ;;  %v1430_v23 = vmul.f32 %v918_v47, %v3456_v53  ;;  %v3493_v47 = vld [vmem:[%s2860_s3 + $0xc8] sm:$0xff]  ;;  %v3498_v53 = vcvt.s32.f32 %v412_v16  ;;  %v1434_v16 = vmul.f32 %v922_v25, %v3480_v51  ;;  %v423_v63 = vunpack.c.0.s8 %v3538_v58 }
  0xc4   : > { %5686 = vst [vmem:[#allocation70_spill] sm:$0xff] %v3468_v7  ;;  %v3516_v7 = vcvt.s32.f32 %v414_v8  ;;  %v3529_v25 = vld [vmem:[%s2860_s3 + $0xe8] sm:$0xff] }
  0xc5   : > { %1937 = vst [vmem:[%s2934_s21 + $0x280] sm:$0xff] %v1425_v62  ;;  %v3484_v62 = vld [vmem:[%s2860_s3 + $0xc0] sm:$0xff] }
  0xc6   : > { %5687 = vst [vmem:[#allocation71_spill] sm:$0xff] %v3474_v21  ;;  %v926_v21 = vld [vmem:[%s2870_s28 + $0x2e8] sm:$0xff] }
  0xc7   : > { %1938 = vst [vmem:[%s2934_s21 + $0x288] sm:$0xff] %v1426_v36  ;;  %v415_v36 = vunpack.c.3.s8 %v3322_v49  ;;  %v924_v49 = vld [vmem:[%s2870_s28 + $0x2d8] sm:$0xff] }
  0xc8   : > { %5688 = vst [vmem:[#allocation72_spill] sm:$0xff] %v3480_v51  ;;  %v1436_v8 = vmul.f32 %v924_v49, %v3498_v53  ;;  %v927_v51 = vld [vmem:[%s2870_s28 + $0x2f0] sm:$0xff]  ;;  %v3547_v49 = vld [vmem:[%s2860_s3 + $0xf8] sm:$0xff] }
  0xc9   : > { %1939 = vst [vmem:[%s2934_s21 + $0x290] sm:$0xff] %v1427_v6  ;;  %v416_v6 = vunpack.c.3.s8 %v3331_v54  ;;  %v925_v54 = vld [vmem:[%s2870_s28 + $0x2e0] sm:$0xff]  ;;  %v3525_v40 = vcvt.s32.f32 %v415_v36 }
  0xca   : > { %5689 = vst [vmem:[#allocation73_spill] sm:$0xff] %v3489_v50  ;;  %v1437_v36 = vmul.f32 %v925_v54, %v3507_v20  ;;  %v928_v50 = vld [vmem:[%s2870_s28 + $0x2f8] sm:$0xff] }
  0xcb   : > { %1940 = vst [vmem:[%s2934_s21 + $0x298] sm:$0xff] %v1428_v37  ;;  %v417_v37 = vunpack.c.0.s8 %v3484_v62  ;;  %v3534_v4 = vcvt.s32.f32 %v416_v6  ;;  %v1438_v6 = vmul.f32 %v926_v21, %v3516_v7  ;;  %v1439_v54 = vmul.f32 %v927_v51, %v3525_v40 }
  0xcc   : > { %5690 = vst [vmem:[#allocation74_spill] sm:$0xff] %v3498_v53  ;;  %v929_v53 = vld [vmem:[%s2870_s28 + $0x300] sm:$0xff] }
  0xcd   : > { %1941 = vst [vmem:[%s2934_s21 + $0x2a0] sm:$0xff] %v1429_v33  ;;  %v418_v33 = vunpack.c.0.s8 %v3493_v47  ;;  %v3543_v29 = vcvt.s32.f32 %v417_v37  ;;  %v930_v37 = vld [vmem:[%s2870_s28 + $0x308] sm:$0xff]  ;;  %v1440_v21 = vmul.f32 %v928_v50, %v3534_v4 }
  0xce   : > { %5691 = vst [vmem:[#allocation75_spill] sm:$0xff] %v3507_v20 }
  0xcf   : > { %1942 = vst [vmem:[%s2934_s21 + $0x2a8] sm:$0xff] %v1430_v23  ;;  %v419_v23 = vunpack.c.0.s8 %v3502_v14  ;;  %v3552_v18 = vcvt.s32.f32 %v418_v33  ;;  %v1441_v51 = vmul.f32 %v929_v53, %v3543_v29 }
  0xd0   : > { %5692 = vst [vmem:[#allocation76_spill] sm:$0xff] %v3516_v7  ;;  %v424_v7 = vunpack.c.0.s8 %v3547_v49 }
  0xd1   : > { %1943 = vst [vmem:[%s2934_s21 + $0x2b0] sm:$0xff] %v1431_v45  ;;  %v420_v45 = vunpack.c.0.s8 %v3511_v5  ;;  %v3558_v20 = vcvt.s32.f32 %v419_v23  ;;  %v1442_v50 = vmul.f32 %v930_v37, %v3552_v18  ;;  %v935_v37 = vld [vmem:[%s2870_s28 + $0x330] sm:$0xff] }
  0xd2   : > { %5693 = vst [vmem:[#allocation77_spill] sm:$0xff] %v3525_v40  ;;  %v425_v40 = vunpack.c.1.s8 %v3484_v62 }
  0xd3   : > { %1944 = vst [vmem:[%s2934_s21 + $0x2b8] sm:$0xff] %v1432_v1  ;;  %v421_v1 = vunpack.c.0.s8 %v3520_v32  ;;  %v3564_v33 = vcvt.s32.f32 %v420_v45 }
  0xd4   : > { %5694 = vst [vmem:[#allocation78_spill] sm:$0xff] %v3534_v4  ;;  %v426_v4 = vunpack.c.1.s8 %v3493_v47 }
  0xd5   : > { %1945 = vst [vmem:[%s2934_s21 + $0x2c0] sm:$0xff] %v1433_v11  ;;  %v422_v11 = vunpack.c.0.s8 %v3529_v25  ;;  %v3570_v23 = vcvt.s32.f32 %v421_v1  ;;  %v3582_v1 = vcvt.s32.f32 %v423_v63  ;;  %v3594_v63 = vcvt.s32.f32 %v425_v40 }
  0xd6   : > { %5695 = vst [vmem:[#allocation79_spill] sm:$0xff] %v3543_v29  ;;  %v427_v29 = vunpack.c.1.s8 %v3502_v14 }
  0xd7   : > { %1946 = vst [vmem:[%s2934_s21 + $0x2c8] sm:$0xff] %v1434_v16  ;;  %v931_v16 = vld [vmem:[%s2870_s28 + $0x310] sm:$0xff]  ;;  %v3576_v45 = vcvt.s32.f32 %v422_v11  ;;  %v3588_v11 = vcvt.s32.f32 %v424_v7  ;;  %v3600_v7 = vcvt.s32.f32 %v426_v4 }
  0xd8   : > { %5696 = vst [vmem:[#allocation80_spill] sm:$0xff] %v3552_v18  ;;  %v1443_v53 = vmul.f32 %v931_v16, %v3558_v20  ;;  %v428_v18 = vunpack.c.1.s8 %v3511_v5  ;;  %v936_v16 = vld [vmem:[%s2870_s28 + $0x338] sm:$0xff]  ;;  %v3606_v40 = vcvt.s32.f32 %v427_v29 }
  0xd9   : > { %1947 = vst [vmem:[%s2934_s21 + $0x2d0] sm:$0xff] %v1435_v22  ;;  %v932_v22 = vld [vmem:[%s2870_s28 + $0x318] sm:$0xff] }
  0xda   : > { %5697 = vst [vmem:[#allocation81_spill] sm:$0xff] %v3558_v20  ;;  %v429_v20 = vunpack.c.1.s8 %v3520_v32  ;;  %v3612_v4 = vcvt.s32.f32 %v428_v18 }
  0xdb   : > { %1948 = vst [vmem:[%s2934_s21 + $0x2d8] sm:$0xff] %v1436_v8  ;;  %v933_v8 = vld [vmem:[%s2870_s28 + $0x320] sm:$0xff] }
  0xdc   : > { %5698 = vst [vmem:[#allocation82_spill] sm:$0xff] %v3564_v33  ;;  %v3618_v29 = vcvt.s32.f32 %v429_v20 }
  0xdd   : > { %1949 = vst [vmem:[%s2934_s21 + $0x2e0] sm:$0xff] %v1437_v36  ;;  %v934_v36 = vld [vmem:[%s2870_s28 + $0x328] sm:$0xff] }
  0xde   : > { %5699 = vst [vmem:[#allocation83_spill] sm:$0xff] %v3570_v23 }
  0xdf   : > { %1950 = vst [vmem:[%s2934_s21 + $0x2e8] sm:$0xff] %v1438_v6  ;;  %v1444_v6 = vmul.f32 %v932_v22, %v3564_v33  ;;  %v937_v22 = vld [vmem:[%s2870_s28 + $0x340] sm:$0xff]  ;;  %v430_v33 = vunpack.c.1.s8 %v3529_v25 }
  0xe0   : > { %5700 = vst [vmem:[#allocation84_spill] sm:$0xff] %v3576_v45 }
  0xe1   : > { %1951 = vst [vmem:[%s2934_s21 + $0x2f0] sm:$0xff] %v1439_v54  ;;  %v1445_v54 = vmul.f32 %v933_v8, %v3570_v23  ;;  %v938_v8 = vld [vmem:[%s2870_s28 + $0x348] sm:$0xff]  ;;  %v431_v23 = vunpack.c.1.s8 %v3538_v58  ;;  %v3624_v18 = vcvt.s32.f32 %v430_v33 }
  0xe2   : > { %5701 = vst [vmem:[#allocation85_spill] sm:$0xff] %v3582_v1 }
  0xe3   : > { %1952 = vst [vmem:[%s2934_s21 + $0x2f8] sm:$0xff] %v1440_v21  ;;  %v1446_v21 = vmul.f32 %v934_v36, %v3576_v45  ;;  %v939_v36 = vld [vmem:[%s2870_s28 + $0x350] sm:$0xff]  ;;  %v432_v45 = vunpack.c.1.s8 %v3547_v49  ;;  %v3630_v20 = vcvt.s32.f32 %v431_v23 }
  0xe4   : > { %5702 = vst [vmem:[#allocation86_spill] sm:$0xff] %v3588_v11 }
  0xe5   : > { %1953 = vst [vmem:[%s2934_s21 + $0x300] sm:$0xff] %v1441_v51  ;;  %v1447_v51 = vmul.f32 %v935_v37, %v3582_v1  ;;  %v940_v37 = vld [vmem:[%s2870_s28 + $0x358] sm:$0xff]  ;;  %v433_v1 = vunpack.c.2.s8 %v3484_v62  ;;  %v3636_v33 = vcvt.s32.f32 %v432_v45 }
  0xe6   : > { %5703 = vst [vmem:[#allocation87_spill] sm:$0xff] %v3594_v63 }
  0xe7   : > { %1954 = vst [vmem:[%s2934_s21 + $0x308] sm:$0xff] %v1442_v50  ;;  %v1448_v50 = vmul.f32 %v936_v16, %v3588_v11  ;;  %v941_v16 = vld [vmem:[%s2870_s28 + $0x360] sm:$0xff]  ;;  %v434_v11 = vunpack.c.2.s8 %v3493_v47  ;;  %v3642_v23 = vcvt.s32.f32 %v433_v1 }
  0xe8   : > { %5704 = vst [vmem:[#allocation88_spill] sm:$0xff] %v3600_v7 }
  0xe9   : > { %1955 = vst [vmem:[%s2934_s21 + $0x310] sm:$0xff] %v1443_v53  ;;  %v1449_v53 = vmul.f32 %v937_v22, %v3594_v63  ;;  %v942_v22 = vld [vmem:[%s2870_s28 + $0x368] sm:$0xff]  ;;  %v435_v63 = vunpack.c.2.s8 %v3502_v14  ;;  %v3648_v45 = vcvt.s32.f32 %v434_v11 }
  0xea   : > { %5705 = vst [vmem:[#allocation89_spill] sm:$0xff] %v3606_v40 }
  0xeb   : > { %1956 = vst [vmem:[%s2934_s21 + $0x318] sm:$0xff] %v1444_v6  ;;  %v1450_v6 = vmul.f32 %v938_v8, %v3600_v7  ;;  %v943_v8 = vld [vmem:[%s2870_s28 + $0x370] sm:$0xff]  ;;  %v436_v7 = vunpack.c.2.s8 %v3511_v5  ;;  %v3654_v1 = vcvt.s32.f32 %v435_v63 }
  0xec   : > { %5706 = vst [vmem:[#allocation90_spill] sm:$0xff] %v3612_v4 }
  0xed   : > { %1957 = vst [vmem:[%s2934_s21 + $0x320] sm:$0xff] %v1445_v54  ;;  %v1451_v54 = vmul.f32 %v939_v36, %v3606_v40  ;;  %v944_v36 = vld [vmem:[%s2870_s28 + $0x378] sm:$0xff]  ;;  %v437_v40 = vunpack.c.2.s8 %v3520_v32  ;;  %v3660_v11 = vcvt.s32.f32 %v436_v7 }
  0xee   : > { %5707 = vst [vmem:[#allocation91_spill] sm:$0xff] %v3618_v29 }
  0xef   : > { %1958 = vst [vmem:[%s2934_s21 + $0x328] sm:$0xff] %v1446_v21  ;;  %v1452_v21 = vmul.f32 %v940_v37, %v3612_v4  ;;  %v945_v37 = vld [vmem:[%s2870_s28 + $0x380] sm:$0xff]  ;;  %v438_v4 = vunpack.c.2.s8 %v3529_v25  ;;  %v3666_v63 = vcvt.s32.f32 %v437_v40 }
  0xf0   : > { %5708 = vst [vmem:[#allocation92_spill] sm:$0xff] %v3624_v18 }
  0xf1   : > { %1959 = vst [vmem:[%s2934_s21 + $0x330] sm:$0xff] %v1447_v51  ;;  %v1453_v51 = vmul.f32 %v941_v16, %v3618_v29  ;;  %v946_v16 = vld [vmem:[%s2870_s28 + $0x388] sm:$0xff]  ;;  %v439_v29 = vunpack.c.2.s8 %v3538_v58  ;;  %v3672_v7 = vcvt.s32.f32 %v438_v4 }
  0xf2   : > { %5709 = vst [vmem:[#allocation93_spill] sm:$0xff] %v3630_v20 }
  0xf3   : > { %1960 = vst [vmem:[%s2934_s21 + $0x338] sm:$0xff] %v1448_v50  ;;  %v1454_v50 = vmul.f32 %v942_v22, %v3624_v18  ;;  %v947_v22 = vld [vmem:[%s2870_s28 + $0x390] sm:$0xff]  ;;  %v440_v18 = vunpack.c.2.s8 %v3547_v49  ;;  %v3678_v40 = vcvt.s32.f32 %v439_v29  ;;  %v952_v29 = vld [vmem:[%s2870_s28 + $0x3b8] sm:$0xff] }
  0xf4   : > { %5710 = vst [vmem:[#allocation94_spill] sm:$0xff] %v3636_v33 }
  0xf5   : > { %1961 = vst [vmem:[%s2934_s21 + $0x340] sm:$0xff] %v1449_v53  ;;  %v1455_v53 = vmul.f32 %v943_v8, %v3630_v20  ;;  %v948_v8 = vld [vmem:[%s2870_s28 + $0x398] sm:$0xff]  ;;  %v441_v20 = vunpack.c.3.s8 %v3484_v62  ;;  %v443_v62 = vunpack.c.3.s8 %v3502_v14  ;;  %v3684_v4 = vcvt.s32.f32 %v440_v18 }
  0xf6   : > { %5711 = vst [vmem:[#allocation95_spill] sm:$0xff] %v3642_v23  ;;  %v445_v14 = vunpack.c.3.s8 %v3520_v32 }
  0xf7   : > { %1962 = vst [vmem:[%s2934_s21 + $0x348] sm:$0xff] %v1450_v6  ;;  %v1456_v6 = vmul.f32 %v944_v36, %v3636_v33  ;;  %v949_v36 = vld [vmem:[%s2870_s28 + $0x3a0] sm:$0xff]  ;;  %v442_v33 = vunpack.c.3.s8 %v3493_v47  ;;  %v444_v47 = vunpack.c.3.s8 %v3511_v5  ;;  %v446_v5 = vunpack.c.3.s8 %v3529_v25  ;;  %v955_v25 = vld [vmem:[%s2870_s28 + $0x3d0] sm:$0xff] }
  0xf8   : > { %5712 = vst [vmem:[#allocation96_spill] sm:$0xff] %v3648_v45  ;;  %v3705_v32 = vcvt.s32.f32 %v443_v62 }
  0xf9   : > { %1963 = vst [vmem:[%s2934_s21 + $0x350] sm:$0xff] %v1451_v54  ;;  %v1457_v54 = vmul.f32 %v945_v37, %v3642_v23  ;;  %v950_v37 = vld [vmem:[%s2870_s28 + $0x3a8] sm:$0xff]  ;;  %v3696_v18 = vcvt.s32.f32 %v442_v33  ;;  %v1464_v33 = vmul.f32 %v952_v29, %v3684_v4  ;;  %v3727_v29 = vld [vmem:[%s2860_s3 + $0x118] sm:$0xff] }
  0xfa   : > { %5713 = vst [vmem:[#allocation97_spill] sm:$0xff] %v3654_v1 }
  0xfb   : > { %1964 = vst [vmem:[%s2934_s21 + $0x358] sm:$0xff] %v1452_v21  ;;  %v1458_v21 = vmul.f32 %v946_v16, %v3648_v45  ;;  %v951_v16 = vld [vmem:[%s2870_s28 + $0x3b0] sm:$0xff] }
  0xfc   : > { %5714 = vst [vmem:[#allocation98_spill] sm:$0xff] %v3660_v11 }
  0xfd   : > { %1965 = vst [vmem:[%s2934_s21 + $0x360] sm:$0xff] %v1453_v51  ;;  %v1459_v51 = vmul.f32 %v947_v22, %v3654_v1  ;;  %v3690_v22 = vcvt.s32.f32 %v441_v20  ;;  %v1463_v20 = vmul.f32 %v951_v16, %v3678_v40  ;;  %v3718_v16 = vld [vmem:[%s2860_s3 + $0x110] sm:$0xff] }
  0xfe   : > { %5715 = vst [vmem:[#allocation99_spill] sm:$0xff] %v3666_v63 }
  0xff   : > { %1966 = vst [vmem:[%s2934_s21 + $0x368] sm:$0xff] %v1454_v50  ;;  %v1460_v50 = vmul.f32 %v948_v8, %v3660_v11  ;;  %v953_v8 = vld [vmem:[%s2870_s28 + $0x3c0] sm:$0xff] }
 0x100   : > { %5716 = vst [vmem:[#allocation100_spill] sm:$0xff] %v3672_v7  ;;  %v1465_v62 = vmul.f32 %v953_v8, %v3690_v22  ;;  %v3736_v8 = vld [vmem:[%s2860_s3 + $0x120] sm:$0xff] }
 0x101   : > { %1967 = vst [vmem:[%s2934_s21 + $0x370] sm:$0xff] %v1455_v53  ;;  %v1461_v53 = vmul.f32 %v949_v36, %v3666_v63  ;;  %v954_v36 = vld [vmem:[%s2870_s28 + $0x3c8] sm:$0xff] }
 0x102   : > { %5717 = vst [vmem:[#allocation101_spill] sm:$0xff] %v3678_v40  ;;  %v3723_v40 = vcvt.s32.f32 %v445_v14  ;;  %v1467_v14 = vmul.f32 %v955_v25, %v3705_v32  ;;  %v3754_v25 = vld [vmem:[%s2860_s3 + $0x130] sm:$0xff] }
 0x103   : > { %1968 = vst [vmem:[%s2934_s21 + $0x378] sm:$0xff] %v1456_v6  ;;  %v1462_v6 = vmul.f32 %v950_v37, %v3672_v7  ;;  %v3709_v37 = vld [vmem:[%s2860_s3 + $0x108] sm:$0xff]  ;;  %v3714_v7 = vcvt.s32.f32 %v444_v47  ;;  %v1466_v47 = vmul.f32 %v954_v36, %v3696_v18  ;;  %v455_v23 = vunpack.c.0.s8 %v3754_v25 }
 0x104   : > { %5718 = vst [vmem:[#allocation102_spill] sm:$0xff] %v3684_v4  ;;  %v3732_v4 = vcvt.s32.f32 %v446_v5  ;;  %v3745_v36 = vld [vmem:[%s2860_s3 + $0x128] sm:$0xff] }
 0x105   : > { %1969 = vst [vmem:[%s2934_s21 + $0x380] sm:$0xff] %v1457_v54  ;;  %v3700_v54 = vld [vmem:[%s2860_s3 + $0x100] sm:$0xff] }
 0x106   : > { %5719 = vst [vmem:[#allocation103_spill] sm:$0xff] %v3690_v22  ;;  %v958_v22 = vld [vmem:[%s2870_s28 + $0x3e8] sm:$0xff] }
 0x107   : > { %1970 = vst [vmem:[%s2934_s21 + $0x388] sm:$0xff] %v1458_v21  ;;  %v447_v21 = vunpack.c.3.s8 %v3538_v58  ;;  %v956_v58 = vld [vmem:[%s2870_s28 + $0x3d8] sm:$0xff] }
 0x108   : > { %5720 = vst [vmem:[#allocation104_spill] sm:$0xff] %v3696_v18  ;;  %v1468_v5 = vmul.f32 %v956_v58, %v3714_v7  ;;  %v959_v18 = vld [vmem:[%s2870_s28 + $0x3f0] sm:$0xff]  ;;  %v3763_v58 = vld [vmem:[%s2860_s3 + $0x138] sm:$0xff] }
 0x109   : > { %1971 = vst [vmem:[%s2934_s21 + $0x390] sm:$0xff] %v1459_v51  ;;  %v448_v51 = vunpack.c.3.s8 %v3547_v49  ;;  %v957_v49 = vld [vmem:[%s2870_s28 + $0x3e0] sm:$0xff]  ;;  %v3741_v63 = vcvt.s32.f32 %v447_v21 }
 0x10a   : > { %5721 = vst [vmem:[#allocation105_spill] sm:$0xff] %v3705_v32  ;;  %v1469_v21 = vmul.f32 %v957_v49, %v3723_v40  ;;  %v960_v32 = vld [vmem:[%s2870_s28 + $0x3f8] sm:$0xff] }
 0x10b   : > { %1972 = vst [vmem:[%s2934_s21 + $0x398] sm:$0xff] %v1460_v50  ;;  %v449_v50 = vunpack.c.0.s8 %v3700_v54  ;;  %v3750_v11 = vcvt.s32.f32 %v448_v51  ;;  %v1470_v51 = vmul.f32 %v958_v22, %v3732_v4  ;;  %v1471_v49 = vmul.f32 %v959_v18, %v3741_v63 }
 0x10c   : > { %5722 = vst [vmem:[#allocation106_spill] sm:$0xff] %v3714_v7  ;;  %v961_v7 = vld [vmem:[%s2870_s28 + $0x400] sm:$0xff] }
 0x10d   : > { %1973 = vst [vmem:[%s2934_s21 + $0x3a0] sm:$0xff] %v1461_v53  ;;  %v450_v53 = vunpack.c.0.s8 %v3709_v37  ;;  %v3759_v1 = vcvt.s32.f32 %v449_v50  ;;  %v962_v50 = vld [vmem:[%s2870_s28 + $0x408] sm:$0xff]  ;;  %v1472_v22 = vmul.f32 %v960_v32, %v3750_v11 }
 0x10e   : > { %5723 = vst [vmem:[#allocation107_spill] sm:$0xff] %v3723_v40 }
 0x10f   : > { %1974 = vst [vmem:[%s2934_s21 + $0x3a8] sm:$0xff] %v1462_v6  ;;  %v451_v6 = vunpack.c.0.s8 %v3718_v16  ;;  %v3768_v45 = vcvt.s32.f32 %v450_v53  ;;  %v1473_v18 = vmul.f32 %v961_v7, %v3759_v1 }
 0x110   : > { %5724 = vst [vmem:[#allocation108_spill] sm:$0xff] %v3732_v4  ;;  %v456_v4 = vunpack.c.0.s8 %v3763_v58 }
 0x111   : > { %1975 = vst [vmem:[%s2934_s21 + $0x3b0] sm:$0xff] %v1463_v20  ;;  %v452_v20 = vunpack.c.0.s8 %v3727_v29  ;;  %v3774_v40 = vcvt.s32.f32 %v451_v6  ;;  %v1474_v32 = vmul.f32 %v962_v50, %v3768_v45  ;;  %v967_v50 = vld [vmem:[%s2870_s28 + $0x430] sm:$0xff] }
 0x112   : > { %5725 = vst [vmem:[#allocation109_spill] sm:$0xff] %v3741_v63  ;;  %v457_v63 = vunpack.c.1.s8 %v3700_v54 }
 0x113   : > { %1976 = vst [vmem:[%s2934_s21 + $0x3b8] sm:$0xff] %v1464_v33  ;;  %v453_v33 = vunpack.c.0.s8 %v3736_v8  ;;  %v3780_v53 = vcvt.s32.f32 %v452_v20 }
 0x114   : > { %5726 = vst [vmem:[#allocation110_spill] sm:$0xff] %v3750_v11  ;;  %v458_v11 = vunpack.c.1.s8 %v3709_v37 }
 0x115   : > { %1977 = vst [vmem:[%s2934_s21 + $0x3c0] sm:$0xff] %v1465_v62  ;;  %v454_v62 = vunpack.c.0.s8 %v3745_v36  ;;  %v3786_v6 = vcvt.s32.f32 %v453_v33  ;;  %v3798_v33 = vcvt.s32.f32 %v455_v23  ;;  %v3810_v23 = vcvt.s32.f32 %v457_v63 }
 0x116   : > { %5727 = vst [vmem:[#allocation111_spill] sm:$0xff] %v3759_v1  ;;  %v459_v1 = vunpack.c.1.s8 %v3718_v16 }
 0x117   : > { %1978 = vst [vmem:[%s2934_s21 + $0x3c8] sm:$0xff] %v1466_v47  ;;  %v963_v47 = vld [vmem:[%s2870_s28 + $0x410] sm:$0xff]  ;;  %v3792_v20 = vcvt.s32.f32 %v454_v62  ;;  %v3804_v62 = vcvt.s32.f32 %v456_v4  ;;  %v3816_v4 = vcvt.s32.f32 %v458_v11 }
 0x118   : > { %5728 = vst [vmem:[#allocation112_spill] sm:$0xff] %v3768_v45  ;;  %v1475_v7 = vmul.f32 %v963_v47, %v3774_v40  ;;  %v460_v45 = vunpack.c.1.s8 %v3727_v29  ;;  %v968_v47 = vld [vmem:[%s2870_s28 + $0x438] sm:$0xff]  ;;  %v3822_v63 = vcvt.s32.f32 %v459_v1 }
 0x119   : > { %1979 = vst [vmem:[%s2934_s21 + $0x3d0] sm:$0xff] %v1467_v14  ;;  %v964_v14 = vld [vmem:[%s2870_s28 + $0x418] sm:$0xff] }
 0x11a   : > { %5729 = vst [vmem:[#allocation113_spill] sm:$0xff] %v3774_v40  ;;  %v461_v40 = vunpack.c.1.s8 %v3736_v8  ;;  %v3828_v11 = vcvt.s32.f32 %v460_v45 }
 0x11b   : > { %1980 = vst [vmem:[%s2934_s21 + $0x3d8] sm:$0xff] %v1468_v5  ;;  %v965_v5 = vld [vmem:[%s2870_s28 + $0x420] sm:$0xff] }
 0x11c   : > { %5730 = vst [vmem:[#allocation114_spill] sm:$0xff] %v3780_v53  ;;  %v3834_v1 = vcvt.s32.f32 %v461_v40 }
 0x11d   : > { %1981 = vst [vmem:[%s2934_s21 + $0x3e0] sm:$0xff] %v1469_v21  ;;  %v966_v21 = vld [vmem:[%s2870_s28 + $0x428] sm:$0xff] }
 0x11e   : > { %5731 = vst [vmem:[#allocation115_spill] sm:$0xff] %v3786_v6 }
 0x11f   : > { %1982 = vst [vmem:[%s2934_s21 + $0x3e8] sm:$0xff] %v1470_v51  ;;  %v1476_v51 = vmul.f32 %v964_v14, %v3780_v53  ;;  %v969_v14 = vld [vmem:[%s2870_s28 + $0x440] sm:$0xff]  ;;  %v462_v53 = vunpack.c.1.s8 %v3745_v36 }
 0x120   : > { %5732 = vst [vmem:[#allocation116_spill] sm:$0xff] %v3792_v20 }
 0x121   : > { %1983 = vst [vmem:[%s2934_s21 + $0x3f0] sm:$0xff] %v1471_v49  ;;  %v1477_v49 = vmul.f32 %v965_v5, %v3786_v6  ;;  %v970_v5 = vld [vmem:[%s2870_s28 + $0x448] sm:$0xff]  ;;  %v463_v6 = vunpack.c.1.s8 %v3754_v25  ;;  %v3840_v45 = vcvt.s32.f32 %v462_v53 }
 0x122   : > { %5733 = vst [vmem:[#allocation117_spill] sm:$0xff] %v3798_v33 }
 0x123   : > { %1984 = vst [vmem:[%s2934_s21 + $0x3f8] sm:$0xff] %v1472_v22  ;;  %v1478_v22 = vmul.f32 %v966_v21, %v3792_v20  ;;  %v971_v21 = vld [vmem:[%s2870_s28 + $0x450] sm:$0xff]  ;;  %v464_v20 = vunpack.c.1.s8 %v3763_v58  ;;  %v3846_v40 = vcvt.s32.f32 %v463_v6 }
 0x124   : > { %5734 = vst [vmem:[#allocation118_spill] sm:$0xff] %v3804_v62 }
 0x125   : > { %1985 = vst [vmem:[%s2934_s21 + $0x400] sm:$0xff] %v1473_v18  ;;  %v1479_v18 = vmul.f32 %v967_v50, %v3798_v33  ;;  %v972_v50 = vld [vmem:[%s2870_s28 + $0x458] sm:$0xff]  ;;  %v465_v33 = vunpack.c.2.s8 %v3700_v54  ;;  %v3852_v53 = vcvt.s32.f32 %v464_v20 }
 0x126   : > { %5735 = vst [vmem:[#allocation119_spill] sm:$0xff] %v3810_v23 }
 0x127   : > { %1986 = vst [vmem:[%s2934_s21 + $0x408] sm:$0xff] %v1474_v32  ;;  %v1480_v32 = vmul.f32 %v968_v47, %v3804_v62  ;;  %v973_v47 = vld [vmem:[%s2870_s28 + $0x460] sm:$0xff]  ;;  %v466_v62 = vunpack.c.2.s8 %v3709_v37  ;;  %v3858_v6 = vcvt.s32.f32 %v465_v33 }
 0x128   : > { %5736 = vst [vmem:[#allocation120_spill] sm:$0xff] %v3816_v4 }
 0x129   : > { %1987 = vst [vmem:[%s2934_s21 + $0x410] sm:$0xff] %v1475_v7  ;;  %v1481_v7 = vmul.f32 %v969_v14, %v3810_v23  ;;  %v974_v14 = vld [vmem:[%s2870_s28 + $0x468] sm:$0xff]  ;;  %v467_v23 = vunpack.c.2.s8 %v3718_v16  ;;  %v3864_v20 = vcvt.s32.f32 %v466_v62 }
 0x12a   : > { %5737 = vst [vmem:[#allocation121_spill] sm:$0xff] %v3822_v63 }
 0x12b   : > { %1988 = vst [vmem:[%s2934_s21 + $0x418] sm:$0xff] %v1476_v51  ;;  %v1482_v51 = vmul.f32 %v970_v5, %v3816_v4  ;;  %v975_v5 = vld [vmem:[%s2870_s28 + $0x470] sm:$0xff]  ;;  %v468_v4 = vunpack.c.2.s8 %v3727_v29  ;;  %v3870_v33 = vcvt.s32.f32 %v467_v23 }
 0x12c   : > { %5738 = vst [vmem:[#allocation122_spill] sm:$0xff] %v3828_v11 }
 0x12d   : > { %1989 = vst [vmem:[%s2934_s21 + $0x420] sm:$0xff] %v1477_v49  ;;  %v1483_v49 = vmul.f32 %v971_v21, %v3822_v63  ;;  %v976_v21 = vld [vmem:[%s2870_s28 + $0x478] sm:$0xff]  ;;  %v469_v63 = vunpack.c.2.s8 %v3736_v8  ;;  %v3876_v62 = vcvt.s32.f32 %v468_v4 }
 0x12e   : > { %5739 = vst [vmem:[#allocation123_spill] sm:$0xff] %v3834_v1 }
 0x12f   : > { %1990 = vst [vmem:[%s2934_s21 + $0x428] sm:$0xff] %v1478_v22  ;;  %v1484_v22 = vmul.f32 %v972_v50, %v3828_v11  ;;  %v977_v50 = vld [vmem:[%s2870_s28 + $0x480] sm:$0xff]  ;;  %v470_v11 = vunpack.c.2.s8 %v3745_v36  ;;  %v3882_v23 = vcvt.s32.f32 %v469_v63 }
 0x130   : > { %5740 = vst [vmem:[#allocation124_spill] sm:$0xff] %v3840_v45 }
 0x131   : > { %1991 = vst [vmem:[%s2934_s21 + $0x430] sm:$0xff] %v1479_v18  ;;  %v1485_v18 = vmul.f32 %v973_v47, %v3834_v1  ;;  %v978_v47 = vld [vmem:[%s2870_s28 + $0x488] sm:$0xff]  ;;  %v471_v1 = vunpack.c.2.s8 %v3754_v25  ;;  %v3888_v4 = vcvt.s32.f32 %v470_v11 }
 0x132   : > { %5741 = vst [vmem:[#allocation125_spill] sm:$0xff] %v3846_v40 }
 0x133   : > { %1992 = vst [vmem:[%s2934_s21 + $0x438] sm:$0xff] %v1480_v32  ;;  %v1486_v32 = vmul.f32 %v974_v14, %v3840_v45  ;;  %v979_v14 = vld [vmem:[%s2870_s28 + $0x490] sm:$0xff]  ;;  %v472_v45 = vunpack.c.2.s8 %v3763_v58  ;;  %v3894_v63 = vcvt.s32.f32 %v471_v1  ;;  %v984_v1 = vld [vmem:[%s2870_s28 + $0x4b8] sm:$0xff] }
 0x134   : > { %5742 = vst [vmem:[#allocation126_spill] sm:$0xff] %v3852_v53 }
 0x135   : > { %1993 = vst [vmem:[%s2934_s21 + $0x440] sm:$0xff] %v1481_v7  ;;  %v1487_v7 = vmul.f32 %v975_v5, %v3846_v40  ;;  %v980_v5 = vld [vmem:[%s2870_s28 + $0x498] sm:$0xff]  ;;  %v473_v40 = vunpack.c.3.s8 %v3700_v54  ;;  %v475_v54 = vunpack.c.3.s8 %v3718_v16  ;;  %v3900_v11 = vcvt.s32.f32 %v472_v45 }
 0x136   : > { %5743 = vst [vmem:[#allocation127_spill] sm:$0xff] %v3858_v6  ;;  %v477_v16 = vunpack.c.3.s8 %v3736_v8 }
 0x137   : > { %1994 = vst [vmem:[%s2934_s21 + $0x448] sm:$0xff] %v1482_v51  ;;  %v1488_v51 = vmul.f32 %v976_v21, %v3852_v53  ;;  %v981_v21 = vld [vmem:[%s2870_s28 + $0x4a0] sm:$0xff]  ;;  %v474_v53 = vunpack.c.3.s8 %v3709_v37  ;;  %v476_v37 = vunpack.c.3.s8 %v3727_v29  ;;  %v478_v29 = vunpack.c.3.s8 %v3745_v36  ;;  %v987_v36 = vld [vmem:[%s2870_s28 + $0x4d0] sm:$0xff] }
 0x138   : > { %5744 = vst [vmem:[#allocation128_spill] sm:$0xff] %v3864_v20  ;;  %v3921_v8 = vcvt.s32.f32 %v475_v54 }
 0x139   : > { %1995 = vst [vmem:[%s2934_s21 + $0x450] sm:$0xff] %v1483_v49  ;;  %v1489_v49 = vmul.f32 %v977_v50, %v3858_v6  ;;  %v982_v50 = vld [vmem:[%s2870_s28 + $0x4a8] sm:$0xff]  ;;  %v3912_v45 = vcvt.s32.f32 %v474_v53  ;;  %v1496_v53 = vmul.f32 %v984_v1, %v3900_v11  ;;  %v3943_v1 = vld [vmem:[%s2860_s3 + $0x158] sm:$0xff] }
 0x13a   : > { %5745 = vst [vmem:[#allocation129_spill] sm:$0xff] %v3870_v33 }
 0x13b   : > { %1996 = vst [vmem:[%s2934_s21 + $0x458] sm:$0xff] %v1484_v22  ;;  %v1490_v22 = vmul.f32 %v978_v47, %v3864_v20  ;;  %v983_v47 = vld [vmem:[%s2870_s28 + $0x4b0] sm:$0xff] }
 0x13c   : > { %5746 = vst [vmem:[#allocation130_spill] sm:$0xff] %v3876_v62 }
 0x13d   : > { %1997 = vst [vmem:[%s2934_s21 + $0x460] sm:$0xff] %v1485_v18  ;;  %v1491_v18 = vmul.f32 %v979_v14, %v3870_v33  ;;  %v3906_v14 = vcvt.s32.f32 %v473_v40  ;;  %v1495_v40 = vmul.f32 %v983_v47, %v3894_v63  ;;  %v3934_v47 = vld [vmem:[%s2860_s3 + $0x150] sm:$0xff] }
 0x13e   : > { %5747 = vst [vmem:[#allocation131_spill] sm:$0xff] %v3882_v23 }
 0x13f   : > { %1998 = vst [vmem:[%s2934_s21 + $0x468] sm:$0xff] %v1486_v32  ;;  %v1492_v32 = vmul.f32 %v980_v5, %v3876_v62  ;;  %v985_v5 = vld [vmem:[%s2870_s28 + $0x4c0] sm:$0xff] }
 0x140   : > { %5748 = vst [vmem:[#allocation132_spill] sm:$0xff] %v3888_v4  ;;  %v1497_v54 = vmul.f32 %v985_v5, %v3906_v14  ;;  %v3952_v5 = vld [vmem:[%s2860_s3 + $0x160] sm:$0xff] }
 0x141   : > { %1999 = vst [vmem:[%s2934_s21 + $0x470] sm:$0xff] %v1487_v7  ;;  %v1493_v7 = vmul.f32 %v981_v21, %v3882_v23  ;;  %v986_v21 = vld [vmem:[%s2870_s28 + $0x4c8] sm:$0xff] }
 0x142   : > { %5749 = vst [vmem:[#allocation133_spill] sm:$0xff] %v3894_v63  ;;  %v3939_v63 = vcvt.s32.f32 %v477_v16  ;;  %v1499_v16 = vmul.f32 %v987_v36, %v3921_v8  ;;  %v3970_v36 = vld [vmem:[%s2860_s3 + $0x170] sm:$0xff] }
 0x143   : > { %2000 = vst [vmem:[%s2934_s21 + $0x478] sm:$0xff] %v1488_v51  ;;  %v1494_v51 = vmul.f32 %v982_v50, %v3888_v4  ;;  %v3925_v50 = vld [vmem:[%s2860_s3 + $0x148] sm:$0xff]  ;;  %v3930_v4 = vcvt.s32.f32 %v476_v37  ;;  %v1498_v37 = vmul.f32 %v986_v21, %v3912_v45  ;;  %v487_v6 = vunpack.c.0.s8 %v3970_v36 }
 0x144   : > { %5750 = vst [vmem:[#allocation134_spill] sm:$0xff] %v3900_v11  ;;  %v3948_v11 = vcvt.s32.f32 %v478_v29  ;;  %v3961_v21 = vld [vmem:[%s2860_s3 + $0x168] sm:$0xff] }
 0x145   : > { %2001 = vst [vmem:[%s2934_s21 + $0x480] sm:$0xff] %v1489_v49  ;;  %v3916_v49 = vld [vmem:[%s2860_s3 + $0x140] sm:$0xff] }
 0x146   : > { %5751 = vst [vmem:[#allocation135_spill] sm:$0xff] %v3906_v14  ;;  %v990_v14 = vld [vmem:[%s2870_s28 + $0x4e8] sm:$0xff] }
 0x147   : > { %2002 = vst [vmem:[%s2934_s21 + $0x488] sm:$0xff] %v1490_v22  ;;  %v479_v22 = vunpack.c.3.s8 %v3754_v25  ;;  %v988_v25 = vld [vmem:[%s2870_s28 + $0x4d8] sm:$0xff] }
 0x148   : > { %5752 = vst [vmem:[#allocation136_spill] sm:$0xff] %v3912_v45  ;;  %v1500_v29 = vmul.f32 %v988_v25, %v3930_v4  ;;  %v991_v45 = vld [vmem:[%s2870_s28 + $0x4f0] sm:$0xff]  ;;  %v3979_v25 = vld [vmem:[%s2860_s3 + $0x178] sm:$0xff] }
 0x149   : > { %2003 = vst [vmem:[%s2934_s21 + $0x490] sm:$0xff] %v1491_v18  ;;  %v480_v18 = vunpack.c.3.s8 %v3763_v58  ;;  %v989_v58 = vld [vmem:[%s2870_s28 + $0x4e0] sm:$0xff]  ;;  %v3957_v23 = vcvt.s32.f32 %v479_v22 }
 0x14a   : > { %5753 = vst [vmem:[#allocation137_spill] sm:$0xff] %v3921_v8  ;;  %v1501_v22 = vmul.f32 %v989_v58, %v3939_v63  ;;  %v992_v8 = vld [vmem:[%s2870_s28 + $0x4f8] sm:$0xff] }
 0x14b   : > { %2004 = vst [vmem:[%s2934_s21 + $0x498] sm:$0xff] %v1492_v32  ;;  %v481_v32 = vunpack.c.0.s8 %v3916_v49  ;;  %v3966_v62 = vcvt.s32.f32 %v480_v18  ;;  %v1502_v18 = vmul.f32 %v990_v14, %v3948_v11  ;;  %v1503_v58 = vmul.f32 %v991_v45, %v3957_v23 }
 0x14c   : > { %5754 = vst [vmem:[#allocation138_spill] sm:$0xff] %v3930_v4  ;;  %v993_v4 = vld [vmem:[%s2870_s28 + $0x500] sm:$0xff] }
 0x14d   : > { %2005 = vst [vmem:[%s2934_s21 + $0x4a0] sm:$0xff] %v1493_v7  ;;  %v482_v7 = vunpack.c.0.s8 %v3925_v50  ;;  %v3975_v33 = vcvt.s32.f32 %v481_v32  ;;  %v994_v32 = vld [vmem:[%s2870_s28 + $0x508] sm:$0xff]  ;;  %v1504_v14 = vmul.f32 %v992_v8, %v3966_v62 }
 0x14e   : > { %5755 = vst [vmem:[#allocation139_spill] sm:$0xff] %v3939_v63 }
 0x14f   : > { %2006 = vst [vmem:[%s2934_s21 + $0x4a8] sm:$0xff] %v1494_v51  ;;  %v483_v51 = vunpack.c.0.s8 %v3934_v47  ;;  %v3984_v20 = vcvt.s32.f32 %v482_v7  ;;  %v1505_v45 = vmul.f32 %v993_v4, %v3975_v33 }
 0x150   : > { %5756 = vst [vmem:[#allocation140_spill] sm:$0xff] %v3948_v11  ;;  %v488_v11 = vunpack.c.0.s8 %v3979_v25 }
 0x151   : > { %2007 = vst [vmem:[%s2934_s21 + $0x4b0] sm:$0xff] %v1495_v40  ;;  %v484_v40 = vunpack.c.0.s8 %v3943_v1  ;;  %v3990_v63 = vcvt.s32.f32 %v483_v51  ;;  %v1506_v8 = vmul.f32 %v994_v32, %v3984_v20  ;;  %v999_v32 = vld [vmem:[%s2870_s28 + $0x530] sm:$0xff] }
 0x152   : > { %5757 = vst [vmem:[#allocation141_spill] sm:$0xff] %v3957_v23  ;;  %v489_v23 = vunpack.c.1.s8 %v3916_v49 }
 0x153   : > { %2008 = vst [vmem:[%s2934_s21 + $0x4b8] sm:$0xff] %v1496_v53  ;;  %v485_v53 = vunpack.c.0.s8 %v3952_v5  ;;  %v3996_v7 = vcvt.s32.f32 %v484_v40 }
 0x154   : > { %5758 = vst [vmem:[#allocation142_spill] sm:$0xff] %v3966_v62  ;;  %v490_v62 = vunpack.c.1.s8 %v3925_v50 }
 0x155   : > { %2009 = vst [vmem:[%s2934_s21 + $0x4c0] sm:$0xff] %v1497_v54  ;;  %v486_v54 = vunpack.c.0.s8 %v3961_v21  ;;  %v4002_v51 = vcvt.s32.f32 %v485_v53  ;;  %v4014_v53 = vcvt.s32.f32 %v487_v6  ;;  %v4026_v6 = vcvt.s32.f32 %v489_v23 }
 0x156   : > { %5759 = vst [vmem:[#allocation143_spill] sm:$0xff] %v3975_v33  ;;  %v491_v33 = vunpack.c.1.s8 %v3934_v47 }
 0x157   : > { %2010 = vst [vmem:[%s2934_s21 + $0x4c8] sm:$0xff] %v1498_v37  ;;  %v995_v37 = vld [vmem:[%s2870_s28 + $0x510] sm:$0xff]  ;;  %v4008_v40 = vcvt.s32.f32 %v486_v54  ;;  %v4020_v54 = vcvt.s32.f32 %v488_v11  ;;  %v4032_v11 = vcvt.s32.f32 %v490_v62 }
 0x158   : > { %5760 = vst [vmem:[#allocation144_spill] sm:$0xff] %v3984_v20  ;;  %v1507_v4 = vmul.f32 %v995_v37, %v3990_v63  ;;  %v492_v20 = vunpack.c.1.s8 %v3943_v1  ;;  %v1000_v37 = vld [vmem:[%s2870_s28 + $0x538] sm:$0xff]  ;;  %v4038_v23 = vcvt.s32.f32 %v491_v33 }
 0x159   : > { %2011 = vst [vmem:[%s2934_s21 + $0x4d0] sm:$0xff] %v1499_v16  ;;  %v996_v16 = vld [vmem:[%s2870_s28 + $0x518] sm:$0xff] }
 0x15a   : > { %5761 = vst [vmem:[#allocation145_spill] sm:$0xff] %v3990_v63  ;;  %v493_v63 = vunpack.c.1.s8 %v3952_v5  ;;  %v4044_v62 = vcvt.s32.f32 %v492_v20 }
 0x15b   : > { %2012 = vst [vmem:[%s2934_s21 + $0x4d8] sm:$0xff] %v1500_v29  ;;  %v997_v29 = vld [vmem:[%s2870_s28 + $0x520] sm:$0xff] }
 0x15c   : > { %5762 = vst [vmem:[#allocation146_spill] sm:$0xff] %v3996_v7  ;;  %v4050_v33 = vcvt.s32.f32 %v493_v63 }
 0x15d   : > { %2013 = vst [vmem:[%s2934_s21 + $0x4e0] sm:$0xff] %v1501_v22  ;;  %v998_v22 = vld [vmem:[%s2870_s28 + $0x528] sm:$0xff] }
 0x15e   : > { %5763 = vst [vmem:[#allocation147_spill] sm:$0xff] %v4002_v51 }
 0x15f   : > { %2014 = vst [vmem:[%s2934_s21 + $0x4e8] sm:$0xff] %v1502_v18  ;;  %v1508_v18 = vmul.f32 %v996_v16, %v3996_v7  ;;  %v1001_v16 = vld [vmem:[%s2870_s28 + $0x540] sm:$0xff]  ;;  %v494_v7 = vunpack.c.1.s8 %v3961_v21 }
 0x160   : > { %5764 = vst [vmem:[#allocation148_spill] sm:$0xff] %v4008_v40 }
 0x161   : > { %2015 = vst [vmem:[%s2934_s21 + $0x4f0] sm:$0xff] %v1503_v58  ;;  %v1509_v58 = vmul.f32 %v997_v29, %v4002_v51  ;;  %v1002_v29 = vld [vmem:[%s2870_s28 + $0x548] sm:$0xff]  ;;  %v495_v51 = vunpack.c.1.s8 %v3970_v36  ;;  %v4056_v20 = vcvt.s32.f32 %v494_v7 }
 0x162   : > { %5765 = vst [vmem:[#allocation149_spill] sm:$0xff] %v4014_v53 }
 0x163   : > { %2016 = vst [vmem:[%s2934_s21 + $0x4f8] sm:$0xff] %v1504_v14  ;;  %v1510_v14 = vmul.f32 %v998_v22, %v4008_v40  ;;  %v1003_v22 = vld [vmem:[%s2870_s28 + $0x550] sm:$0xff]  ;;  %v496_v40 = vunpack.c.1.s8 %v3979_v25  ;;  %v4062_v63 = vcvt.s32.f32 %v495_v51 }
 0x164   : > { %5766 = vst [vmem:[#allocation150_spill] sm:$0xff] %v4020_v54 }
 0x165   : > { %2017 = vst [vmem:[%s2934_s21 + $0x500] sm:$0xff] %v1505_v45  ;;  %v1511_v45 = vmul.f32 %v999_v32, %v4014_v53  ;;  %v1004_v32 = vld [vmem:[%s2870_s28 + $0x558] sm:$0xff]  ;;  %v497_v53 = vunpack.c.2.s8 %v3916_v49  ;;  %v4068_v7 = vcvt.s32.f32 %v496_v40 }
 0x166   : > { %5767 = vst [vmem:[#allocation151_spill] sm:$0xff] %v4026_v6 }
 0x167   : > { %2018 = vst [vmem:[%s2934_s21 + $0x508] sm:$0xff] %v1506_v8  ;;  %v1512_v8 = vmul.f32 %v1000_v37, %v4020_v54  ;;  %v1005_v37 = vld [vmem:[%s2870_s28 + $0x560] sm:$0xff]  ;;  %v498_v54 = vunpack.c.2.s8 %v3925_v50  ;;  %v4074_v51 = vcvt.s32.f32 %v497_v53 }
 0x168   : > { %5768 = vst [vmem:[#allocation152_spill] sm:$0xff] %v4032_v11 }
 0x169   : > { %2019 = vst [vmem:[%s2934_s21 + $0x510] sm:$0xff] %v1507_v4  ;;  %v1513_v4 = vmul.f32 %v1001_v16, %v4026_v6  ;;  %v1006_v16 = vld [vmem:[%s2870_s28 + $0x568] sm:$0xff]  ;;  %v499_v6 = vunpack.c.2.s8 %v3934_v47  ;;  %v4080_v40 = vcvt.s32.f32 %v498_v54 }
 0x16a   : > { %5769 = vst [vmem:[#allocation153_spill] sm:$0xff] %v4038_v23 }
 0x16b   : > { %2020 = vst [vmem:[%s2934_s21 + $0x518] sm:$0xff] %v1508_v18  ;;  %v1514_v18 = vmul.f32 %v1002_v29, %v4032_v11  ;;  %v1007_v29 = vld [vmem:[%s2870_s28 + $0x570] sm:$0xff]  ;;  %v500_v11 = vunpack.c.2.s8 %v3943_v1  ;;  %v4086_v53 = vcvt.s32.f32 %v499_v6 }
 0x16c   : > { %5770 = vst [vmem:[#allocation154_spill] sm:$0xff] %v4044_v62 }
 0x16d   : > { %2021 = vst [vmem:[%s2934_s21 + $0x520] sm:$0xff] %v1509_v58  ;;  %v1515_v58 = vmul.f32 %v1003_v22, %v4038_v23  ;;  %v1008_v22 = vld [vmem:[%s2870_s28 + $0x578] sm:$0xff]  ;;  %v501_v23 = vunpack.c.2.s8 %v3952_v5  ;;  %v4092_v54 = vcvt.s32.f32 %v500_v11 }
 0x16e   : > { %5771 = vst [vmem:[#allocation155_spill] sm:$0xff] %v4050_v33 }
 0x16f   : > { %2022 = vst [vmem:[%s2934_s21 + $0x528] sm:$0xff] %v1510_v14  ;;  %v1516_v14 = vmul.f32 %v1004_v32, %v4044_v62  ;;  %v1009_v32 = vld [vmem:[%s2870_s28 + $0x580] sm:$0xff]  ;;  %v502_v62 = vunpack.c.2.s8 %v3961_v21  ;;  %v4098_v6 = vcvt.s32.f32 %v501_v23 }
 0x170   : > { %5772 = vst [vmem:[#allocation156_spill] sm:$0xff] %v4056_v20 }
 0x171   : > { %2023 = vst [vmem:[%s2934_s21 + $0x530] sm:$0xff] %v1511_v45  ;;  %v1517_v45 = vmul.f32 %v1005_v37, %v4050_v33  ;;  %v1010_v37 = vld [vmem:[%s2870_s28 + $0x588] sm:$0xff]  ;;  %v503_v33 = vunpack.c.2.s8 %v3970_v36  ;;  %v4104_v11 = vcvt.s32.f32 %v502_v62 }
 0x172   : > { %5773 = vst [vmem:[#allocation157_spill] sm:$0xff] %v4062_v63 }
 0x173   : > { %2024 = vst [vmem:[%s2934_s21 + $0x538] sm:$0xff] %v1512_v8  ;;  %v1518_v8 = vmul.f32 %v1006_v16, %v4056_v20  ;;  %v1011_v16 = vld [vmem:[%s2870_s28 + $0x590] sm:$0xff]  ;;  %v504_v20 = vunpack.c.2.s8 %v3979_v25  ;;  %v4110_v23 = vcvt.s32.f32 %v503_v33  ;;  %v1016_v33 = vld [vmem:[%s2870_s28 + $0x5b8] sm:$0xff] }
 0x174   : > { %5774 = vst [vmem:[#allocation158_spill] sm:$0xff] %v4068_v7 }
 0x175   : > { %2025 = vst [vmem:[%s2934_s21 + $0x540] sm:$0xff] %v1513_v4  ;;  %v1519_v4 = vmul.f32 %v1007_v29, %v4062_v63  ;;  %v1012_v29 = vld [vmem:[%s2870_s28 + $0x598] sm:$0xff]  ;;  %v505_v63 = vunpack.c.3.s8 %v3916_v49  ;;  %v507_v49 = vunpack.c.3.s8 %v3934_v47  ;;  %v4116_v62 = vcvt.s32.f32 %v504_v20 }
 0x176   : > { %5775 = vst [vmem:[#allocation159_spill] sm:$0xff] %v4074_v51  ;;  %v509_v47 = vunpack.c.3.s8 %v3952_v5 }
 0x177   : > { %2026 = vst [vmem:[%s2934_s21 + $0x548] sm:$0xff] %v1514_v18  ;;  %v1520_v18 = vmul.f32 %v1008_v22, %v4068_v7  ;;  %v1013_v22 = vld [vmem:[%s2870_s28 + $0x5a0] sm:$0xff]  ;;  %v506_v7 = vunpack.c.3.s8 %v3925_v50  ;;  %v508_v50 = vunpack.c.3.s8 %v3943_v1  ;;  %v510_v1 = vunpack.c.3.s8 %v3961_v21  ;;  %v1019_v21 = vld [vmem:[%s2870_s28 + $0x5d0] sm:$0xff] }
 0x178   : > { %5776 = vst [vmem:[#allocation160_spill] sm:$0xff] %v4080_v40  ;;  %v4137_v5 = vcvt.s32.f32 %v507_v49 }
 0x179   : > { %2027 = vst [vmem:[%s2934_s21 + $0x550] sm:$0xff] %v1515_v58  ;;  %v1521_v58 = vmul.f32 %v1009_v32, %v4074_v51  ;;  %v1014_v32 = vld [vmem:[%s2870_s28 + $0x5a8] sm:$0xff]  ;;  %v4128_v20 = vcvt.s32.f32 %v506_v7  ;;  %v1528_v7 = vmul.f32 %v1016_v33, %v4116_v62  ;;  %v4159_v33 = vld [vmem:[%s2860_s3 + $0x198] sm:$0xff] }
 0x17a   : > { %5777 = vst [vmem:[#allocation161_spill] sm:$0xff] %v4086_v53 }
 0x17b   : > { %2028 = vst [vmem:[%s2934_s21 + $0x558] sm:$0xff] %v1516_v14  ;;  %v1522_v14 = vmul.f32 %v1010_v37, %v4080_v40  ;;  %v1015_v37 = vld [vmem:[%s2870_s28 + $0x5b0] sm:$0xff] }
 0x17c   : > { %5778 = vst [vmem:[#allocation162_spill] sm:$0xff] %v4092_v54 }
 0x17d   : > { %2029 = vst [vmem:[%s2934_s21 + $0x560] sm:$0xff] %v1517_v45  ;;  %v1523_v45 = vmul.f32 %v1011_v16, %v4086_v53  ;;  %v4122_v16 = vcvt.s32.f32 %v505_v63  ;;  %v1527_v63 = vmul.f32 %v1015_v37, %v4110_v23  ;;  %v4150_v37 = vld [vmem:[%s2860_s3 + $0x190] sm:$0xff] }
 0x17e   : > { %5779 = vst [vmem:[#allocation163_spill] sm:$0xff] %v4098_v6 }
 0x17f   : > { %2030 = vst [vmem:[%s2934_s21 + $0x568] sm:$0xff] %v1518_v8  ;;  %v1524_v8 = vmul.f32 %v1012_v29, %v4092_v54  ;;  %v1017_v29 = vld [vmem:[%s2870_s28 + $0x5c0] sm:$0xff] }
 0x180   : > { %5780 = vst [vmem:[#allocation164_spill] sm:$0xff] %v4104_v11  ;;  %v1529_v49 = vmul.f32 %v1017_v29, %v4122_v16  ;;  %v4168_v29 = vld [vmem:[%s2860_s3 + $0x1a0] sm:$0xff] }
 0x181   : > { %2031 = vst [vmem:[%s2934_s21 + $0x570] sm:$0xff] %v1519_v4  ;;  %v1525_v4 = vmul.f32 %v1013_v22, %v4098_v6  ;;  %v1018_v22 = vld [vmem:[%s2870_s28 + $0x5c8] sm:$0xff] }
 0x182   : > { %5781 = vst [vmem:[#allocation165_spill] sm:$0xff] %v4110_v23  ;;  %v4155_v23 = vcvt.s32.f32 %v509_v47  ;;  %v1531_v47 = vmul.f32 %v1019_v21, %v4137_v5  ;;  %v4186_v21 = vld [vmem:[%s2860_s3 + $0x1b0] sm:$0xff] }
 0x183   : > { %2032 = vst [vmem:[%s2934_s21 + $0x578] sm:$0xff] %v1520_v18  ;;  %v1526_v18 = vmul.f32 %v1014_v32, %v4104_v11  ;;  %v4141_v32 = vld [vmem:[%s2860_s3 + $0x188] sm:$0xff]  ;;  %v4146_v11 = vcvt.s32.f32 %v508_v50  ;;  %v1530_v50 = vmul.f32 %v1018_v22, %v4128_v20  ;;  %v519_v51 = vunpack.c.0.s8 %v4186_v21 }
 0x184   : > { %5782 = vst [vmem:[#allocation166_spill] sm:$0xff] %v4116_v62  ;;  %v4164_v62 = vcvt.s32.f32 %v510_v1  ;;  %v4177_v22 = vld [vmem:[%s2860_s3 + $0x1a8] sm:$0xff] }
 0x185   : > { %2033 = vst [vmem:[%s2934_s21 + $0x580] sm:$0xff] %v1521_v58  ;;  %v4132_v58 = vld [vmem:[%s2860_s3 + $0x180] sm:$0xff] }
 0x186   : > { %5783 = vst [vmem:[#allocation167_spill] sm:$0xff] %v4122_v16  ;;  %v1022_v16 = vld [vmem:[%s2870_s28 + $0x5e8] sm:$0xff] }
 0x187   : > { %2034 = vst [vmem:[%s2934_s21 + $0x588] sm:$0xff] %v1522_v14  ;;  %v511_v14 = vunpack.c.3.s8 %v3970_v36  ;;  %v1020_v36 = vld [vmem:[%s2870_s28 + $0x5d8] sm:$0xff] }
 0x188   : > { %5784 = vst [vmem:[#allocation168_spill] sm:$0xff] %v4128_v20  ;;  %v1532_v1 = vmul.f32 %v1020_v36, %v4146_v11  ;;  %v1023_v20 = vld [vmem:[%s2870_s28 + $0x5f0] sm:$0xff]  ;;  %v4195_v36 = vld [vmem:[%s2860_s3 + $0x1b8] sm:$0xff] }
 0x189   : > { %2035 = vst [vmem:[%s2934_s21 + $0x590] sm:$0xff] %v1523_v45  ;;  %v512_v45 = vunpack.c.3.s8 %v3979_v25  ;;  %v1021_v25 = vld [vmem:[%s2870_s28 + $0x5e0] sm:$0xff]  ;;  %v4173_v6 = vcvt.s32.f32 %v511_v14 }
 0x18a   : > { %5785 = vst [vmem:[#allocation169_spill] sm:$0xff] %v4137_v5  ;;  %v1533_v14 = vmul.f32 %v1021_v25, %v4155_v23  ;;  %v1024_v5 = vld [vmem:[%s2870_s28 + $0x5f8] sm:$0xff] }
 0x18b   : > { %2036 = vst [vmem:[%s2934_s21 + $0x598] sm:$0xff] %v1524_v8  ;;  %v513_v8 = vunpack.c.0.s8 %v4132_v58  ;;  %v4182_v54 = vcvt.s32.f32 %v512_v45  ;;  %v1534_v45 = vmul.f32 %v1022_v16, %v4164_v62  ;;  %v1535_v25 = vmul.f32 %v1023_v20, %v4173_v6 }
 0x18c   : > { %5786 = vst [vmem:[#allocation170_spill] sm:$0xff] %v4146_v11  ;;  %v1025_v11 = vld [vmem:[%s2870_s28 + $0x600] sm:$0xff] }
 0x18d   : > { %2037 = vst [vmem:[%s2934_s21 + $0x5a0] sm:$0xff] %v1525_v4  ;;  %v514_v4 = vunpack.c.0.s8 %v4141_v32  ;;  %v4191_v53 = vcvt.s32.f32 %v513_v8  ;;  %v1026_v8 = vld [vmem:[%s2870_s28 + $0x608] sm:$0xff]  ;;  %v1536_v16 = vmul.f32 %v1024_v5, %v4182_v54 }
 0x18e   : > { %5787 = vst [vmem:[#allocation171_spill] sm:$0xff] %v4155_v23 }
 0x18f   : > { %2038 = vst [vmem:[%s2934_s21 + $0x5a8] sm:$0xff] %v1526_v18  ;;  %v515_v18 = vunpack.c.0.s8 %v4150_v37  ;;  %v4200_v40 = vcvt.s32.f32 %v514_v4  ;;  %v1537_v20 = vmul.f32 %v1025_v11, %v4191_v53 }
 0x190   : > { %5788 = vst [vmem:[#allocation172_spill] sm:$0xff] %v4164_v62  ;;  %v520_v62 = vunpack.c.0.s8 %v4195_v36 }
 0x191   : > { %2039 = vst [vmem:[%s2934_s21 + $0x5b0] sm:$0xff] %v1527_v63  ;;  %v516_v63 = vunpack.c.0.s8 %v4159_v33  ;;  %v4206_v23 = vcvt.s32.f32 %v515_v18  ;;  %v1538_v5 = vmul.f32 %v1026_v8, %v4200_v40  ;;  %v1031_v8 = vld [vmem:[%s2870_s28 + $0x630] sm:$0xff] }
 0x192   : > { %5789 = vst [vmem:[#allocation173_spill] sm:$0xff] %v4173_v6  ;;  %v521_v6 = vunpack.c.1.s8 %v4132_v58 }
 0x193   : > { %2040 = vst [vmem:[%s2934_s21 + $0x5b8] sm:$0xff] %v1528_v7  ;;  %v517_v7 = vunpack.c.0.s8 %v4168_v29  ;;  %v4212_v4 = vcvt.s32.f32 %v516_v63 }
 0x194   : > { %5790 = vst [vmem:[#allocation174_spill] sm:$0xff] %v4182_v54  ;;  %v522_v54 = vunpack.c.1.s8 %v4141_v32 }
 0x195   : > { %2041 = vst [vmem:[%s2934_s21 + $0x5c0] sm:$0xff] %v1529_v49  ;;  %v518_v49 = vunpack.c.0.s8 %v4177_v22  ;;  %v4218_v18 = vcvt.s32.f32 %v517_v7  ;;  %v4230_v7 = vcvt.s32.f32 %v519_v51  ;;  %v4242_v51 = vcvt.s32.f32 %v521_v6 }
 0x196   : > { %5791 = vst [vmem:[#allocation175_spill] sm:$0xff] %v4191_v53  ;;  %v523_v53 = vunpack.c.1.s8 %v4150_v37 }
 0x197   : > { %2042 = vst [vmem:[%s2934_s21 + $0x5c8] sm:$0xff] %v1530_v50  ;;  %v1027_v50 = vld [vmem:[%s2870_s28 + $0x610] sm:$0xff]  ;;  %v4224_v63 = vcvt.s32.f32 %v518_v49  ;;  %v4236_v49 = vcvt.s32.f32 %v520_v62  ;;  %v4248_v62 = vcvt.s32.f32 %v522_v54 }
 0x198   : > { %5792 = vst [vmem:[#allocation176_spill] sm:$0xff] %v4200_v40  ;;  %v1539_v11 = vmul.f32 %v1027_v50, %v4206_v23  ;;  %v524_v40 = vunpack.c.1.s8 %v4159_v33  ;;  %v1032_v50 = vld [vmem:[%s2870_s28 + $0x638] sm:$0xff]  ;;  %v4254_v6 = vcvt.s32.f32 %v523_v53 }
 0x199   : > { %2043 = vst [vmem:[%s2934_s21 + $0x5d0] sm:$0xff] %v1531_v47  ;;  %v1028_v47 = vld [vmem:[%s2870_s28 + $0x618] sm:$0xff] }
 0x19a   : > { %5793 = vst [vmem:[#allocation177_spill] sm:$0xff] %v4206_v23  ;;  %v525_v23 = vunpack.c.1.s8 %v4168_v29  ;;  %v4260_v54 = vcvt.s32.f32 %v524_v40 }
 0x19b   : > { %2044 = vst [vmem:[%s2934_s21 + $0x5d8] sm:$0xff] %v1532_v1  ;;  %v1029_v1 = vld [vmem:[%s2870_s28 + $0x620] sm:$0xff] }
 0x19c   : > { %5794 = vst [vmem:[#allocation178_spill] sm:$0xff] %v4212_v4  ;;  %v4266_v53 = vcvt.s32.f32 %v525_v23 }
 0x19d   : > { %2045 = vst [vmem:[%s2934_s21 + $0x5e0] sm:$0xff] %v1533_v14  ;;  %v1030_v14 = vld [vmem:[%s2870_s28 + $0x628] sm:$0xff] }
 0x19e   : > { %5795 = vst [vmem:[#allocation179_spill] sm:$0xff] %v4218_v18 }
 0x19f   : > { %2046 = vst [vmem:[%s2934_s21 + $0x5e8] sm:$0xff] %v1534_v45  ;;  %v1540_v45 = vmul.f32 %v1028_v47, %v4212_v4  ;;  %v1033_v47 = vld [vmem:[%s2870_s28 + $0x640] sm:$0xff]  ;;  %v526_v4 = vunpack.c.1.s8 %v4177_v22 }
 0x1a0   : > { %5796 = vst [vmem:[#allocation180_spill] sm:$0xff] %v4224_v63 }
 0x1a1   : > { %2047 = vst [vmem:[%s2934_s21 + $0x5f0] sm:$0xff] %v1535_v25  ;;  %v1541_v25 = vmul.f32 %v1029_v1, %v4218_v18  ;;  %v1034_v1 = vld [vmem:[%s2870_s28 + $0x648] sm:$0xff]  ;;  %v527_v18 = vunpack.c.1.s8 %v4186_v21  ;;  %v4272_v40 = vcvt.s32.f32 %v526_v4 }
 0x1a2   : > { %5797 = vst [vmem:[#allocation181_spill] sm:$0xff] %v4230_v7 }
 0x1a3   : > { %2048 = vst [vmem:[%s2934_s21 + $0x5f8] sm:$0xff] %v1536_v16  ;;  %v1542_v16 = vmul.f32 %v1030_v14, %v4224_v63  ;;  %v1035_v14 = vld [vmem:[%s2870_s28 + $0x650] sm:$0xff]  ;;  %v528_v63 = vunpack.c.1.s8 %v4195_v36  ;;  %v4278_v23 = vcvt.s32.f32 %v527_v18 }
 0x1a4   : > { %5798 = vst [vmem:[#allocation182_spill] sm:$0xff] %v4236_v49 }
 0x1a5   : > { %2049 = vst [vmem:[%s2934_s21 + $0x600] sm:$0xff] %v1537_v20  ;;  %v1543_v20 = vmul.f32 %v1031_v8, %v4230_v7  ;;  %v1036_v8 = vld [vmem:[%s2870_s28 + $0x658] sm:$0xff]  ;;  %v529_v7 = vunpack.c.2.s8 %v4132_v58  ;;  %v4284_v4 = vcvt.s32.f32 %v528_v63 }
 0x1a6   : > { %5799 = vst [vmem:[#allocation183_spill] sm:$0xff] %v4242_v51 }
 0x1a7   : > { %2050 = vst [vmem:[%s2934_s21 + $0x608] sm:$0xff] %v1538_v5  ;;  %v1544_v5 = vmul.f32 %v1032_v50, %v4236_v49  ;;  %v1037_v50 = vld [vmem:[%s2870_s28 + $0x660] sm:$0xff]  ;;  %v530_v49 = vunpack.c.2.s8 %v4141_v32  ;;  %v4290_v18 = vcvt.s32.f32 %v529_v7 }
 0x1a8   : > { %5800 = vst [vmem:[#allocation184_spill] sm:$0xff] %v4248_v62 }
 0x1a9   : > { %2051 = vst [vmem:[%s2934_s21 + $0x610] sm:$0xff] %v1539_v11  ;;  %v1545_v11 = vmul.f32 %v1033_v47, %v4242_v51  ;;  %v1038_v47 = vld [vmem:[%s2870_s28 + $0x668] sm:$0xff]  ;;  %v531_v51 = vunpack.c.2.s8 %v4150_v37  ;;  %v4296_v63 = vcvt.s32.f32 %v530_v49 }
 0x1aa   : > { %5801 = vst [vmem:[#allocation185_spill] sm:$0xff] %v4254_v6 }
 0x1ab   : > { %2052 = vst [vmem:[%s2934_s21 + $0x618] sm:$0xff] %v1540_v45  ;;  %v1546_v45 = vmul.f32 %v1034_v1, %v4248_v62  ;;  %v1039_v1 = vld [vmem:[%s2870_s28 + $0x670] sm:$0xff]  ;;  %v532_v62 = vunpack.c.2.s8 %v4159_v33  ;;  %v4302_v7 = vcvt.s32.f32 %v531_v51 }
 0x1ac   : > { %5802 = vst [vmem:[#allocation186_spill] sm:$0xff] %v4260_v54 }
 0x1ad   : > { %2053 = vst [vmem:[%s2934_s21 + $0x620] sm:$0xff] %v1541_v25  ;;  %v1547_v25 = vmul.f32 %v1035_v14, %v4254_v6  ;;  %v1040_v14 = vld [vmem:[%s2870_s28 + $0x678] sm:$0xff]  ;;  %v533_v6 = vunpack.c.2.s8 %v4168_v29  ;;  %v4308_v49 = vcvt.s32.f32 %v532_v62 }
 0x1ae   : > { %5803 = vst [vmem:[#allocation187_spill] sm:$0xff] %v4266_v53 }
 0x1af   : > { %2054 = vst [vmem:[%s2934_s21 + $0x628] sm:$0xff] %v1542_v16  ;;  %v1548_v16 = vmul.f32 %v1036_v8, %v4260_v54  ;;  %v1041_v8 = vld [vmem:[%s2870_s28 + $0x680] sm:$0xff]  ;;  %v534_v54 = vunpack.c.2.s8 %v4177_v22  ;;  %v4314_v51 = vcvt.s32.f32 %v533_v6 }
 0x1b0   : > { %5804 = vst [vmem:[#allocation188_spill] sm:$0xff] %v4272_v40 }
 0x1b1   : > { %2055 = vst [vmem:[%s2934_s21 + $0x630] sm:$0xff] %v1543_v20  ;;  %v1549_v20 = vmul.f32 %v1037_v50, %v4266_v53  ;;  %v1042_v50 = vld [vmem:[%s2870_s28 + $0x688] sm:$0xff]  ;;  %v535_v53 = vunpack.c.2.s8 %v4186_v21  ;;  %v4320_v62 = vcvt.s32.f32 %v534_v54 }
 0x1b2   : > { %5805 = vst [vmem:[#allocation189_spill] sm:$0xff] %v4278_v23 }
 0x1b3   : > { %2056 = vst [vmem:[%s2934_s21 + $0x638] sm:$0xff] %v1544_v5  ;;  %v1550_v5 = vmul.f32 %v1038_v47, %v4272_v40  ;;  %v1043_v47 = vld [vmem:[%s2870_s28 + $0x690] sm:$0xff]  ;;  %v536_v40 = vunpack.c.2.s8 %v4195_v36  ;;  %v4326_v6 = vcvt.s32.f32 %v535_v53  ;;  %v1048_v53 = vld [vmem:[%s2870_s28 + $0x6b8] sm:$0xff] }
 0x1b4   : > { %5806 = vst [vmem:[#allocation190_spill] sm:$0xff] %v4284_v4 }
 0x1b5   : > { %2057 = vst [vmem:[%s2934_s21 + $0x640] sm:$0xff] %v1545_v11  ;;  %v1551_v11 = vmul.f32 %v1039_v1, %v4278_v23  ;;  %v1044_v1 = vld [vmem:[%s2870_s28 + $0x698] sm:$0xff]  ;;  %v537_v23 = vunpack.c.3.s8 %v4132_v58  ;;  %v539_v58 = vunpack.c.3.s8 %v4150_v37  ;;  %v4332_v54 = vcvt.s32.f32 %v536_v40 }
 0x1b6   : > { %5807 = vst [vmem:[#allocation191_spill] sm:$0xff] %v4290_v18  ;;  %v541_v37 = vunpack.c.3.s8 %v4168_v29 }
 0x1b7   : > { %2058 = vst [vmem:[%s2934_s21 + $0x648] sm:$0xff] %v1546_v45  ;;  %v1552_v45 = vmul.f32 %v1040_v14, %v4284_v4  ;;  %v1045_v14 = vld [vmem:[%s2870_s28 + $0x6a0] sm:$0xff]  ;;  %v538_v4 = vunpack.c.3.s8 %v4141_v32  ;;  %v540_v32 = vunpack.c.3.s8 %v4159_v33  ;;  %v542_v33 = vunpack.c.3.s8 %v4177_v22  ;;  %v1051_v22 = vld [vmem:[%s2870_s28 + $0x6d0] sm:$0xff] }
 0x1b8   : > { %5808 = vst [vmem:[#allocation192_spill] sm:$0xff] %v4296_v63  ;;  %v4353_v29 = vcvt.s32.f32 %v539_v58 }
 0x1b9   : > { %2059 = vst [vmem:[%s2934_s21 + $0x650] sm:$0xff] %v1547_v25  ;;  %v1553_v25 = vmul.f32 %v1041_v8, %v4290_v18  ;;  %v1046_v8 = vld [vmem:[%s2870_s28 + $0x6a8] sm:$0xff]  ;;  %v4344_v40 = vcvt.s32.f32 %v538_v4  ;;  %v1560_v4 = vmul.f32 %v1048_v53, %v4332_v54  ;;  %v4375_v53 = vld [vmem:[%s2860_s3 + $0x1d8] sm:$0xff] }
 0x1ba   : > { %5809 = vst [vmem:[#allocation193_spill] sm:$0xff] %v4302_v7 }
 0x1bb   : > { %2060 = vst [vmem:[%s2934_s21 + $0x658] sm:$0xff] %v1548_v16  ;;  %v1554_v16 = vmul.f32 %v1042_v50, %v4296_v63  ;;  %v1047_v50 = vld [vmem:[%s2870_s28 + $0x6b0] sm:$0xff] }
 0x1bc   : > { %5810 = vst [vmem:[#allocation194_spill] sm:$0xff] %v4308_v49 }
 0x1bd   : > { %2061 = vst [vmem:[%s2934_s21 + $0x660] sm:$0xff] %v1549_v20  ;;  %v1555_v20 = vmul.f32 %v1043_v47, %v4302_v7  ;;  %v4338_v47 = vcvt.s32.f32 %v537_v23  ;;  %v1559_v23 = vmul.f32 %v1047_v50, %v4326_v6  ;;  %v4366_v50 = vld [vmem:[%s2860_s3 + $0x1d0] sm:$0xff] }
 0x1be   : > { %5811 = vst [vmem:[#allocation195_spill] sm:$0xff] %v4314_v51 }
 0x1bf   : > { %2062 = vst [vmem:[%s2934_s21 + $0x668] sm:$0xff] %v1550_v5  ;;  %v1556_v5 = vmul.f32 %v1044_v1, %v4308_v49  ;;  %v1049_v1 = vld [vmem:[%s2870_s28 + $0x6c0] sm:$0xff] }
 0x1c0   : > { %5812 = vst [vmem:[#allocation196_spill] sm:$0xff] %v4320_v62  ;;  %v1561_v58 = vmul.f32 %v1049_v1, %v4338_v47  ;;  %v4384_v1 = vld [vmem:[%s2860_s3 + $0x1e0] sm:$0xff] }
 0x1c1   : > { %2063 = vst [vmem:[%s2934_s21 + $0x670] sm:$0xff] %v1551_v11  ;;  %v1557_v11 = vmul.f32 %v1045_v14, %v4314_v51  ;;  %v1050_v14 = vld [vmem:[%s2870_s28 + $0x6c8] sm:$0xff] }
 0x1c2   : > { %5813 = vst [vmem:[#allocation197_spill] sm:$0xff] %v4326_v6  ;;  %v4371_v6 = vcvt.s32.f32 %v541_v37  ;;  %v1563_v37 = vmul.f32 %v1051_v22, %v4353_v29  ;;  %v4402_v22 = vld [vmem:[%s2860_s3 + $0x1f0] sm:$0xff] }
 0x1c3   : > { %2064 = vst [vmem:[%s2934_s21 + $0x678] sm:$0xff] %v1552_v45  ;;  %v1558_v45 = vmul.f32 %v1046_v8, %v4320_v62  ;;  %v4357_v8 = vld [vmem:[%s2860_s3 + $0x1c8] sm:$0xff]  ;;  %v4362_v62 = vcvt.s32.f32 %v540_v32  ;;  %v1562_v32 = vmul.f32 %v1050_v14, %v4344_v40  ;;  %v551_v18 = vunpack.c.0.s8 %v4402_v22 }
 0x1c4   : > { %5814 = vst [vmem:[#allocation198_spill] sm:$0xff] %v4332_v54  ;;  %v4380_v54 = vcvt.s32.f32 %v542_v33  ;;  %v4393_v14 = vld [vmem:[%s2860_s3 + $0x1e8] sm:$0xff] }
 0x1c5   : > { %2065 = vst [vmem:[%s2934_s21 + $0x680] sm:$0xff] %v1553_v25  ;;  %v4348_v25 = vld [vmem:[%s2860_s3 + $0x1c0] sm:$0xff] }
 0x1c6   : > { %5815 = vst [vmem:[#allocation199_spill] sm:$0xff] %v4338_v47  ;;  %v1054_v47 = vld [vmem:[%s2870_s28 + $0x6e8] sm:$0xff] }
 0x1c7   : > { %2066 = vst [vmem:[%s2934_s21 + $0x688] sm:$0xff] %v1554_v16  ;;  %v543_v16 = vunpack.c.3.s8 %v4186_v21  ;;  %v1052_v21 = vld [vmem:[%s2870_s28 + $0x6d8] sm:$0xff] }
 0x1c8   : > { %5816 = vst [vmem:[#allocation200_spill] sm:$0xff] %v4344_v40  ;;  %v1564_v33 = vmul.f32 %v1052_v21, %v4362_v62  ;;  %v1055_v40 = vld [vmem:[%s2870_s28 + $0x6f0] sm:$0xff]  ;;  %v4411_v21 = vld [vmem:[%s2860_s3 + $0x1f8] sm:$0xff] }
 0x1c9   : > { %2067 = vst [vmem:[%s2934_s21 + $0x690] sm:$0xff] %v1555_v20  ;;  %v544_v20 = vunpack.c.3.s8 %v4195_v36  ;;  %v1053_v36 = vld [vmem:[%s2870_s28 + $0x6e0] sm:$0xff]  ;;  %v4389_v51 = vcvt.s32.f32 %v543_v16 }
 0x1ca   : > { %5817 = vst [vmem:[#allocation201_spill] sm:$0xff] %v4353_v29  ;;  %v1565_v16 = vmul.f32 %v1053_v36, %v4371_v6  ;;  %v1056_v29 = vld [vmem:[%s2870_s28 + $0x6f8] sm:$0xff] }
 0x1cb   : > { %2068 = vst [vmem:[%s2934_s21 + $0x698] sm:$0xff] %v1556_v5  ;;  %v545_v5 = vunpack.c.0.s8 %v4348_v25  ;;  %v4398_v49 = vcvt.s32.f32 %v544_v20  ;;  %v1566_v20 = vmul.f32 %v1054_v47, %v4380_v54  ;;  %v1567_v36 = vmul.f32 %v1055_v40, %v4389_v51 }
 0x1cc   : > { %5818 = vst [vmem:[#allocation202_spill] sm:$0xff] %v4362_v62  ;;  %v1057_v62 = vld [vmem:[%s2870_s28 + $0x700] sm:$0xff] }
 0x1cd   : > { %2069 = vst [vmem:[%s2934_s21 + $0x6a0] sm:$0xff] %v1557_v11  ;;  %v546_v11 = vunpack.c.0.s8 %v4357_v8  ;;  %v4407_v7 = vcvt.s32.f32 %v545_v5  ;;  %v1058_v5 = vld [vmem:[%s2870_s28 + $0x708] sm:$0xff]  ;;  %v1568_v47 = vmul.f32 %v1056_v29, %v4398_v49 }
 0x1ce   : > { %5819 = vst [vmem:[#allocation203_spill] sm:$0xff] %v4371_v6 }
 0x1cf   : > { %2070 = vst [vmem:[%s2934_s21 + $0x6a8] sm:$0xff] %v1558_v45  ;;  %v547_v45 = vunpack.c.0.s8 %v4366_v50  ;;  %v4416_v63 = vcvt.s32.f32 %v546_v11  ;;  %v1569_v40 = vmul.f32 %v1057_v62, %v4407_v7 }
 0x1d0   : > { %5820 = vst [vmem:[#allocation204_spill] sm:$0xff] %v4380_v54  ;;  %v552_v54 = vunpack.c.0.s8 %v4411_v21 }
 0x1d1   : > { %2071 = vst [vmem:[%s2934_s21 + $0x6b0] sm:$0xff] %v1559_v23  ;;  %v548_v23 = vunpack.c.0.s8 %v4375_v53  ;;  %v4422_v6 = vcvt.s32.f32 %v547_v45  ;;  %v1570_v29 = vmul.f32 %v1058_v5, %v4416_v63  ;;  %v1063_v5 = vld [vmem:[%s2870_s28 + $0x730] sm:$0xff] }
 0x1d2   : > { %5821 = vst [vmem:[#allocation205_spill] sm:$0xff] %v4389_v51  ;;  %v553_v51 = vunpack.c.1.s8 %v4348_v25 }
 0x1d3   : > { %2072 = vst [vmem:[%s2934_s21 + $0x6b8] sm:$0xff] %v1560_v4  ;;  %v549_v4 = vunpack.c.0.s8 %v4384_v1  ;;  %v4428_v11 = vcvt.s32.f32 %v548_v23 }
 0x1d4   : > { %5822 = vst [vmem:[#allocation206_spill] sm:$0xff] %v4398_v49  ;;  %v554_v49 = vunpack.c.1.s8 %v4357_v8 }
 0x1d5   : > { %2073 = vst [vmem:[%s2934_s21 + $0x6c0] sm:$0xff] %v1561_v58  ;;  %v550_v58 = vunpack.c.0.s8 %v4393_v14  ;;  %v4434_v45 = vcvt.s32.f32 %v549_v4  ;;  %v4446_v4 = vcvt.s32.f32 %v551_v18  ;;  %v4458_v18 = vcvt.s32.f32 %v553_v51 }
 0x1d6   : > { %5823 = vst [vmem:[#allocation207_spill] sm:$0xff] %v4407_v7  ;;  %v555_v7 = vunpack.c.1.s8 %v4366_v50 }
 0x1d7   : > { %2074 = vst [vmem:[%s2934_s21 + $0x6c8] sm:$0xff] %v1562_v32  ;;  %v1059_v32 = vld [vmem:[%s2870_s28 + $0x710] sm:$0xff]  ;;  %v4440_v23 = vcvt.s32.f32 %v550_v58  ;;  %v4452_v58 = vcvt.s32.f32 %v552_v54  ;;  %v4464_v54 = vcvt.s32.f32 %v554_v49 }
 0x1d8   : > { %5824 = vst [vmem:[#allocation208_spill] sm:$0xff] %v4416_v63  ;;  %v1571_v62 = vmul.f32 %v1059_v32, %v4422_v6  ;;  %v556_v63 = vunpack.c.1.s8 %v4375_v53  ;;  %v1064_v32 = vld [vmem:[%s2870_s28 + $0x738] sm:$0xff]  ;;  %v4470_v51 = vcvt.s32.f32 %v555_v7 }
 0x1d9   : > { %2075 = vst [vmem:[%s2934_s21 + $0x6d0] sm:$0xff] %v1563_v37  ;;  %v1060_v37 = vld [vmem:[%s2870_s28 + $0x718] sm:$0xff] }
 0x1da   : > { %5825 = vst [vmem:[#allocation209_spill] sm:$0xff] %v4422_v6  ;;  %v557_v6 = vunpack.c.1.s8 %v4384_v1  ;;  %v4476_v49 = vcvt.s32.f32 %v556_v63 }
 0x1db   : > { %2076 = vst [vmem:[%s2934_s21 + $0x6d8] sm:$0xff] %v1564_v33  ;;  %v1061_v33 = vld [vmem:[%s2870_s28 + $0x720] sm:$0xff] }
 0x1dc   : > { %5826 = vst [vmem:[#allocation210_spill] sm:$0xff] %v4428_v11  ;;  %v4482_v7 = vcvt.s32.f32 %v557_v6 }
 0x1dd   : > { %2077 = vst [vmem:[%s2934_s21 + $0x6e0] sm:$0xff] %v1565_v16  ;;  %v1062_v16 = vld [vmem:[%s2870_s28 + $0x728] sm:$0xff] }
 0x1de   : > { %5827 = vst [vmem:[#allocation211_spill] sm:$0xff] %v4434_v45 }
 0x1df   : > { %2078 = vst [vmem:[%s2934_s21 + $0x6e8] sm:$0xff] %v1566_v20  ;;  %v1572_v20 = vmul.f32 %v1060_v37, %v4428_v11  ;;  %v1065_v37 = vld [vmem:[%s2870_s28 + $0x740] sm:$0xff]  ;;  %v558_v11 = vunpack.c.1.s8 %v4393_v14 }
 0x1e0   : > { %5828 = vst [vmem:[#allocation212_spill] sm:$0xff] %v4440_v23 }
 0x1e1   : > { %2079 = vst [vmem:[%s2934_s21 + $0x6f0] sm:$0xff] %v1567_v36  ;;  %v1573_v36 = vmul.f32 %v1061_v33, %v4434_v45  ;;  %v1066_v33 = vld [vmem:[%s2870_s28 + $0x748] sm:$0xff]  ;;  %v559_v45 = vunpack.c.1.s8 %v4402_v22  ;;  %v4488_v63 = vcvt.s32.f32 %v558_v11 }
 0x1e2   : > { %5829 = vst [vmem:[#allocation213_spill] sm:$0xff] %v4446_v4 }
 0x1e3   : > { %2080 = vst [vmem:[%s2934_s21 + $0x6f8] sm:$0xff] %v1568_v47  ;;  %v1574_v47 = vmul.f32 %v1062_v16, %v4440_v23  ;;  %v1067_v16 = vld [vmem:[%s2870_s28 + $0x750] sm:$0xff]  ;;  %v560_v23 = vunpack.c.1.s8 %v4411_v21  ;;  %v4494_v6 = vcvt.s32.f32 %v559_v45 }
 0x1e4   : > { %5830 = vst [vmem:[#allocation214_spill] sm:$0xff] %v4452_v58 }
 0x1e5   : > { %2081 = vst [vmem:[%s2934_s21 + $0x700] sm:$0xff] %v1569_v40  ;;  %v1575_v40 = vmul.f32 %v1063_v5, %v4446_v4  ;;  %v1068_v5 = vld [vmem:[%s2870_s28 + $0x758] sm:$0xff]  ;;  %v561_v4 = vunpack.c.2.s8 %v4348_v25  ;;  %v4500_v11 = vcvt.s32.f32 %v560_v23 }
 0x1e6   : > { %5831 = vst [vmem:[#allocation215_spill] sm:$0xff] %v4458_v18 }
 0x1e7   : > { %2082 = vst [vmem:[%s2934_s21 + $0x708] sm:$0xff] %v1570_v29  ;;  %v1576_v29 = vmul.f32 %v1064_v32, %v4452_v58  ;;  %v1069_v32 = vld [vmem:[%s2870_s28 + $0x760] sm:$0xff]  ;;  %v562_v58 = vunpack.c.2.s8 %v4357_v8  ;;  %v4506_v45 = vcvt.s32.f32 %v561_v4 }
 0x1e8   : > { %5832 = vst [vmem:[#allocation216_spill] sm:$0xff] %v4464_v54 }
 0x1e9   : > { %2083 = vst [vmem:[%s2934_s21 + $0x710] sm:$0xff] %v1571_v62  ;;  %v1577_v62 = vmul.f32 %v1065_v37, %v4458_v18  ;;  %v1070_v37 = vld [vmem:[%s2870_s28 + $0x768] sm:$0xff]  ;;  %v563_v18 = vunpack.c.2.s8 %v4366_v50  ;;  %v4512_v23 = vcvt.s32.f32 %v562_v58 }
 0x1ea   : > { %5833 = vst [vmem:[#allocation217_spill] sm:$0xff] %v4470_v51 }
 0x1eb   : > { %2084 = vst [vmem:[%s2934_s21 + $0x718] sm:$0xff] %v1572_v20  ;;  %v1578_v20 = vmul.f32 %v1066_v33, %v4464_v54  ;;  %v1071_v33 = vld [vmem:[%s2870_s28 + $0x770] sm:$0xff]  ;;  %v564_v54 = vunpack.c.2.s8 %v4375_v53  ;;  %v4518_v4 = vcvt.s32.f32 %v563_v18 }
 0x1ec   : > { %5834 = vst [vmem:[#allocation218_spill] sm:$0xff] %v4476_v49 }
 0x1ed   : > { %2085 = vst [vmem:[%s2934_s21 + $0x720] sm:$0xff] %v1573_v36  ;;  %v1579_v36 = vmul.f32 %v1067_v16, %v4470_v51  ;;  %v1072_v16 = vld [vmem:[%s2870_s28 + $0x778] sm:$0xff]  ;;  %v565_v51 = vunpack.c.2.s8 %v4384_v1  ;;  %v4524_v58 = vcvt.s32.f32 %v564_v54 }
 0x1ee   : > { %5835 = vst [vmem:[#allocation219_spill] sm:$0xff] %v4482_v7 }
 0x1ef   : > { %2086 = vst [vmem:[%s2934_s21 + $0x728] sm:$0xff] %v1574_v47  ;;  %v1580_v47 = vmul.f32 %v1068_v5, %v4476_v49  ;;  %v1073_v5 = vld [vmem:[%s2870_s28 + $0x780] sm:$0xff]  ;;  %v566_v49 = vunpack.c.2.s8 %v4393_v14  ;;  %v4530_v18 = vcvt.s32.f32 %v565_v51 }
 0x1f0   : > { %5836 = vst [vmem:[#allocation220_spill] sm:$0xff] %v4488_v63 }
 0x1f1   : > { %2087 = vst [vmem:[%s2934_s21 + $0x730] sm:$0xff] %v1575_v40  ;;  %v1581_v40 = vmul.f32 %v1069_v32, %v4482_v7  ;;  %v1074_v32 = vld [vmem:[%s2870_s28 + $0x788] sm:$0xff]  ;;  %v567_v7 = vunpack.c.2.s8 %v4402_v22  ;;  %v4536_v54 = vcvt.s32.f32 %v566_v49 }
 0x1f2   : > { %5837 = vst [vmem:[#allocation221_spill] sm:$0xff] %v4494_v6 }
 0x1f3   : > { %2088 = vst [vmem:[%s2934_s21 + $0x738] sm:$0xff] %v1576_v29  ;;  %v1582_v29 = vmul.f32 %v1070_v37, %v4488_v63  ;;  %v1075_v37 = vld [vmem:[%s2870_s28 + $0x790] sm:$0xff]  ;;  %v568_v63 = vunpack.c.2.s8 %v4411_v21  ;;  %v4542_v51 = vcvt.s32.f32 %v567_v7 }
 0x1f4   : > { %5838 = vst [vmem:[#allocation222_spill] sm:$0xff] %v4500_v11 }
 0x1f5   : > { %2089 = vst [vmem:[%s2934_s21 + $0x740] sm:$0xff] %v1577_v62  ;;  %v1583_v62 = vmul.f32 %v1071_v33, %v4494_v6  ;;  %v1076_v33 = vld [vmem:[%s2870_s28 + $0x798] sm:$0xff]  ;;  %v569_v6 = vunpack.c.3.s8 %v4348_v25  ;;  %v571_v25 = vunpack.c.3.s8 %v4366_v50  ;;  %v4548_v49 = vcvt.s32.f32 %v568_v63 }
 0x1f6   : > { %2090 = vst [vmem:[%s2934_s21 + $0x748] sm:$0xff] %v1578_v20  ;;  %v1584_v20 = vmul.f32 %v1072_v16, %v4500_v11  ;;  %v1077_v16 = vld [vmem:[%s2870_s28 + $0x7a0] sm:$0xff]  ;;  %v570_v11 = vunpack.c.3.s8 %v4357_v8  ;;  %v572_v8 = vunpack.c.3.s8 %v4375_v53  ;;  %v573_v50 = vunpack.c.3.s8 %v4384_v1 }
 0x1f7   : > { %2091 = vst [vmem:[%s2934_s21 + $0x750] sm:$0xff] %v1579_v36  ;;  %v1585_v36 = vmul.f32 %v1073_v5, %v4506_v45  ;;  %v1078_v5 = vld [vmem:[%s2870_s28 + $0x7a8] sm:$0xff]  ;;  %v4554_v7 = vcvt.s32.f32 %v569_v6  ;;  %v574_v53 = vunpack.c.3.s8 %v4393_v14  ;;  %v4566_v6 = vcvt.s32.f32 %v571_v25 }
 0x1f8   : > { %2092 = vst [vmem:[%s2934_s21 + $0x758] sm:$0xff] %v1580_v47  ;;  %v1586_v47 = vmul.f32 %v1074_v32, %v4512_v23  ;;  %v1079_v32 = vld [vmem:[%s2870_s28 + $0x7b0] sm:$0xff]  ;;  %v4560_v63 = vcvt.s32.f32 %v570_v11  ;;  %v575_v1 = vunpack.c.3.s8 %v4402_v22  ;;  %v576_v14 = vunpack.c.3.s8 %v4411_v21 }
 0x1f9   : > { %2093 = vst [vmem:[%s2934_s21 + $0x760] sm:$0xff] %v1581_v40  ;;  %v1587_v40 = vmul.f32 %v1075_v37, %v4518_v4  ;;  %v1080_v37 = vld [vmem:[%s2870_s28 + $0x7b8] sm:$0xff]  ;;  %v1083_v11 = vld [vmem:[%s2870_s28 + $0x7d0] sm:$0xff]  ;;  %v4578_v25 = vcvt.s32.f32 %v573_v50 }
 0x1fa   : > { %2094 = vst [vmem:[%s2934_s21 + $0x768] sm:$0xff] %v1582_v29  ;;  %v1588_v29 = vmul.f32 %v1076_v33, %v4524_v58  ;;  %v1081_v33 = vld [vmem:[%s2870_s28 + $0x7c0] sm:$0xff]  ;;  %v1595_v21 = vmul.f32 %v1083_v11, %v4566_v6  ;;  %v1090_v11 = vld [vmem:[%s2870_s28 + $0x808] sm:$0xff] }
 0x1fb   : > { %2095 = vst [vmem:[%s2934_s21 + $0x770] sm:$0xff] %v1583_v62  ;;  %v1589_v62 = vmul.f32 %v1077_v16, %v4530_v18  ;;  %v1082_v16 = vld [vmem:[%s2870_s28 + $0x7c8] sm:$0xff] }
 0x1fc   : > { %2096 = vst [vmem:[%s2934_s21 + $0x778] sm:$0xff] %v1584_v20  ;;  %v1590_v20 = vmul.f32 %v1078_v5, %v4536_v54  ;;  %v4572_v5 = vcvt.s32.f32 %v572_v8  ;;  %v1594_v22 = vmul.f32 %v1082_v16, %v4560_v63  ;;  %v4583_v8 = vcvt.s32.f32 %v574_v53 }
 0x1fd   : > { %2097 = vst [vmem:[%s2934_s21 + $0x780] sm:$0xff] %v1585_v36  ;;  %v1591_v36 = vmul.f32 %v1079_v32, %v4542_v51  ;;  %v1084_v32 = vld [vmem:[%s2870_s28 + $0x7d8] sm:$0xff] }
 0x1fe   : > { %2098 = vst [vmem:[%s2934_s21 + $0x788] sm:$0xff] %v1586_v47  ;;  %v1592_v47 = vmul.f32 %v1080_v37, %v4548_v49  ;;  %v4588_v37 = vcvt.s32.f32 %v575_v1  ;;  %v1596_v50 = vmul.f32 %v1084_v32, %v4572_v5  ;;  %v1089_v1 = vld [vmem:[%s2870_s28 + $0x800] sm:$0xff] }
 0x1ff   : > { %2099 = vst [vmem:[%s2934_s21 + $0x790] sm:$0xff] %v1587_v40  ;;  %v1593_v40 = vmul.f32 %v1081_v33, %v4554_v7  ;;  %v4593_v33 = vcvt.s32.f32 %v576_v14  ;;  %v1601_v32 = vmul.f32 %v1089_v1, %v2898_v12  ;;  %v1095_v12 = vld [vmem:[%s2870_s28 + $0x830] sm:$0xff] }
 0x200   : > { %2100 = vst [vmem:[%s2934_s21 + $0x798] sm:$0xff] %v1588_v29  ;;  %v1085_v29 = vld [vmem:[%s2870_s28 + $0x7e0] sm:$0xff] }
 0x201   : > { %2101 = vst [vmem:[%s2934_s21 + $0x7a0] sm:$0xff] %v1589_v62  ;;  %v1086_v62 = vld [vmem:[%s2870_s28 + $0x7e8] sm:$0xff]  ;;  %v1597_v53 = vmul.f32 %v1085_v29, %v4578_v25  ;;  %v1602_v29 = vmul.f32 %v1090_v11, %v2900_v13  ;;  %v1096_v13 = vld [vmem:[%s2870_s28 + $0x838] sm:$0xff] }
 0x202   : > { %2102 = vst [vmem:[%s2934_s21 + $0x7a8] sm:$0xff] %v1590_v20  ;;  %v1087_v20 = vld [vmem:[%s2870_s28 + $0x7f0] sm:$0xff]  ;;  %v1598_v16 = vmul.f32 %v1086_v62, %v4583_v8  ;;  %v1608_v1 = vmul.f32 %v1096_v13, %v2949_v42  ;;  %v1102_v42 = vld [vmem:[%s2870_s28 + $0x868] sm:$0xff] }
 0x203   : > { %2103 = vst [vmem:[%s2934_s21 + $0x7b0] sm:$0xff] %v1591_v36  ;;  %v1088_v36 = vld [vmem:[%s2870_s28 + $0x7f8] sm:$0xff] }
 0x204   : > { %2104 = vst [vmem:[%s2934_s21 + $0x7b8] sm:$0xff] %v1592_v47  ;;  %v1599_v47 = vmul.f32 %v1087_v20, %v4588_v37  ;;  %v1600_v14 = vmul.f32 %v1088_v36, %v4593_v33 }
 0x205   : > { %2105 = vst [vmem:[%s2934_s21 + $0x7c0] sm:$0xff] %v1593_v40  ;;  %v1091_v40 = vld [vmem:[%s2870_s28 + $0x810] sm:$0xff] }
 0x206   : > { %2106 = vst [vmem:[%s2934_s21 + $0x7c8] sm:$0xff] %v1594_v22  ;;  %v1092_v22 = vld [vmem:[%s2870_s28 + $0x818] sm:$0xff]  ;;  %v1603_v62 = vmul.f32 %v1091_v40, %v2909_v19  ;;  %v1097_v19 = vld [vmem:[%s2870_s28 + $0x840] sm:$0xff] }
 0x207   : > { %2107 = vst [vmem:[%s2934_s21 + $0x7d0] sm:$0xff] %v1595_v21  ;;  %v1093_v21 = vld [vmem:[%s2870_s28 + $0x820] sm:$0xff]  ;;  %v1604_v20 = vmul.f32 %v1092_v22, %v2922_v27  ;;  %v1098_v27 = vld [vmem:[%s2870_s28 + $0x848] sm:$0xff]  ;;  %v1614_v22 = vmul.f32 %v1102_v42, %v2976_v61  ;;  %v1108_v61 = vld [vmem:[%s2870_s28 + $0x898] sm:$0xff] }
 0x208   : > { %2108 = vst [vmem:[%s2934_s21 + $0x7d8] sm:$0xff] %v1596_v50  ;;  %v1094_v50 = vld [vmem:[%s2870_s28 + $0x828] sm:$0xff]  ;;  %v1610_v11 = vmul.f32 %v1098_v27, %v2943_v39  ;;  %v1104_v39 = vld [vmem:[%s2870_s28 + $0x878] sm:$0xff]  ;;  %v5839_v42 = vld [vmem:[#allocation16_spill] sm:$0xff] }
 0x209   : > { %2109 = vst [vmem:[%s2934_s21 + $0x7e0] sm:$0xff] %v1597_v53  ;;  %v1605_v53 = vmul.f32 %v1093_v21, %v2924_v28  ;;  %v1606_v36 = vmul.f32 %v1094_v50, %v2928_v31  ;;  %v1099_v28 = vld [vmem:[%s2870_s28 + $0x850] sm:$0xff]  ;;  %v1100_v31 = vld [vmem:[%s2870_s28 + $0x858] sm:$0xff]  ;;  %v1616_v21 = vmul.f32 %v1104_v39, %v2988_v10  ;;  %v1110_v10 = vld [vmem:[%s2870_s28 + $0x8a8] sm:$0xff] }
 0x20a   : > { %2110 = vst [vmem:[%s2934_s21 + $0x7e8] sm:$0xff] %v1598_v16  ;;  %v1607_v16 = vmul.f32 %v1095_v12, %v2947_v41  ;;  %v1101_v41 = vld [vmem:[%s2870_s28 + $0x860] sm:$0xff]  ;;  %v1612_v40 = vmul.f32 %v1100_v31, %v2967_v55  ;;  %v1106_v55 = vld [vmem:[%s2870_s28 + $0x888] sm:$0xff]  ;;  %v1620_v12 = vmul.f32 %v1108_v61, %v3012_v35  ;;  %v1622_v13 = vmul.f32 %v1110_v10, %v3024_v48  ;;  %v1116_v48 = vld [vmem:[%s2870_s28 + $0x8d8] sm:$0xff] }
 0x20b   : > { %2111 = vst [vmem:[%s2934_s21 + $0x7f0] sm:$0xff] %v1599_v47  ;;  %v1609_v47 = vmul.f32 %v1097_v19, %v2941_v38  ;;  %v1103_v38 = vld [vmem:[%s2870_s28 + $0x870] sm:$0xff]  ;;  %v1618_v50 = vmul.f32 %v1106_v55, %v3000_v24  ;;  %v1112_v24 = vld [vmem:[%s2870_s28 + $0x8b8] sm:$0xff]  ;;  %v1114_v35 = vld [vmem:[%s2870_s28 + $0x8c8] sm:$0xff] }
 0x20c   : > { %2112 = vst [vmem:[%s2934_s21 + $0x7f8] sm:$0xff] %v1600_v14  ;;  %v1611_v14 = vmul.f32 %v1099_v28, %v2952_v44  ;;  %v1105_v44 = vld [vmem:[%s2870_s28 + $0x880] sm:$0xff]  ;;  %v1624_v19 = vmul.f32 %v1112_v24, %v3036_v56  ;;  %v1626_v27 = vmul.f32 %v1114_v35, %v3048_v2  ;;  %v1118_v56 = vld [vmem:[%s2870_s28 + $0x8e8] sm:$0xff]  ;;  %v1628_v28 = vmul.f32 %v1116_v48, %v3066_v17  ;;  %v1120_v2 = vld [vmem:[%s2870_s28 + $0x8f8] sm:$0xff] }
 0x20d   : > { %2113 = vst [vmem:[%s2934_s21 + $0x800] sm:$0xff] %v1601_v32  ;;  %v1613_v32 = vmul.f32 %v1101_v41, %v2970_v57  ;;  %v1107_v57 = vld [vmem:[%s2870_s28 + $0x890] sm:$0xff]  ;;  %v1630_v31 = vmul.f32 %v1118_v56, %v3084_v34  ;;  %v1122_v17 = vld [vmem:[%s2870_s28 + $0x908] sm:$0xff]  ;;  %v1632_v41 = vmul.f32 %v1120_v2, %v3102_v0  ;;  %v1124_v34 = vld [vmem:[%s2870_s28 + $0x918] sm:$0xff] }
 0x20e   : > { %2114 = vst [vmem:[%s2934_s21 + $0x808] sm:$0xff] %v1602_v29  ;;  %v1615_v29 = vmul.f32 %v1103_v38, %v2982_v3  ;;  %v1109_v3 = vld [vmem:[%s2870_s28 + $0x8a0] sm:$0xff]  ;;  %v5840_v38 = vld [vmem:[#allocation17_spill] sm:$0xff]  ;;  %v5841_v39 = vld [vmem:[#allocation18_spill] sm:$0xff] }
 0x20f   : > { %2115 = vst [vmem:[%s2934_s21 + $0x810] sm:$0xff] %v1603_v62  ;;  %v1617_v62 = vmul.f32 %v1105_v44, %v2993_v15  ;;  %v1111_v15 = vld [vmem:[%s2870_s28 + $0x8b0] sm:$0xff]  ;;  %v1126_v0 = vld [vmem:[%s2870_s28 + $0x928] sm:$0xff]  ;;  %v5842_v44 = vld [vmem:[#allocation19_spill] sm:$0xff] }
 0x210   : > { %2116 = vst [vmem:[%s2934_s21 + $0x818] sm:$0xff] %v1604_v20  ;;  %v1619_v20 = vmul.f32 %v1107_v57, %v3006_v30  ;;  %v1113_v30 = vld [vmem:[%s2870_s28 + $0x8c0] sm:$0xff]  ;;  %v1128_v55 = vld [vmem:[%s2870_s28 + $0x938] sm:$0xff]  ;;  %v5844_v61 = vld [vmem:[#allocation21_spill] sm:$0xff] }
 0x211   : > { %2117 = vst [vmem:[%s2934_s21 + $0x820] sm:$0xff] %v1605_v53  ;;  %v1621_v53 = vmul.f32 %v1109_v3, %v3018_v43  ;;  %v1115_v43 = vld [vmem:[%s2870_s28 + $0x8d0] sm:$0xff]  ;;  %v1130_v3 = vld [vmem:[%s2870_s28 + $0x948] sm:$0xff]  ;;  %v1132_v24 = vld [vmem:[%s2870_s28 + $0x958] sm:$0xff] }
 0x212   : > { %2118 = vst [vmem:[%s2934_s21 + $0x828] sm:$0xff] %v1606_v36  ;;  %v1623_v36 = vmul.f32 %v1111_v15, %v3030_v52  ;;  %v1117_v52 = vld [vmem:[%s2870_s28 + $0x8e0] sm:$0xff]  ;;  %v5846_v15 = vld [vmem:[#allocation23_spill] sm:$0xff]  ;;  %v5848_v35 = vld [vmem:[#allocation25_spill] sm:$0xff] }
 0x213   : > { %2119 = vst [vmem:[%s2934_s21 + $0x830] sm:$0xff] %v1607_v16  ;;  %v1625_v16 = vmul.f32 %v1113_v30, %v3042_v60  ;;  %v1119_v60 = vld [vmem:[%s2870_s28 + $0x8f0] sm:$0xff]  ;;  %v1136_v56 = vld [vmem:[%s2870_s28 + $0x978] sm:$0xff]  ;;  %v5852_v2 = vld [vmem:[#allocation29_spill] sm:$0xff] }
 0x214   : > { %2120 = vst [vmem:[%s2934_s21 + $0x838] sm:$0xff] %v1608_v1  ;;  %v1627_v1 = vmul.f32 %v1115_v43, %v3057_v9  ;;  %v1121_v9 = vld [vmem:[%s2870_s28 + $0x900] sm:$0xff]  ;;  %v1134_v43 = vld [vmem:[%s2870_s28 + $0x968] sm:$0xff] }
 0x215   : > { %2121 = vst [vmem:[%s2934_s21 + $0x840] sm:$0xff] %v1609_v47  ;;  %v1629_v47 = vmul.f32 %v1117_v52, %v3075_v26  ;;  %v1123_v26 = vld [vmem:[%s2870_s28 + $0x910] sm:$0xff]  ;;  %v5850_v52 = vld [vmem:[#allocation27_spill] sm:$0xff] }
 0x216   : > { %2122 = vst [vmem:[%s2934_s21 + $0x848] sm:$0xff] %v1610_v11  ;;  %v1631_v11 = vmul.f32 %v1119_v60, %v3093_v46  ;;  %v1125_v46 = vld [vmem:[%s2870_s28 + $0x920] sm:$0xff] }
 0x217   : > { %2123 = vst [vmem:[%s2934_s21 + $0x850] sm:$0xff] %v1611_v14  ;;  %v1633_v14 = vmul.f32 %v1121_v9, %v3111_v59  ;;  %v1127_v59 = vld [vmem:[%s2870_s28 + $0x930] sm:$0xff]  ;;  %v1138_v9 = vld [vmem:[%s2870_s28 + $0x988] sm:$0xff] }
 0x218   : > { %2124 = vst [vmem:[%s2934_s21 + $0x858] sm:$0xff] %v1612_v40  ;;  %v1634_v40 = vmul.f32 %v1122_v17, %v5839_v42  ;;  %v5855_v42 = vld [vmem:[#allocation32_spill] sm:$0xff] }
 0x219   : > { %2125 = vst [vmem:[%s2934_s21 + $0x860] sm:$0xff] %v1613_v32  ;;  %v1635_v32 = vmul.f32 %v1123_v26, %v5840_v38  ;;  %v5854_v26 = vld [vmem:[#allocation31_spill] sm:$0xff]  ;;  %v5856_v38 = vld [vmem:[#allocation33_spill] sm:$0xff] }
 0x21a   : > { %2126 = vst [vmem:[%s2934_s21 + $0x868] sm:$0xff] %v1614_v22  ;;  %v1636_v22 = vmul.f32 %v1124_v34, %v5841_v39  ;;  %v1140_v34 = vld [vmem:[%s2870_s28 + $0x998] sm:$0xff]  ;;  %v5857_v39 = vld [vmem:[#allocation34_spill] sm:$0xff] }
 0x21b   : > { %2127 = vst [vmem:[%s2934_s21 + $0x870] sm:$0xff] %v1615_v29  ;;  %v1637_v29 = vmul.f32 %v1125_v46, %v5842_v44  ;;  %v1141_v46 = vld [vmem:[%s2870_s28 + $0x9a0] sm:$0xff]  ;;  %v5858_v44 = vld [vmem:[#allocation35_spill] sm:$0xff] }
 0x21c   : > { %2128 = vst [vmem:[%s2934_s21 + $0x878] sm:$0xff] %v1616_v21  ;;  %v5843_v21 = vld [vmem:[#allocation20_spill] sm:$0xff] }
 0x21d   : > { %2129 = vst [vmem:[%s2934_s21 + $0x880] sm:$0xff] %v1617_v62  ;;  %v1638_v57 = vmul.f32 %v1126_v0, %v5843_v21  ;;  %v1129_v62 = vld [vmem:[%s2870_s28 + $0x940] sm:$0xff]  ;;  %v1142_v0 = vld [vmem:[%s2870_s28 + $0x9a8] sm:$0xff] }
 0x21e   : > { %2130 = vst [vmem:[%s2934_s21 + $0x888] sm:$0xff] %v1618_v50  ;;  %v1639_v50 = vmul.f32 %v1127_v59, %v5844_v61  ;;  %v1143_v59 = vld [vmem:[%s2870_s28 + $0x9b0] sm:$0xff]  ;;  %v5859_v21 = vld [vmem:[#allocation36_spill] sm:$0xff]  ;;  %v5860_v61 = vld [vmem:[#allocation37_spill] sm:$0xff] }
 0x21f   : > { %2131 = vst [vmem:[%s2934_s21 + $0x890] sm:$0xff] %v1619_v20  ;;  %v5845_v20 = vld [vmem:[#allocation22_spill] sm:$0xff] }
 0x220   : > { %2132 = vst [vmem:[%s2934_s21 + $0x898] sm:$0xff] %v1620_v12  ;;  %v1640_v10 = vmul.f32 %v1128_v55, %v5845_v20  ;;  %v1131_v12 = vld [vmem:[%s2870_s28 + $0x950] sm:$0xff]  ;;  %v1144_v55 = vld [vmem:[%s2870_s28 + $0x9b8] sm:$0xff] }
 0x221   : > { %2133 = vst [vmem:[%s2934_s21 + $0x8a0] sm:$0xff] %v1621_v53  ;;  %v1641_v53 = vmul.f32 %v1129_v62, %v5846_v15  ;;  %v1145_v62 = vld [vmem:[%s2870_s28 + $0x9c0] sm:$0xff]  ;;  %v5861_v20 = vld [vmem:[#allocation38_spill] sm:$0xff]  ;;  %v5862_v15 = vld [vmem:[#allocation39_spill] sm:$0xff] }
 0x222   : > { %2134 = vst [vmem:[%s2934_s21 + $0x8a8] sm:$0xff] %v1622_v13  ;;  %v5847_v13 = vld [vmem:[#allocation24_spill] sm:$0xff] }
 0x223   : > { %2135 = vst [vmem:[%s2934_s21 + $0x8b0] sm:$0xff] %v1623_v36  ;;  %v1642_v30 = vmul.f32 %v1130_v3, %v5847_v13  ;;  %v1133_v36 = vld [vmem:[%s2870_s28 + $0x960] sm:$0xff]  ;;  %v1146_v3 = vld [vmem:[%s2870_s28 + $0x9c8] sm:$0xff] }
 0x224   : > { %2136 = vst [vmem:[%s2934_s21 + $0x8b8] sm:$0xff] %v1624_v19  ;;  %v1643_v19 = vmul.f32 %v1131_v12, %v5848_v35  ;;  %v1147_v12 = vld [vmem:[%s2870_s28 + $0x9d0] sm:$0xff]  ;;  %v5863_v13 = vld [vmem:[#allocation40_spill] sm:$0xff]  ;;  %v5864_v35 = vld [vmem:[#allocation41_spill] sm:$0xff] }
 0x225   : > { %2137 = vst [vmem:[%s2934_s21 + $0x8c0] sm:$0xff] %v1625_v16  ;;  %v5849_v16 = vld [vmem:[#allocation26_spill] sm:$0xff] }
 0x226   : > { %2138 = vst [vmem:[%s2934_s21 + $0x8c8] sm:$0xff] %v1626_v27  ;;  %v1644_v48 = vmul.f32 %v1132_v24, %v5849_v16  ;;  %v1135_v27 = vld [vmem:[%s2870_s28 + $0x970] sm:$0xff]  ;;  %v1148_v24 = vld [vmem:[%s2870_s28 + $0x9d8] sm:$0xff] }
 0x227   : > { %2139 = vst [vmem:[%s2934_s21 + $0x8d0] sm:$0xff] %v1627_v1  ;;  %v1645_v1 = vmul.f32 %v1133_v36, %v5850_v52  ;;  %v1149_v36 = vld [vmem:[%s2870_s28 + $0x9e0] sm:$0xff]  ;;  %v5865_v16 = vld [vmem:[#allocation42_spill] sm:$0xff]  ;;  %v5866_v52 = vld [vmem:[#allocation43_spill] sm:$0xff] }
 0x228   : > { %2140 = vst [vmem:[%s2934_s21 + $0x8d8] sm:$0xff] %v1628_v28  ;;  %v5851_v28 = vld [vmem:[#allocation28_spill] sm:$0xff] }
 0x229   : > { %2141 = vst [vmem:[%s2934_s21 + $0x8e0] sm:$0xff] %v1629_v47  ;;  %v1646_v60 = vmul.f32 %v1134_v43, %v5851_v28  ;;  %v1137_v47 = vld [vmem:[%s2870_s28 + $0x980] sm:$0xff]  ;;  %v1150_v43 = vld [vmem:[%s2870_s28 + $0x9e8] sm:$0xff] }
 0x22a   : > { %2142 = vst [vmem:[%s2934_s21 + $0x8e8] sm:$0xff] %v1630_v31  ;;  %v1647_v31 = vmul.f32 %v1135_v27, %v5852_v2  ;;  %v1151_v27 = vld [vmem:[%s2870_s28 + $0x9f0] sm:$0xff]  ;;  %v5867_v28 = vld [vmem:[#allocation44_spill] sm:$0xff]  ;;  %v5868_v2 = vld [vmem:[#allocation45_spill] sm:$0xff] }
 0x22b   : > { %2143 = vst [vmem:[%s2934_s21 + $0x8f0] sm:$0xff] %v1631_v11  ;;  %v5853_v11 = vld [vmem:[#allocation30_spill] sm:$0xff] }
 0x22c   : > { %2144 = vst [vmem:[%s2934_s21 + $0x8f8] sm:$0xff] %v1632_v41  ;;  %v1648_v17 = vmul.f32 %v1136_v56, %v5853_v11  ;;  %v1139_v41 = vld [vmem:[%s2870_s28 + $0x990] sm:$0xff]  ;;  %v1152_v56 = vld [vmem:[%s2870_s28 + $0x9f8] sm:$0xff] }
 0x22d   : > { %2145 = vst [vmem:[%s2934_s21 + $0x900] sm:$0xff] %v1633_v14  ;;  %v1649_v14 = vmul.f32 %v1137_v47, %v5854_v26  ;;  %v1153_v47 = vld [vmem:[%s2870_s28 + $0xa00] sm:$0xff]  ;;  %v5869_v11 = vld [vmem:[#allocation46_spill] sm:$0xff]  ;;  %v5870_v26 = vld [vmem:[#allocation47_spill] sm:$0xff] }
 0x22e   : > { %2146 = vst [vmem:[%s2934_s21 + $0x908] sm:$0xff] %v1634_v40  ;;  %v1650_v40 = vmul.f32 %v1138_v9, %v5855_v42  ;;  %v1154_v9 = vld [vmem:[%s2870_s28 + $0xa08] sm:$0xff]  ;;  %v5871_v42 = vld [vmem:[#allocation48_spill] sm:$0xff] }
 0x22f   : > { %2147 = vst [vmem:[%s2934_s21 + $0x910] sm:$0xff] %v1635_v32  ;;  %v1651_v32 = vmul.f32 %v1139_v41, %v5856_v38  ;;  %v1155_v41 = vld [vmem:[%s2870_s28 + $0xa10] sm:$0xff]  ;;  %v5872_v38 = vld [vmem:[#allocation49_spill] sm:$0xff] }
 0x230   : > { %2148 = vst [vmem:[%s2934_s21 + $0x918] sm:$0xff] %v1636_v22  ;;  %v1652_v22 = vmul.f32 %v1140_v34, %v5857_v39  ;;  %v1156_v34 = vld [vmem:[%s2870_s28 + $0xa18] sm:$0xff]  ;;  %v5873_v39 = vld [vmem:[#allocation50_spill] sm:$0xff] }
 0x231   : > { %2149 = vst [vmem:[%s2934_s21 + $0x920] sm:$0xff] %v1637_v29  ;;  %v1653_v29 = vmul.f32 %v1141_v46, %v5858_v44  ;;  %v1157_v46 = vld [vmem:[%s2870_s28 + $0xa20] sm:$0xff]  ;;  %v5874_v44 = vld [vmem:[#allocation51_spill] sm:$0xff] }
 0x232   : > { %2150 = vst [vmem:[%s2934_s21 + $0x928] sm:$0xff] %v1638_v57  ;;  %v1654_v57 = vmul.f32 %v1142_v0, %v5859_v21  ;;  %v1158_v0 = vld [vmem:[%s2870_s28 + $0xa28] sm:$0xff]  ;;  %v5875_v21 = vld [vmem:[#allocation52_spill] sm:$0xff] }
 0x233   : > { %2151 = vst [vmem:[%s2934_s21 + $0x930] sm:$0xff] %v1639_v50  ;;  %v1655_v50 = vmul.f32 %v1143_v59, %v5860_v61  ;;  %v1159_v59 = vld [vmem:[%s2870_s28 + $0xa30] sm:$0xff]  ;;  %v5876_v61 = vld [vmem:[#allocation53_spill] sm:$0xff] }
 0x234   : > { %2152 = vst [vmem:[%s2934_s21 + $0x938] sm:$0xff] %v1640_v10  ;;  %v1656_v10 = vmul.f32 %v1144_v55, %v5861_v20  ;;  %v1160_v55 = vld [vmem:[%s2870_s28 + $0xa38] sm:$0xff]  ;;  %v5877_v20 = vld [vmem:[#allocation54_spill] sm:$0xff] }
 0x235   : > { %2153 = vst [vmem:[%s2934_s21 + $0x940] sm:$0xff] %v1641_v53  ;;  %v1657_v53 = vmul.f32 %v1145_v62, %v5862_v15  ;;  %v1161_v62 = vld [vmem:[%s2870_s28 + $0xa40] sm:$0xff]  ;;  %v5878_v15 = vld [vmem:[#allocation55_spill] sm:$0xff] }
 0x236   : > { %2154 = vst [vmem:[%s2934_s21 + $0x948] sm:$0xff] %v1642_v30  ;;  %v1658_v30 = vmul.f32 %v1146_v3, %v5863_v13  ;;  %v1162_v3 = vld [vmem:[%s2870_s28 + $0xa48] sm:$0xff]  ;;  %v5879_v13 = vld [vmem:[#allocation56_spill] sm:$0xff] }
 0x237   : > { %2155 = vst [vmem:[%s2934_s21 + $0x950] sm:$0xff] %v1643_v19  ;;  %v1659_v19 = vmul.f32 %v1147_v12, %v5864_v35  ;;  %v1163_v12 = vld [vmem:[%s2870_s28 + $0xa50] sm:$0xff]  ;;  %v5880_v35 = vld [vmem:[#allocation57_spill] sm:$0xff] }
 0x238   : > { %2156 = vst [vmem:[%s2934_s21 + $0x958] sm:$0xff] %v1644_v48  ;;  %v1660_v48 = vmul.f32 %v1148_v24, %v5865_v16  ;;  %v1164_v24 = vld [vmem:[%s2870_s28 + $0xa58] sm:$0xff]  ;;  %v5881_v16 = vld [vmem:[#allocation58_spill] sm:$0xff] }
 0x239   : > { %2157 = vst [vmem:[%s2934_s21 + $0x960] sm:$0xff] %v1645_v1  ;;  %v1661_v1 = vmul.f32 %v1149_v36, %v5866_v52  ;;  %v1165_v36 = vld [vmem:[%s2870_s28 + $0xa60] sm:$0xff]  ;;  %v5882_v52 = vld [vmem:[#allocation59_spill] sm:$0xff] }
 0x23a   : > { %2158 = vst [vmem:[%s2934_s21 + $0x968] sm:$0xff] %v1646_v60  ;;  %v1662_v60 = vmul.f32 %v1150_v43, %v5867_v28  ;;  %v1166_v43 = vld [vmem:[%s2870_s28 + $0xa68] sm:$0xff]  ;;  %v5883_v28 = vld [vmem:[#allocation60_spill] sm:$0xff] }
 0x23b   : > { %2159 = vst [vmem:[%s2934_s21 + $0x970] sm:$0xff] %v1647_v31  ;;  %v1663_v31 = vmul.f32 %v1151_v27, %v5868_v2  ;;  %v1167_v27 = vld [vmem:[%s2870_s28 + $0xa70] sm:$0xff]  ;;  %v5884_v2 = vld [vmem:[#allocation61_spill] sm:$0xff] }
 0x23c   : > { %2160 = vst [vmem:[%s2934_s21 + $0x978] sm:$0xff] %v1648_v17  ;;  %v1664_v17 = vmul.f32 %v1152_v56, %v5869_v11  ;;  %v1168_v56 = vld [vmem:[%s2870_s28 + $0xa78] sm:$0xff]  ;;  %v5885_v11 = vld [vmem:[#allocation62_spill] sm:$0xff] }
 0x23d   : > { %2161 = vst [vmem:[%s2934_s21 + $0x980] sm:$0xff] %v1649_v14  ;;  %v1665_v14 = vmul.f32 %v1153_v47, %v5870_v26  ;;  %v1169_v47 = vld [vmem:[%s2870_s28 + $0xa80] sm:$0xff]  ;;  %v5886_v26 = vld [vmem:[#allocation63_spill] sm:$0xff] }
 0x23e   : > { %2162 = vst [vmem:[%s2934_s21 + $0x988] sm:$0xff] %v1650_v40  ;;  %v1666_v40 = vmul.f32 %v1154_v9, %v5871_v42  ;;  %v1170_v9 = vld [vmem:[%s2870_s28 + $0xa88] sm:$0xff]  ;;  %v5887_v42 = vld [vmem:[#allocation64_spill] sm:$0xff] }
 0x23f   : > { %2163 = vst [vmem:[%s2934_s21 + $0x990] sm:$0xff] %v1651_v32  ;;  %v1667_v32 = vmul.f32 %v1155_v41, %v5872_v38  ;;  %v1171_v41 = vld [vmem:[%s2870_s28 + $0xa90] sm:$0xff]  ;;  %v5888_v38 = vld [vmem:[#allocation65_spill] sm:$0xff] }
 0x240   : > { %2164 = vst [vmem:[%s2934_s21 + $0x998] sm:$0xff] %v1652_v22  ;;  %v1668_v22 = vmul.f32 %v1156_v34, %v5873_v39  ;;  %v1172_v34 = vld [vmem:[%s2870_s28 + $0xa98] sm:$0xff]  ;;  %v5889_v39 = vld [vmem:[#allocation66_spill] sm:$0xff] }
 0x241   : > { %2165 = vst [vmem:[%s2934_s21 + $0x9a0] sm:$0xff] %v1653_v29  ;;  %v1669_v29 = vmul.f32 %v1157_v46, %v5874_v44  ;;  %v1173_v46 = vld [vmem:[%s2870_s28 + $0xaa0] sm:$0xff]  ;;  %v5890_v44 = vld [vmem:[#allocation67_spill] sm:$0xff] }
 0x242   : > { %2166 = vst [vmem:[%s2934_s21 + $0x9a8] sm:$0xff] %v1654_v57  ;;  %v1670_v57 = vmul.f32 %v1158_v0, %v5875_v21  ;;  %v1174_v0 = vld [vmem:[%s2870_s28 + $0xaa8] sm:$0xff]  ;;  %v5891_v21 = vld [vmem:[#allocation68_spill] sm:$0xff] }
 0x243   : > { %2167 = vst [vmem:[%s2934_s21 + $0x9b0] sm:$0xff] %v1655_v50  ;;  %v1671_v50 = vmul.f32 %v1159_v59, %v5876_v61  ;;  %v1175_v59 = vld [vmem:[%s2870_s28 + $0xab0] sm:$0xff]  ;;  %v5892_v61 = vld [vmem:[#allocation69_spill] sm:$0xff] }
 0x244   : > { %2168 = vst [vmem:[%s2934_s21 + $0x9b8] sm:$0xff] %v1656_v10  ;;  %v1672_v10 = vmul.f32 %v1160_v55, %v5877_v20  ;;  %v1176_v55 = vld [vmem:[%s2870_s28 + $0xab8] sm:$0xff]  ;;  %v5893_v20 = vld [vmem:[#allocation70_spill] sm:$0xff] }
 0x245   : > { %2169 = vst [vmem:[%s2934_s21 + $0x9c0] sm:$0xff] %v1657_v53  ;;  %v1673_v53 = vmul.f32 %v1161_v62, %v5878_v15  ;;  %v1177_v62 = vld [vmem:[%s2870_s28 + $0xac0] sm:$0xff]  ;;  %v5894_v15 = vld [vmem:[#allocation71_spill] sm:$0xff] }
 0x246   : > { %2170 = vst [vmem:[%s2934_s21 + $0x9c8] sm:$0xff] %v1658_v30  ;;  %v1674_v30 = vmul.f32 %v1162_v3, %v5879_v13  ;;  %v1178_v3 = vld [vmem:[%s2870_s28 + $0xac8] sm:$0xff]  ;;  %v5895_v13 = vld [vmem:[#allocation72_spill] sm:$0xff] }
 0x247   : > { %2171 = vst [vmem:[%s2934_s21 + $0x9d0] sm:$0xff] %v1659_v19  ;;  %v1675_v19 = vmul.f32 %v1163_v12, %v5880_v35  ;;  %v1179_v12 = vld [vmem:[%s2870_s28 + $0xad0] sm:$0xff]  ;;  %v5896_v35 = vld [vmem:[#allocation73_spill] sm:$0xff] }
 0x248   : > { %2172 = vst [vmem:[%s2934_s21 + $0x9d8] sm:$0xff] %v1660_v48  ;;  %v1676_v48 = vmul.f32 %v1164_v24, %v5881_v16  ;;  %v1180_v24 = vld [vmem:[%s2870_s28 + $0xad8] sm:$0xff]  ;;  %v5897_v16 = vld [vmem:[#allocation74_spill] sm:$0xff] }
 0x249   : > { %2173 = vst [vmem:[%s2934_s21 + $0x9e0] sm:$0xff] %v1661_v1  ;;  %v1677_v1 = vmul.f32 %v1165_v36, %v5882_v52  ;;  %v1181_v36 = vld [vmem:[%s2870_s28 + $0xae0] sm:$0xff]  ;;  %v5898_v52 = vld [vmem:[#allocation75_spill] sm:$0xff] }
 0x24a   : > { %2174 = vst [vmem:[%s2934_s21 + $0x9e8] sm:$0xff] %v1662_v60  ;;  %v1678_v60 = vmul.f32 %v1166_v43, %v5883_v28  ;;  %v1182_v43 = vld [vmem:[%s2870_s28 + $0xae8] sm:$0xff]  ;;  %v5899_v28 = vld [vmem:[#allocation76_spill] sm:$0xff] }
 0x24b   : > { %2175 = vst [vmem:[%s2934_s21 + $0x9f0] sm:$0xff] %v1663_v31  ;;  %v1679_v31 = vmul.f32 %v1167_v27, %v5884_v2  ;;  %v1183_v27 = vld [vmem:[%s2870_s28 + $0xaf0] sm:$0xff]  ;;  %v5900_v2 = vld [vmem:[#allocation77_spill] sm:$0xff] }
 0x24c   : > { %2176 = vst [vmem:[%s2934_s21 + $0x9f8] sm:$0xff] %v1664_v17  ;;  %v1680_v17 = vmul.f32 %v1168_v56, %v5885_v11  ;;  %v1184_v56 = vld [vmem:[%s2870_s28 + $0xaf8] sm:$0xff]  ;;  %v5901_v11 = vld [vmem:[#allocation78_spill] sm:$0xff] }
 0x24d   : > { %2177 = vst [vmem:[%s2934_s21 + $0xa00] sm:$0xff] %v1665_v14  ;;  %v1681_v14 = vmul.f32 %v1169_v47, %v5886_v26  ;;  %v1185_v47 = vld [vmem:[%s2870_s28 + $0xb00] sm:$0xff]  ;;  %v5902_v26 = vld [vmem:[#allocation79_spill] sm:$0xff] }
 0x24e   : > { %2178 = vst [vmem:[%s2934_s21 + $0xa08] sm:$0xff] %v1666_v40  ;;  %v1682_v40 = vmul.f32 %v1170_v9, %v5887_v42  ;;  %v1186_v9 = vld [vmem:[%s2870_s28 + $0xb08] sm:$0xff]  ;;  %v5903_v42 = vld [vmem:[#allocation80_spill] sm:$0xff] }
 0x24f   : > { %2179 = vst [vmem:[%s2934_s21 + $0xa10] sm:$0xff] %v1667_v32  ;;  %v1683_v32 = vmul.f32 %v1171_v41, %v5888_v38  ;;  %v1187_v41 = vld [vmem:[%s2870_s28 + $0xb10] sm:$0xff]  ;;  %v5904_v38 = vld [vmem:[#allocation81_spill] sm:$0xff] }
 0x250   : > { %2180 = vst [vmem:[%s2934_s21 + $0xa18] sm:$0xff] %v1668_v22  ;;  %v1684_v22 = vmul.f32 %v1172_v34, %v5889_v39  ;;  %v1188_v34 = vld [vmem:[%s2870_s28 + $0xb18] sm:$0xff]  ;;  %v5905_v39 = vld [vmem:[#allocation82_spill] sm:$0xff] }
 0x251   : > { %2181 = vst [vmem:[%s2934_s21 + $0xa20] sm:$0xff] %v1669_v29  ;;  %v1685_v29 = vmul.f32 %v1173_v46, %v5890_v44  ;;  %v1189_v46 = vld [vmem:[%s2870_s28 + $0xb20] sm:$0xff]  ;;  %v5906_v44 = vld [vmem:[#allocation83_spill] sm:$0xff] }
 0x252   : > { %2182 = vst [vmem:[%s2934_s21 + $0xa28] sm:$0xff] %v1670_v57  ;;  %v1686_v57 = vmul.f32 %v1174_v0, %v5891_v21  ;;  %v1190_v0 = vld [vmem:[%s2870_s28 + $0xb28] sm:$0xff]  ;;  %v5907_v21 = vld [vmem:[#allocation84_spill] sm:$0xff] }
 0x253   : > { %2183 = vst [vmem:[%s2934_s21 + $0xa30] sm:$0xff] %v1671_v50  ;;  %v1687_v50 = vmul.f32 %v1175_v59, %v5892_v61  ;;  %v1191_v59 = vld [vmem:[%s2870_s28 + $0xb30] sm:$0xff]  ;;  %v5908_v61 = vld [vmem:[#allocation85_spill] sm:$0xff] }
 0x254   : > { %2184 = vst [vmem:[%s2934_s21 + $0xa38] sm:$0xff] %v1672_v10  ;;  %v1688_v10 = vmul.f32 %v1176_v55, %v5893_v20  ;;  %v1192_v55 = vld [vmem:[%s2870_s28 + $0xb38] sm:$0xff]  ;;  %v5909_v20 = vld [vmem:[#allocation86_spill] sm:$0xff] }
 0x255   : > { %2185 = vst [vmem:[%s2934_s21 + $0xa40] sm:$0xff] %v1673_v53  ;;  %v1689_v53 = vmul.f32 %v1177_v62, %v5894_v15  ;;  %v1193_v62 = vld [vmem:[%s2870_s28 + $0xb40] sm:$0xff]  ;;  %v5910_v15 = vld [vmem:[#allocation87_spill] sm:$0xff] }
 0x256   : > { %2186 = vst [vmem:[%s2934_s21 + $0xa48] sm:$0xff] %v1674_v30  ;;  %v1690_v30 = vmul.f32 %v1178_v3, %v5895_v13  ;;  %v1194_v3 = vld [vmem:[%s2870_s28 + $0xb48] sm:$0xff]  ;;  %v5911_v13 = vld [vmem:[#allocation88_spill] sm:$0xff] }
 0x257   : > { %2187 = vst [vmem:[%s2934_s21 + $0xa50] sm:$0xff] %v1675_v19  ;;  %v1691_v19 = vmul.f32 %v1179_v12, %v5896_v35  ;;  %v1195_v12 = vld [vmem:[%s2870_s28 + $0xb50] sm:$0xff]  ;;  %v5912_v35 = vld [vmem:[#allocation89_spill] sm:$0xff] }
 0x258   : > { %2188 = vst [vmem:[%s2934_s21 + $0xa58] sm:$0xff] %v1676_v48  ;;  %v1692_v48 = vmul.f32 %v1180_v24, %v5897_v16  ;;  %v1196_v24 = vld [vmem:[%s2870_s28 + $0xb58] sm:$0xff]  ;;  %v5913_v16 = vld [vmem:[#allocation90_spill] sm:$0xff] }
 0x259   : > { %2189 = vst [vmem:[%s2934_s21 + $0xa60] sm:$0xff] %v1677_v1  ;;  %v1693_v1 = vmul.f32 %v1181_v36, %v5898_v52  ;;  %v1197_v36 = vld [vmem:[%s2870_s28 + $0xb60] sm:$0xff]  ;;  %v5914_v52 = vld [vmem:[#allocation91_spill] sm:$0xff] }
 0x25a   : > { %2190 = vst [vmem:[%s2934_s21 + $0xa68] sm:$0xff] %v1678_v60  ;;  %v1694_v60 = vmul.f32 %v1182_v43, %v5899_v28  ;;  %v1198_v43 = vld [vmem:[%s2870_s28 + $0xb68] sm:$0xff]  ;;  %v5915_v28 = vld [vmem:[#allocation92_spill] sm:$0xff] }
 0x25b   : > { %2191 = vst [vmem:[%s2934_s21 + $0xa70] sm:$0xff] %v1679_v31  ;;  %v1695_v31 = vmul.f32 %v1183_v27, %v5900_v2  ;;  %v1199_v27 = vld [vmem:[%s2870_s28 + $0xb70] sm:$0xff]  ;;  %v5916_v2 = vld [vmem:[#allocation93_spill] sm:$0xff] }
 0x25c   : > { %2192 = vst [vmem:[%s2934_s21 + $0xa78] sm:$0xff] %v1680_v17  ;;  %v1696_v17 = vmul.f32 %v1184_v56, %v5901_v11  ;;  %v1200_v56 = vld [vmem:[%s2870_s28 + $0xb78] sm:$0xff]  ;;  %v5917_v11 = vld [vmem:[#allocation94_spill] sm:$0xff] }
 0x25d   : > { %2193 = vst [vmem:[%s2934_s21 + $0xa80] sm:$0xff] %v1681_v14  ;;  %v1697_v14 = vmul.f32 %v1185_v47, %v5902_v26  ;;  %v1201_v47 = vld [vmem:[%s2870_s28 + $0xb80] sm:$0xff]  ;;  %v5918_v26 = vld [vmem:[#allocation95_spill] sm:$0xff] }
 0x25e   : > { %2194 = vst [vmem:[%s2934_s21 + $0xa88] sm:$0xff] %v1682_v40  ;;  %v1698_v40 = vmul.f32 %v1186_v9, %v5903_v42  ;;  %v1202_v9 = vld [vmem:[%s2870_s28 + $0xb88] sm:$0xff]  ;;  %v5919_v42 = vld [vmem:[#allocation96_spill] sm:$0xff] }
 0x25f   : > { %2195 = vst [vmem:[%s2934_s21 + $0xa90] sm:$0xff] %v1683_v32  ;;  %v1699_v32 = vmul.f32 %v1187_v41, %v5904_v38  ;;  %v1203_v41 = vld [vmem:[%s2870_s28 + $0xb90] sm:$0xff]  ;;  %v5920_v38 = vld [vmem:[#allocation97_spill] sm:$0xff] }
 0x260   : > { %2196 = vst [vmem:[%s2934_s21 + $0xa98] sm:$0xff] %v1684_v22  ;;  %v1700_v22 = vmul.f32 %v1188_v34, %v5905_v39  ;;  %v1204_v34 = vld [vmem:[%s2870_s28 + $0xb98] sm:$0xff]  ;;  %v5921_v39 = vld [vmem:[#allocation98_spill] sm:$0xff] }
 0x261   : > { %2197 = vst [vmem:[%s2934_s21 + $0xaa0] sm:$0xff] %v1685_v29  ;;  %v1701_v29 = vmul.f32 %v1189_v46, %v5906_v44  ;;  %v1205_v46 = vld [vmem:[%s2870_s28 + $0xba0] sm:$0xff]  ;;  %v5922_v44 = vld [vmem:[#allocation99_spill] sm:$0xff] }
 0x262   : > { %2198 = vst [vmem:[%s2934_s21 + $0xaa8] sm:$0xff] %v1686_v57  ;;  %v1702_v57 = vmul.f32 %v1190_v0, %v5907_v21  ;;  %v1206_v0 = vld [vmem:[%s2870_s28 + $0xba8] sm:$0xff]  ;;  %v5923_v21 = vld [vmem:[#allocation100_spill] sm:$0xff] }
 0x263   : > { %2199 = vst [vmem:[%s2934_s21 + $0xab0] sm:$0xff] %v1687_v50  ;;  %v1703_v50 = vmul.f32 %v1191_v59, %v5908_v61  ;;  %v1207_v59 = vld [vmem:[%s2870_s28 + $0xbb0] sm:$0xff]  ;;  %v5924_v61 = vld [vmem:[#allocation101_spill] sm:$0xff] }
 0x264   : > { %2200 = vst [vmem:[%s2934_s21 + $0xab8] sm:$0xff] %v1688_v10  ;;  %v1704_v10 = vmul.f32 %v1192_v55, %v5909_v20  ;;  %v1208_v55 = vld [vmem:[%s2870_s28 + $0xbb8] sm:$0xff]  ;;  %v5925_v20 = vld [vmem:[#allocation102_spill] sm:$0xff] }
 0x265   : > { %2201 = vst [vmem:[%s2934_s21 + $0xac0] sm:$0xff] %v1689_v53  ;;  %v1705_v53 = vmul.f32 %v1193_v62, %v5910_v15  ;;  %v1209_v62 = vld [vmem:[%s2870_s28 + $0xbc0] sm:$0xff]  ;;  %v5926_v15 = vld [vmem:[#allocation103_spill] sm:$0xff] }
 0x266   : > { %2202 = vst [vmem:[%s2934_s21 + $0xac8] sm:$0xff] %v1690_v30  ;;  %v1706_v30 = vmul.f32 %v1194_v3, %v5911_v13  ;;  %v1210_v3 = vld [vmem:[%s2870_s28 + $0xbc8] sm:$0xff]  ;;  %v5927_v13 = vld [vmem:[#allocation104_spill] sm:$0xff] }
 0x267   : > { %2203 = vst [vmem:[%s2934_s21 + $0xad0] sm:$0xff] %v1691_v19  ;;  %v1707_v19 = vmul.f32 %v1195_v12, %v5912_v35  ;;  %v1211_v12 = vld [vmem:[%s2870_s28 + $0xbd0] sm:$0xff]  ;;  %v5928_v35 = vld [vmem:[#allocation105_spill] sm:$0xff] }
 0x268   : > { %2204 = vst [vmem:[%s2934_s21 + $0xad8] sm:$0xff] %v1692_v48  ;;  %v1708_v48 = vmul.f32 %v1196_v24, %v5913_v16  ;;  %v1212_v24 = vld [vmem:[%s2870_s28 + $0xbd8] sm:$0xff]  ;;  %v5929_v16 = vld [vmem:[#allocation106_spill] sm:$0xff] }
 0x269   : > { %2205 = vst [vmem:[%s2934_s21 + $0xae0] sm:$0xff] %v1693_v1  ;;  %v1709_v1 = vmul.f32 %v1197_v36, %v5914_v52  ;;  %v1213_v36 = vld [vmem:[%s2870_s28 + $0xbe0] sm:$0xff]  ;;  %v5930_v52 = vld [vmem:[#allocation107_spill] sm:$0xff] }
 0x26a   : > { %2206 = vst [vmem:[%s2934_s21 + $0xae8] sm:$0xff] %v1694_v60  ;;  %v1710_v60 = vmul.f32 %v1198_v43, %v5915_v28  ;;  %v1214_v43 = vld [vmem:[%s2870_s28 + $0xbe8] sm:$0xff]  ;;  %v5931_v28 = vld [vmem:[#allocation108_spill] sm:$0xff] }
 0x26b   : > { %2207 = vst [vmem:[%s2934_s21 + $0xaf0] sm:$0xff] %v1695_v31  ;;  %v1711_v31 = vmul.f32 %v1199_v27, %v5916_v2  ;;  %v1215_v27 = vld [vmem:[%s2870_s28 + $0xbf0] sm:$0xff]  ;;  %v5932_v2 = vld [vmem:[#allocation109_spill] sm:$0xff] }
 0x26c   : > { %2208 = vst [vmem:[%s2934_s21 + $0xaf8] sm:$0xff] %v1696_v17  ;;  %v1712_v17 = vmul.f32 %v1200_v56, %v5917_v11  ;;  %v1216_v56 = vld [vmem:[%s2870_s28 + $0xbf8] sm:$0xff]  ;;  %v5933_v11 = vld [vmem:[#allocation110_spill] sm:$0xff] }
 0x26d   : > { %2209 = vst [vmem:[%s2934_s21 + $0xb00] sm:$0xff] %v1697_v14  ;;  %v1713_v14 = vmul.f32 %v1201_v47, %v5918_v26  ;;  %v1217_v47 = vld [vmem:[%s2870_s28 + $0xc00] sm:$0xff]  ;;  %v5934_v26 = vld [vmem:[#allocation111_spill] sm:$0xff] }
 0x26e   : > { %2210 = vst [vmem:[%s2934_s21 + $0xb08] sm:$0xff] %v1698_v40  ;;  %v1714_v40 = vmul.f32 %v1202_v9, %v5919_v42  ;;  %v1218_v9 = vld [vmem:[%s2870_s28 + $0xc08] sm:$0xff]  ;;  %v5935_v42 = vld [vmem:[#allocation112_spill] sm:$0xff] }
 0x26f   : > { %2211 = vst [vmem:[%s2934_s21 + $0xb10] sm:$0xff] %v1699_v32  ;;  %v1715_v32 = vmul.f32 %v1203_v41, %v5920_v38  ;;  %v1219_v41 = vld [vmem:[%s2870_s28 + $0xc10] sm:$0xff]  ;;  %v5936_v38 = vld [vmem:[#allocation113_spill] sm:$0xff] }
 0x270   : > { %2212 = vst [vmem:[%s2934_s21 + $0xb18] sm:$0xff] %v1700_v22  ;;  %v1716_v22 = vmul.f32 %v1204_v34, %v5921_v39  ;;  %v1220_v34 = vld [vmem:[%s2870_s28 + $0xc18] sm:$0xff]  ;;  %v5937_v39 = vld [vmem:[#allocation114_spill] sm:$0xff] }
 0x271   : > { %2213 = vst [vmem:[%s2934_s21 + $0xb20] sm:$0xff] %v1701_v29  ;;  %v1717_v29 = vmul.f32 %v1205_v46, %v5922_v44  ;;  %v1221_v46 = vld [vmem:[%s2870_s28 + $0xc20] sm:$0xff]  ;;  %v5938_v44 = vld [vmem:[#allocation115_spill] sm:$0xff] }
 0x272   : > { %2214 = vst [vmem:[%s2934_s21 + $0xb28] sm:$0xff] %v1702_v57  ;;  %v1718_v57 = vmul.f32 %v1206_v0, %v5923_v21  ;;  %v1222_v0 = vld [vmem:[%s2870_s28 + $0xc28] sm:$0xff]  ;;  %v5939_v21 = vld [vmem:[#allocation116_spill] sm:$0xff] }
 0x273   : > { %2215 = vst [vmem:[%s2934_s21 + $0xb30] sm:$0xff] %v1703_v50  ;;  %v1719_v50 = vmul.f32 %v1207_v59, %v5924_v61  ;;  %v1223_v59 = vld [vmem:[%s2870_s28 + $0xc30] sm:$0xff]  ;;  %v5940_v61 = vld [vmem:[#allocation117_spill] sm:$0xff] }
 0x274   : > { %2216 = vst [vmem:[%s2934_s21 + $0xb38] sm:$0xff] %v1704_v10  ;;  %v1720_v10 = vmul.f32 %v1208_v55, %v5925_v20  ;;  %v1224_v55 = vld [vmem:[%s2870_s28 + $0xc38] sm:$0xff]  ;;  %v5941_v20 = vld [vmem:[#allocation118_spill] sm:$0xff] }
 0x275   : > { %2217 = vst [vmem:[%s2934_s21 + $0xb40] sm:$0xff] %v1705_v53  ;;  %v1721_v53 = vmul.f32 %v1209_v62, %v5926_v15  ;;  %v1225_v62 = vld [vmem:[%s2870_s28 + $0xc40] sm:$0xff]  ;;  %v5942_v15 = vld [vmem:[#allocation119_spill] sm:$0xff] }
 0x276   : > { %2218 = vst [vmem:[%s2934_s21 + $0xb48] sm:$0xff] %v1706_v30  ;;  %v1722_v30 = vmul.f32 %v1210_v3, %v5927_v13  ;;  %v1226_v3 = vld [vmem:[%s2870_s28 + $0xc48] sm:$0xff]  ;;  %v5943_v13 = vld [vmem:[#allocation120_spill] sm:$0xff] }
 0x277   : > { %2219 = vst [vmem:[%s2934_s21 + $0xb50] sm:$0xff] %v1707_v19  ;;  %v1723_v19 = vmul.f32 %v1211_v12, %v5928_v35  ;;  %v1227_v12 = vld [vmem:[%s2870_s28 + $0xc50] sm:$0xff]  ;;  %v5944_v35 = vld [vmem:[#allocation121_spill] sm:$0xff] }
 0x278   : > { %2220 = vst [vmem:[%s2934_s21 + $0xb58] sm:$0xff] %v1708_v48  ;;  %v1724_v48 = vmul.f32 %v1212_v24, %v5929_v16  ;;  %v1228_v24 = vld [vmem:[%s2870_s28 + $0xc58] sm:$0xff]  ;;  %v5945_v16 = vld [vmem:[#allocation122_spill] sm:$0xff] }
 0x279   : > { %2221 = vst [vmem:[%s2934_s21 + $0xb60] sm:$0xff] %v1709_v1  ;;  %v1725_v1 = vmul.f32 %v1213_v36, %v5930_v52  ;;  %v1229_v36 = vld [vmem:[%s2870_s28 + $0xc60] sm:$0xff]  ;;  %v5946_v52 = vld [vmem:[#allocation123_spill] sm:$0xff] }
 0x27a   : > { %2222 = vst [vmem:[%s2934_s21 + $0xb68] sm:$0xff] %v1710_v60  ;;  %v1726_v60 = vmul.f32 %v1214_v43, %v5931_v28  ;;  %v1230_v43 = vld [vmem:[%s2870_s28 + $0xc68] sm:$0xff]  ;;  %v5947_v28 = vld [vmem:[#allocation124_spill] sm:$0xff] }
 0x27b   : > { %2223 = vst [vmem:[%s2934_s21 + $0xb70] sm:$0xff] %v1711_v31  ;;  %v1727_v31 = vmul.f32 %v1215_v27, %v5932_v2  ;;  %v1231_v27 = vld [vmem:[%s2870_s28 + $0xc70] sm:$0xff]  ;;  %v5948_v2 = vld [vmem:[#allocation125_spill] sm:$0xff] }
 0x27c   : > { %2224 = vst [vmem:[%s2934_s21 + $0xb78] sm:$0xff] %v1712_v17  ;;  %v1728_v17 = vmul.f32 %v1216_v56, %v5933_v11  ;;  %v1232_v56 = vld [vmem:[%s2870_s28 + $0xc78] sm:$0xff]  ;;  %v5949_v11 = vld [vmem:[#allocation126_spill] sm:$0xff] }
 0x27d   : > { %2225 = vst [vmem:[%s2934_s21 + $0xb80] sm:$0xff] %v1713_v14  ;;  %v1729_v14 = vmul.f32 %v1217_v47, %v5934_v26  ;;  %v1233_v47 = vld [vmem:[%s2870_s28 + $0xc80] sm:$0xff]  ;;  %v5950_v26 = vld [vmem:[#allocation127_spill] sm:$0xff] }
 0x27e   : > { %2226 = vst [vmem:[%s2934_s21 + $0xb88] sm:$0xff] %v1714_v40  ;;  %v1730_v40 = vmul.f32 %v1218_v9, %v5935_v42  ;;  %v1234_v9 = vld [vmem:[%s2870_s28 + $0xc88] sm:$0xff]  ;;  %v5951_v42 = vld [vmem:[#allocation128_spill] sm:$0xff] }
 0x27f   : > { %2227 = vst [vmem:[%s2934_s21 + $0xb90] sm:$0xff] %v1715_v32  ;;  %v1731_v32 = vmul.f32 %v1219_v41, %v5936_v38  ;;  %v1235_v41 = vld [vmem:[%s2870_s28 + $0xc90] sm:$0xff]  ;;  %v5952_v38 = vld [vmem:[#allocation129_spill] sm:$0xff] }
 0x280   : > { %2228 = vst [vmem:[%s2934_s21 + $0xb98] sm:$0xff] %v1716_v22  ;;  %v1732_v22 = vmul.f32 %v1220_v34, %v5937_v39  ;;  %v1236_v34 = vld [vmem:[%s2870_s28 + $0xc98] sm:$0xff]  ;;  %v5953_v39 = vld [vmem:[#allocation130_spill] sm:$0xff] }
 0x281   : > { %2229 = vst [vmem:[%s2934_s21 + $0xba0] sm:$0xff] %v1717_v29  ;;  %v1733_v29 = vmul.f32 %v1221_v46, %v5938_v44  ;;  %v1237_v46 = vld [vmem:[%s2870_s28 + $0xca0] sm:$0xff]  ;;  %v5954_v44 = vld [vmem:[#allocation131_spill] sm:$0xff] }
 0x282   : > { %2230 = vst [vmem:[%s2934_s21 + $0xba8] sm:$0xff] %v1718_v57  ;;  %v1734_v57 = vmul.f32 %v1222_v0, %v5939_v21  ;;  %v1238_v0 = vld [vmem:[%s2870_s28 + $0xca8] sm:$0xff]  ;;  %v5955_v21 = vld [vmem:[#allocation132_spill] sm:$0xff] }
 0x283   : > { %2231 = vst [vmem:[%s2934_s21 + $0xbb0] sm:$0xff] %v1719_v50  ;;  %v1735_v50 = vmul.f32 %v1223_v59, %v5940_v61  ;;  %v1239_v59 = vld [vmem:[%s2870_s28 + $0xcb0] sm:$0xff]  ;;  %v5956_v61 = vld [vmem:[#allocation133_spill] sm:$0xff] }
 0x284   : > { %2232 = vst [vmem:[%s2934_s21 + $0xbb8] sm:$0xff] %v1720_v10  ;;  %v1736_v10 = vmul.f32 %v1224_v55, %v5941_v20  ;;  %v1240_v55 = vld [vmem:[%s2870_s28 + $0xcb8] sm:$0xff]  ;;  %v5957_v20 = vld [vmem:[#allocation134_spill] sm:$0xff] }
 0x285   : > { %2233 = vst [vmem:[%s2934_s21 + $0xbc0] sm:$0xff] %v1721_v53  ;;  %v1737_v53 = vmul.f32 %v1225_v62, %v5942_v15  ;;  %v1241_v62 = vld [vmem:[%s2870_s28 + $0xcc0] sm:$0xff]  ;;  %v5958_v15 = vld [vmem:[#allocation135_spill] sm:$0xff] }
 0x286   : > { %2234 = vst [vmem:[%s2934_s21 + $0xbc8] sm:$0xff] %v1722_v30  ;;  %v1738_v30 = vmul.f32 %v1226_v3, %v5943_v13  ;;  %v1242_v3 = vld [vmem:[%s2870_s28 + $0xcc8] sm:$0xff]  ;;  %v5959_v13 = vld [vmem:[#allocation136_spill] sm:$0xff] }
 0x287   : > { %2235 = vst [vmem:[%s2934_s21 + $0xbd0] sm:$0xff] %v1723_v19  ;;  %v1739_v19 = vmul.f32 %v1227_v12, %v5944_v35  ;;  %v1243_v12 = vld [vmem:[%s2870_s28 + $0xcd0] sm:$0xff]  ;;  %v5960_v35 = vld [vmem:[#allocation137_spill] sm:$0xff] }
 0x288   : > { %2236 = vst [vmem:[%s2934_s21 + $0xbd8] sm:$0xff] %v1724_v48  ;;  %v1740_v48 = vmul.f32 %v1228_v24, %v5945_v16  ;;  %v1244_v24 = vld [vmem:[%s2870_s28 + $0xcd8] sm:$0xff]  ;;  %v5961_v16 = vld [vmem:[#allocation138_spill] sm:$0xff] }
 0x289   : > { %2237 = vst [vmem:[%s2934_s21 + $0xbe0] sm:$0xff] %v1725_v1  ;;  %v1741_v1 = vmul.f32 %v1229_v36, %v5946_v52  ;;  %v1245_v36 = vld [vmem:[%s2870_s28 + $0xce0] sm:$0xff]  ;;  %v5962_v52 = vld [vmem:[#allocation139_spill] sm:$0xff] }
 0x28a   : > { %2238 = vst [vmem:[%s2934_s21 + $0xbe8] sm:$0xff] %v1726_v60  ;;  %v1742_v60 = vmul.f32 %v1230_v43, %v5947_v28  ;;  %v1246_v43 = vld [vmem:[%s2870_s28 + $0xce8] sm:$0xff]  ;;  %v5963_v28 = vld [vmem:[#allocation140_spill] sm:$0xff] }
 0x28b   : > { %2239 = vst [vmem:[%s2934_s21 + $0xbf0] sm:$0xff] %v1727_v31  ;;  %v1743_v31 = vmul.f32 %v1231_v27, %v5948_v2  ;;  %v1247_v27 = vld [vmem:[%s2870_s28 + $0xcf0] sm:$0xff]  ;;  %v5964_v2 = vld [vmem:[#allocation141_spill] sm:$0xff] }
 0x28c   : > { %2240 = vst [vmem:[%s2934_s21 + $0xbf8] sm:$0xff] %v1728_v17  ;;  %v1744_v17 = vmul.f32 %v1232_v56, %v5949_v11  ;;  %v1248_v56 = vld [vmem:[%s2870_s28 + $0xcf8] sm:$0xff]  ;;  %v5965_v11 = vld [vmem:[#allocation142_spill] sm:$0xff] }
 0x28d   : > { %2241 = vst [vmem:[%s2934_s21 + $0xc00] sm:$0xff] %v1729_v14  ;;  %v1745_v14 = vmul.f32 %v1233_v47, %v5950_v26  ;;  %v1249_v47 = vld [vmem:[%s2870_s28 + $0xd00] sm:$0xff]  ;;  %v5966_v26 = vld [vmem:[#allocation143_spill] sm:$0xff] }
 0x28e   : > { %2242 = vst [vmem:[%s2934_s21 + $0xc08] sm:$0xff] %v1730_v40  ;;  %v1746_v40 = vmul.f32 %v1234_v9, %v5951_v42  ;;  %v1250_v9 = vld [vmem:[%s2870_s28 + $0xd08] sm:$0xff]  ;;  %v5967_v42 = vld [vmem:[#allocation144_spill] sm:$0xff] }
 0x28f   : > { %2243 = vst [vmem:[%s2934_s21 + $0xc10] sm:$0xff] %v1731_v32  ;;  %v1747_v32 = vmul.f32 %v1235_v41, %v5952_v38  ;;  %v1251_v41 = vld [vmem:[%s2870_s28 + $0xd10] sm:$0xff]  ;;  %v5968_v38 = vld [vmem:[#allocation145_spill] sm:$0xff] }
 0x290   : > { %2244 = vst [vmem:[%s2934_s21 + $0xc18] sm:$0xff] %v1732_v22  ;;  %v1748_v22 = vmul.f32 %v1236_v34, %v5953_v39  ;;  %v1252_v34 = vld [vmem:[%s2870_s28 + $0xd18] sm:$0xff]  ;;  %v5969_v39 = vld [vmem:[#allocation146_spill] sm:$0xff] }
 0x291   : > { %2245 = vst [vmem:[%s2934_s21 + $0xc20] sm:$0xff] %v1733_v29  ;;  %v1749_v29 = vmul.f32 %v1237_v46, %v5954_v44  ;;  %v1253_v46 = vld [vmem:[%s2870_s28 + $0xd20] sm:$0xff]  ;;  %v5970_v44 = vld [vmem:[#allocation147_spill] sm:$0xff] }
 0x292   : > { %2246 = vst [vmem:[%s2934_s21 + $0xc28] sm:$0xff] %v1734_v57  ;;  %v1750_v57 = vmul.f32 %v1238_v0, %v5955_v21  ;;  %v1254_v0 = vld [vmem:[%s2870_s28 + $0xd28] sm:$0xff]  ;;  %v5971_v21 = vld [vmem:[#allocation148_spill] sm:$0xff] }
 0x293   : > { %2247 = vst [vmem:[%s2934_s21 + $0xc30] sm:$0xff] %v1735_v50  ;;  %v1751_v50 = vmul.f32 %v1239_v59, %v5956_v61  ;;  %v1255_v59 = vld [vmem:[%s2870_s28 + $0xd30] sm:$0xff]  ;;  %v5972_v61 = vld [vmem:[#allocation149_spill] sm:$0xff] }
 0x294   : > { %2248 = vst [vmem:[%s2934_s21 + $0xc38] sm:$0xff] %v1736_v10  ;;  %v1752_v10 = vmul.f32 %v1240_v55, %v5957_v20  ;;  %v1256_v55 = vld [vmem:[%s2870_s28 + $0xd38] sm:$0xff]  ;;  %v5973_v20 = vld [vmem:[#allocation150_spill] sm:$0xff] }
 0x295   : > { %2249 = vst [vmem:[%s2934_s21 + $0xc40] sm:$0xff] %v1737_v53  ;;  %v1753_v53 = vmul.f32 %v1241_v62, %v5958_v15  ;;  %v1257_v62 = vld [vmem:[%s2870_s28 + $0xd40] sm:$0xff]  ;;  %v5974_v15 = vld [vmem:[#allocation151_spill] sm:$0xff] }
 0x296   : > { %2250 = vst [vmem:[%s2934_s21 + $0xc48] sm:$0xff] %v1738_v30  ;;  %v1754_v30 = vmul.f32 %v1242_v3, %v5959_v13  ;;  %v1258_v3 = vld [vmem:[%s2870_s28 + $0xd48] sm:$0xff]  ;;  %v5975_v13 = vld [vmem:[#allocation152_spill] sm:$0xff] }
 0x297   : > { %2251 = vst [vmem:[%s2934_s21 + $0xc50] sm:$0xff] %v1739_v19  ;;  %v1755_v19 = vmul.f32 %v1243_v12, %v5960_v35  ;;  %v1259_v12 = vld [vmem:[%s2870_s28 + $0xd50] sm:$0xff]  ;;  %v5976_v35 = vld [vmem:[#allocation153_spill] sm:$0xff] }
 0x298   : > { %2252 = vst [vmem:[%s2934_s21 + $0xc58] sm:$0xff] %v1740_v48  ;;  %v1756_v48 = vmul.f32 %v1244_v24, %v5961_v16  ;;  %v1260_v24 = vld [vmem:[%s2870_s28 + $0xd58] sm:$0xff]  ;;  %v5977_v16 = vld [vmem:[#allocation154_spill] sm:$0xff] }
 0x299   : > { %2253 = vst [vmem:[%s2934_s21 + $0xc60] sm:$0xff] %v1741_v1  ;;  %v1757_v1 = vmul.f32 %v1245_v36, %v5962_v52  ;;  %v1261_v36 = vld [vmem:[%s2870_s28 + $0xd60] sm:$0xff]  ;;  %v5978_v52 = vld [vmem:[#allocation155_spill] sm:$0xff] }
 0x29a   : > { %2254 = vst [vmem:[%s2934_s21 + $0xc68] sm:$0xff] %v1742_v60  ;;  %v1758_v60 = vmul.f32 %v1246_v43, %v5963_v28  ;;  %v1262_v43 = vld [vmem:[%s2870_s28 + $0xd68] sm:$0xff]  ;;  %v5979_v28 = vld [vmem:[#allocation156_spill] sm:$0xff] }
 0x29b   : > { %2255 = vst [vmem:[%s2934_s21 + $0xc70] sm:$0xff] %v1743_v31  ;;  %v1759_v31 = vmul.f32 %v1247_v27, %v5964_v2  ;;  %v1263_v27 = vld [vmem:[%s2870_s28 + $0xd70] sm:$0xff]  ;;  %v5980_v2 = vld [vmem:[#allocation157_spill] sm:$0xff] }
 0x29c   : > { %2256 = vst [vmem:[%s2934_s21 + $0xc78] sm:$0xff] %v1744_v17  ;;  %v1760_v17 = vmul.f32 %v1248_v56, %v5965_v11  ;;  %v1264_v56 = vld [vmem:[%s2870_s28 + $0xd78] sm:$0xff]  ;;  %v5981_v11 = vld [vmem:[#allocation158_spill] sm:$0xff] }
 0x29d   : > { %2257 = vst [vmem:[%s2934_s21 + $0xc80] sm:$0xff] %v1745_v14  ;;  %v1761_v14 = vmul.f32 %v1249_v47, %v5966_v26  ;;  %v1265_v47 = vld [vmem:[%s2870_s28 + $0xd80] sm:$0xff]  ;;  %v5982_v26 = vld [vmem:[#allocation159_spill] sm:$0xff] }
 0x29e   : > { %2258 = vst [vmem:[%s2934_s21 + $0xc88] sm:$0xff] %v1746_v40  ;;  %v1762_v40 = vmul.f32 %v1250_v9, %v5967_v42  ;;  %v1266_v9 = vld [vmem:[%s2870_s28 + $0xd88] sm:$0xff]  ;;  %v5983_v42 = vld [vmem:[#allocation160_spill] sm:$0xff] }
 0x29f   : > { %2259 = vst [vmem:[%s2934_s21 + $0xc90] sm:$0xff] %v1747_v32  ;;  %v1763_v32 = vmul.f32 %v1251_v41, %v5968_v38  ;;  %v1267_v41 = vld [vmem:[%s2870_s28 + $0xd90] sm:$0xff]  ;;  %v5984_v38 = vld [vmem:[#allocation161_spill] sm:$0xff] }
 0x2a0   : > { %2260 = vst [vmem:[%s2934_s21 + $0xc98] sm:$0xff] %v1748_v22  ;;  %v1764_v22 = vmul.f32 %v1252_v34, %v5969_v39  ;;  %v1268_v34 = vld [vmem:[%s2870_s28 + $0xd98] sm:$0xff]  ;;  %v5985_v39 = vld [vmem:[#allocation162_spill] sm:$0xff] }
 0x2a1   : > { %2261 = vst [vmem:[%s2934_s21 + $0xca0] sm:$0xff] %v1749_v29  ;;  %v1765_v29 = vmul.f32 %v1253_v46, %v5970_v44  ;;  %v1269_v46 = vld [vmem:[%s2870_s28 + $0xda0] sm:$0xff]  ;;  %v5986_v44 = vld [vmem:[#allocation163_spill] sm:$0xff] }
 0x2a2   : > { %2262 = vst [vmem:[%s2934_s21 + $0xca8] sm:$0xff] %v1750_v57  ;;  %v1766_v57 = vmul.f32 %v1254_v0, %v5971_v21  ;;  %v1270_v0 = vld [vmem:[%s2870_s28 + $0xda8] sm:$0xff]  ;;  %v5987_v21 = vld [vmem:[#allocation164_spill] sm:$0xff] }
 0x2a3   : > { %2263 = vst [vmem:[%s2934_s21 + $0xcb0] sm:$0xff] %v1751_v50  ;;  %v1767_v50 = vmul.f32 %v1255_v59, %v5972_v61  ;;  %v1271_v59 = vld [vmem:[%s2870_s28 + $0xdb0] sm:$0xff]  ;;  %v5988_v61 = vld [vmem:[#allocation165_spill] sm:$0xff] }
 0x2a4   : > { %2264 = vst [vmem:[%s2934_s21 + $0xcb8] sm:$0xff] %v1752_v10  ;;  %v1768_v10 = vmul.f32 %v1256_v55, %v5973_v20  ;;  %v1272_v55 = vld [vmem:[%s2870_s28 + $0xdb8] sm:$0xff]  ;;  %v5989_v20 = vld [vmem:[#allocation166_spill] sm:$0xff] }
 0x2a5   : > { %2265 = vst [vmem:[%s2934_s21 + $0xcc0] sm:$0xff] %v1753_v53  ;;  %v1769_v53 = vmul.f32 %v1257_v62, %v5974_v15  ;;  %v1273_v62 = vld [vmem:[%s2870_s28 + $0xdc0] sm:$0xff]  ;;  %v5990_v15 = vld [vmem:[#allocation167_spill] sm:$0xff] }
 0x2a6   : > { %2266 = vst [vmem:[%s2934_s21 + $0xcc8] sm:$0xff] %v1754_v30  ;;  %v1770_v30 = vmul.f32 %v1258_v3, %v5975_v13  ;;  %v1274_v3 = vld [vmem:[%s2870_s28 + $0xdc8] sm:$0xff]  ;;  %v5991_v13 = vld [vmem:[#allocation168_spill] sm:$0xff] }
 0x2a7   : > { %2267 = vst [vmem:[%s2934_s21 + $0xcd0] sm:$0xff] %v1755_v19  ;;  %v1771_v19 = vmul.f32 %v1259_v12, %v5976_v35  ;;  %v1275_v12 = vld [vmem:[%s2870_s28 + $0xdd0] sm:$0xff]  ;;  %v5992_v35 = vld [vmem:[#allocation169_spill] sm:$0xff] }
 0x2a8   : > { %2268 = vst [vmem:[%s2934_s21 + $0xcd8] sm:$0xff] %v1756_v48  ;;  %v1772_v48 = vmul.f32 %v1260_v24, %v5977_v16  ;;  %v1276_v24 = vld [vmem:[%s2870_s28 + $0xdd8] sm:$0xff]  ;;  %v5993_v16 = vld [vmem:[#allocation170_spill] sm:$0xff] }
 0x2a9   : > { %2269 = vst [vmem:[%s2934_s21 + $0xce0] sm:$0xff] %v1757_v1  ;;  %v1773_v1 = vmul.f32 %v1261_v36, %v5978_v52  ;;  %v1277_v36 = vld [vmem:[%s2870_s28 + $0xde0] sm:$0xff]  ;;  %v5994_v52 = vld [vmem:[#allocation171_spill] sm:$0xff] }
 0x2aa   : > { %2270 = vst [vmem:[%s2934_s21 + $0xce8] sm:$0xff] %v1758_v60  ;;  %v1774_v60 = vmul.f32 %v1262_v43, %v5979_v28  ;;  %v1278_v43 = vld [vmem:[%s2870_s28 + $0xde8] sm:$0xff]  ;;  %v5995_v28 = vld [vmem:[#allocation172_spill] sm:$0xff] }
 0x2ab   : > { %2271 = vst [vmem:[%s2934_s21 + $0xcf0] sm:$0xff] %v1759_v31  ;;  %v1775_v31 = vmul.f32 %v1263_v27, %v5980_v2  ;;  %v1279_v27 = vld [vmem:[%s2870_s28 + $0xdf0] sm:$0xff]  ;;  %v5996_v2 = vld [vmem:[#allocation173_spill] sm:$0xff] }
 0x2ac   : > { %2272 = vst [vmem:[%s2934_s21 + $0xcf8] sm:$0xff] %v1760_v17  ;;  %v1776_v17 = vmul.f32 %v1264_v56, %v5981_v11  ;;  %v1280_v56 = vld [vmem:[%s2870_s28 + $0xdf8] sm:$0xff]  ;;  %v5997_v11 = vld [vmem:[#allocation174_spill] sm:$0xff] }
 0x2ad   : > { %2273 = vst [vmem:[%s2934_s21 + $0xd00] sm:$0xff] %v1761_v14  ;;  %v1777_v14 = vmul.f32 %v1265_v47, %v5982_v26  ;;  %v1281_v47 = vld [vmem:[%s2870_s28 + $0xe00] sm:$0xff]  ;;  %v5998_v26 = vld [vmem:[#allocation175_spill] sm:$0xff] }
 0x2ae   : > { %2274 = vst [vmem:[%s2934_s21 + $0xd08] sm:$0xff] %v1762_v40  ;;  %v1778_v40 = vmul.f32 %v1266_v9, %v5983_v42  ;;  %v1282_v9 = vld [vmem:[%s2870_s28 + $0xe08] sm:$0xff]  ;;  %v5999_v42 = vld [vmem:[#allocation176_spill] sm:$0xff] }
 0x2af   : > { %2275 = vst [vmem:[%s2934_s21 + $0xd10] sm:$0xff] %v1763_v32  ;;  %v1779_v32 = vmul.f32 %v1267_v41, %v5984_v38  ;;  %v1283_v41 = vld [vmem:[%s2870_s28 + $0xe10] sm:$0xff]  ;;  %v6000_v38 = vld [vmem:[#allocation177_spill] sm:$0xff] }
 0x2b0   : > { %2276 = vst [vmem:[%s2934_s21 + $0xd18] sm:$0xff] %v1764_v22  ;;  %v1780_v22 = vmul.f32 %v1268_v34, %v5985_v39  ;;  %v1284_v34 = vld [vmem:[%s2870_s28 + $0xe18] sm:$0xff]  ;;  %v6001_v39 = vld [vmem:[#allocation178_spill] sm:$0xff] }
 0x2b1   : > { %2277 = vst [vmem:[%s2934_s21 + $0xd20] sm:$0xff] %v1765_v29  ;;  %v1781_v29 = vmul.f32 %v1269_v46, %v5986_v44  ;;  %v1285_v46 = vld [vmem:[%s2870_s28 + $0xe20] sm:$0xff]  ;;  %v6002_v44 = vld [vmem:[#allocation179_spill] sm:$0xff] }
 0x2b2   : > { %2278 = vst [vmem:[%s2934_s21 + $0xd28] sm:$0xff] %v1766_v57  ;;  %v1782_v57 = vmul.f32 %v1270_v0, %v5987_v21  ;;  %v1286_v0 = vld [vmem:[%s2870_s28 + $0xe28] sm:$0xff]  ;;  %v6003_v21 = vld [vmem:[#allocation180_spill] sm:$0xff] }
 0x2b3   : > { %2279 = vst [vmem:[%s2934_s21 + $0xd30] sm:$0xff] %v1767_v50  ;;  %v1783_v50 = vmul.f32 %v1271_v59, %v5988_v61  ;;  %v1287_v59 = vld [vmem:[%s2870_s28 + $0xe30] sm:$0xff]  ;;  %v6004_v61 = vld [vmem:[#allocation181_spill] sm:$0xff] }
 0x2b4   : > { %2280 = vst [vmem:[%s2934_s21 + $0xd38] sm:$0xff] %v1768_v10  ;;  %v1784_v10 = vmul.f32 %v1272_v55, %v5989_v20  ;;  %v1288_v55 = vld [vmem:[%s2870_s28 + $0xe38] sm:$0xff]  ;;  %v6005_v20 = vld [vmem:[#allocation182_spill] sm:$0xff] }
 0x2b5   : > { %2281 = vst [vmem:[%s2934_s21 + $0xd40] sm:$0xff] %v1769_v53  ;;  %v1785_v53 = vmul.f32 %v1273_v62, %v5990_v15  ;;  %v1289_v62 = vld [vmem:[%s2870_s28 + $0xe40] sm:$0xff]  ;;  %v6006_v15 = vld [vmem:[#allocation183_spill] sm:$0xff] }
 0x2b6   : > { %2282 = vst [vmem:[%s2934_s21 + $0xd48] sm:$0xff] %v1770_v30  ;;  %v1786_v30 = vmul.f32 %v1274_v3, %v5991_v13  ;;  %v1290_v3 = vld [vmem:[%s2870_s28 + $0xe48] sm:$0xff]  ;;  %v6007_v13 = vld [vmem:[#allocation184_spill] sm:$0xff] }
 0x2b7   : > { %2283 = vst [vmem:[%s2934_s21 + $0xd50] sm:$0xff] %v1771_v19  ;;  %v1787_v19 = vmul.f32 %v1275_v12, %v5992_v35  ;;  %v1291_v12 = vld [vmem:[%s2870_s28 + $0xe50] sm:$0xff]  ;;  %v6008_v35 = vld [vmem:[#allocation185_spill] sm:$0xff] }
 0x2b8   : > { %2284 = vst [vmem:[%s2934_s21 + $0xd58] sm:$0xff] %v1772_v48  ;;  %v1788_v48 = vmul.f32 %v1276_v24, %v5993_v16  ;;  %v1292_v24 = vld [vmem:[%s2870_s28 + $0xe58] sm:$0xff]  ;;  %v6009_v16 = vld [vmem:[#allocation186_spill] sm:$0xff] }
 0x2b9   : > { %2285 = vst [vmem:[%s2934_s21 + $0xd60] sm:$0xff] %v1773_v1  ;;  %v1789_v1 = vmul.f32 %v1277_v36, %v5994_v52  ;;  %v1293_v36 = vld [vmem:[%s2870_s28 + $0xe60] sm:$0xff]  ;;  %v6010_v52 = vld [vmem:[#allocation187_spill] sm:$0xff] }
 0x2ba   : > { %2286 = vst [vmem:[%s2934_s21 + $0xd68] sm:$0xff] %v1774_v60  ;;  %v1790_v60 = vmul.f32 %v1278_v43, %v5995_v28  ;;  %v1294_v43 = vld [vmem:[%s2870_s28 + $0xe68] sm:$0xff]  ;;  %v6011_v28 = vld [vmem:[#allocation188_spill] sm:$0xff] }
 0x2bb   : > { %2287 = vst [vmem:[%s2934_s21 + $0xd70] sm:$0xff] %v1775_v31  ;;  %v1791_v31 = vmul.f32 %v1279_v27, %v5996_v2  ;;  %v1295_v27 = vld [vmem:[%s2870_s28 + $0xe70] sm:$0xff]  ;;  %v6012_v2 = vld [vmem:[#allocation189_spill] sm:$0xff] }
 0x2bc   : > { %2288 = vst [vmem:[%s2934_s21 + $0xd78] sm:$0xff] %v1776_v17  ;;  %v1792_v17 = vmul.f32 %v1280_v56, %v5997_v11  ;;  %v1296_v56 = vld [vmem:[%s2870_s28 + $0xe78] sm:$0xff]  ;;  %v6013_v11 = vld [vmem:[#allocation190_spill] sm:$0xff] }
 0x2bd   : > { %2289 = vst [vmem:[%s2934_s21 + $0xd80] sm:$0xff] %v1777_v14  ;;  %v1793_v14 = vmul.f32 %v1281_v47, %v5998_v26  ;;  %v1297_v47 = vld [vmem:[%s2870_s28 + $0xe80] sm:$0xff]  ;;  %v6014_v26 = vld [vmem:[#allocation191_spill] sm:$0xff] }
 0x2be   : > { %2290 = vst [vmem:[%s2934_s21 + $0xd88] sm:$0xff] %v1778_v40  ;;  %v1794_v40 = vmul.f32 %v1282_v9, %v5999_v42  ;;  %v1298_v9 = vld [vmem:[%s2870_s28 + $0xe88] sm:$0xff]  ;;  %v6015_v42 = vld [vmem:[#allocation192_spill] sm:$0xff] }
 0x2bf   : > { %2291 = vst [vmem:[%s2934_s21 + $0xd90] sm:$0xff] %v1779_v32  ;;  %v1795_v32 = vmul.f32 %v1283_v41, %v6000_v38  ;;  %v1299_v41 = vld [vmem:[%s2870_s28 + $0xe90] sm:$0xff]  ;;  %v6016_v38 = vld [vmem:[#allocation193_spill] sm:$0xff] }
 0x2c0   : > { %2292 = vst [vmem:[%s2934_s21 + $0xd98] sm:$0xff] %v1780_v22  ;;  %v1796_v22 = vmul.f32 %v1284_v34, %v6001_v39  ;;  %v1300_v34 = vld [vmem:[%s2870_s28 + $0xe98] sm:$0xff]  ;;  %v6017_v39 = vld [vmem:[#allocation194_spill] sm:$0xff] }
 0x2c1   : > { %2293 = vst [vmem:[%s2934_s21 + $0xda0] sm:$0xff] %v1781_v29  ;;  %v1797_v29 = vmul.f32 %v1285_v46, %v6002_v44  ;;  %v1301_v46 = vld [vmem:[%s2870_s28 + $0xea0] sm:$0xff]  ;;  %v6018_v44 = vld [vmem:[#allocation195_spill] sm:$0xff] }
 0x2c2   : > { %2294 = vst [vmem:[%s2934_s21 + $0xda8] sm:$0xff] %v1782_v57  ;;  %v1798_v57 = vmul.f32 %v1286_v0, %v6003_v21  ;;  %v1302_v0 = vld [vmem:[%s2870_s28 + $0xea8] sm:$0xff]  ;;  %v6019_v21 = vld [vmem:[#allocation196_spill] sm:$0xff] }
 0x2c3   : > { %2295 = vst [vmem:[%s2934_s21 + $0xdb0] sm:$0xff] %v1783_v50  ;;  %v1799_v50 = vmul.f32 %v1287_v59, %v6004_v61  ;;  %v1303_v59 = vld [vmem:[%s2870_s28 + $0xeb0] sm:$0xff]  ;;  %v6020_v61 = vld [vmem:[#allocation197_spill] sm:$0xff] }
 0x2c4   : > { %2296 = vst [vmem:[%s2934_s21 + $0xdb8] sm:$0xff] %v1784_v10  ;;  %v1800_v10 = vmul.f32 %v1288_v55, %v6005_v20  ;;  %v1304_v55 = vld [vmem:[%s2870_s28 + $0xeb8] sm:$0xff]  ;;  %v6021_v20 = vld [vmem:[#allocation198_spill] sm:$0xff] }
 0x2c5   : > { %2297 = vst [vmem:[%s2934_s21 + $0xdc0] sm:$0xff] %v1785_v53  ;;  %v1801_v53 = vmul.f32 %v1289_v62, %v6006_v15  ;;  %v1305_v62 = vld [vmem:[%s2870_s28 + $0xec0] sm:$0xff]  ;;  %v6022_v15 = vld [vmem:[#allocation199_spill] sm:$0xff] }
 0x2c6   : > { %2298 = vst [vmem:[%s2934_s21 + $0xdc8] sm:$0xff] %v1786_v30  ;;  %v1802_v30 = vmul.f32 %v1290_v3, %v6007_v13  ;;  %v1306_v3 = vld [vmem:[%s2870_s28 + $0xec8] sm:$0xff]  ;;  %v6023_v13 = vld [vmem:[#allocation200_spill] sm:$0xff] }
 0x2c7   : > { %2299 = vst [vmem:[%s2934_s21 + $0xdd0] sm:$0xff] %v1787_v19  ;;  %v1803_v19 = vmul.f32 %v1291_v12, %v6008_v35  ;;  %v1307_v12 = vld [vmem:[%s2870_s28 + $0xed0] sm:$0xff]  ;;  %v6024_v35 = vld [vmem:[#allocation201_spill] sm:$0xff] }
 0x2c8   : > { %2300 = vst [vmem:[%s2934_s21 + $0xdd8] sm:$0xff] %v1788_v48  ;;  %v1804_v48 = vmul.f32 %v1292_v24, %v6009_v16  ;;  %v1308_v24 = vld [vmem:[%s2870_s28 + $0xed8] sm:$0xff]  ;;  %v6025_v16 = vld [vmem:[#allocation202_spill] sm:$0xff] }
 0x2c9   : > { %2301 = vst [vmem:[%s2934_s21 + $0xde0] sm:$0xff] %v1789_v1  ;;  %v1805_v1 = vmul.f32 %v1293_v36, %v6010_v52  ;;  %v1309_v36 = vld [vmem:[%s2870_s28 + $0xee0] sm:$0xff]  ;;  %v6026_v52 = vld [vmem:[#allocation203_spill] sm:$0xff] }
 0x2ca   : > { %2302 = vst [vmem:[%s2934_s21 + $0xde8] sm:$0xff] %v1790_v60  ;;  %v1806_v60 = vmul.f32 %v1294_v43, %v6011_v28  ;;  %v1310_v43 = vld [vmem:[%s2870_s28 + $0xee8] sm:$0xff]  ;;  %v6027_v28 = vld [vmem:[#allocation204_spill] sm:$0xff] }
 0x2cb   : > { %2303 = vst [vmem:[%s2934_s21 + $0xdf0] sm:$0xff] %v1791_v31  ;;  %v1807_v31 = vmul.f32 %v1295_v27, %v6012_v2  ;;  %v1311_v27 = vld [vmem:[%s2870_s28 + $0xef0] sm:$0xff]  ;;  %v6028_v2 = vld [vmem:[#allocation205_spill] sm:$0xff] }
 0x2cc   : > { %2304 = vst [vmem:[%s2934_s21 + $0xdf8] sm:$0xff] %v1792_v17  ;;  %v1808_v17 = vmul.f32 %v1296_v56, %v6013_v11  ;;  %v1312_v56 = vld [vmem:[%s2870_s28 + $0xef8] sm:$0xff]  ;;  %v6029_v11 = vld [vmem:[#allocation206_spill] sm:$0xff] }
 0x2cd   : > { %2305 = vst [vmem:[%s2934_s21 + $0xe00] sm:$0xff] %v1793_v14  ;;  %v1809_v14 = vmul.f32 %v1297_v47, %v6014_v26  ;;  %v1313_v47 = vld [vmem:[%s2870_s28 + $0xf00] sm:$0xff]  ;;  %v6030_v26 = vld [vmem:[#allocation207_spill] sm:$0xff] }
 0x2ce   : > { %2306 = vst [vmem:[%s2934_s21 + $0xe08] sm:$0xff] %v1794_v40  ;;  %v1810_v40 = vmul.f32 %v1298_v9, %v6015_v42  ;;  %v1314_v9 = vld [vmem:[%s2870_s28 + $0xf08] sm:$0xff]  ;;  %v6031_v42 = vld [vmem:[#allocation208_spill] sm:$0xff] }
 0x2cf   : > { %2307 = vst [vmem:[%s2934_s21 + $0xe10] sm:$0xff] %v1795_v32  ;;  %v1811_v32 = vmul.f32 %v1299_v41, %v6016_v38  ;;  %v1315_v41 = vld [vmem:[%s2870_s28 + $0xf10] sm:$0xff]  ;;  %v6032_v38 = vld [vmem:[#allocation209_spill] sm:$0xff] }
 0x2d0   : > { %2308 = vst [vmem:[%s2934_s21 + $0xe18] sm:$0xff] %v1796_v22  ;;  %v1812_v22 = vmul.f32 %v1300_v34, %v6017_v39  ;;  %v1316_v34 = vld [vmem:[%s2870_s28 + $0xf18] sm:$0xff]  ;;  %v6033_v39 = vld [vmem:[#allocation210_spill] sm:$0xff] }
 0x2d1   : > { %2309 = vst [vmem:[%s2934_s21 + $0xe20] sm:$0xff] %v1797_v29  ;;  %v1813_v29 = vmul.f32 %v1301_v46, %v6018_v44  ;;  %v1317_v46 = vld [vmem:[%s2870_s28 + $0xf20] sm:$0xff]  ;;  %v6034_v44 = vld [vmem:[#allocation211_spill] sm:$0xff] }
 0x2d2   : > { %2310 = vst [vmem:[%s2934_s21 + $0xe28] sm:$0xff] %v1798_v57  ;;  %v1814_v57 = vmul.f32 %v1302_v0, %v6019_v21  ;;  %v1318_v0 = vld [vmem:[%s2870_s28 + $0xf28] sm:$0xff]  ;;  %v6035_v21 = vld [vmem:[#allocation212_spill] sm:$0xff] }
 0x2d3   : > { %2311 = vst [vmem:[%s2934_s21 + $0xe30] sm:$0xff] %v1799_v50  ;;  %v1815_v50 = vmul.f32 %v1303_v59, %v6020_v61  ;;  %v1319_v59 = vld [vmem:[%s2870_s28 + $0xf30] sm:$0xff]  ;;  %v6036_v61 = vld [vmem:[#allocation213_spill] sm:$0xff] }
 0x2d4   : > { %2312 = vst [vmem:[%s2934_s21 + $0xe38] sm:$0xff] %v1800_v10  ;;  %v1816_v10 = vmul.f32 %v1304_v55, %v6021_v20  ;;  %v1320_v55 = vld [vmem:[%s2870_s28 + $0xf38] sm:$0xff]  ;;  %v6037_v20 = vld [vmem:[#allocation214_spill] sm:$0xff] }
 0x2d5   : > { %2313 = vst [vmem:[%s2934_s21 + $0xe40] sm:$0xff] %v1801_v53  ;;  %v1817_v53 = vmul.f32 %v1305_v62, %v6022_v15  ;;  %v1321_v62 = vld [vmem:[%s2870_s28 + $0xf40] sm:$0xff]  ;;  %v6038_v15 = vld [vmem:[#allocation215_spill] sm:$0xff] }
 0x2d6   : > { %2314 = vst [vmem:[%s2934_s21 + $0xe48] sm:$0xff] %v1802_v30  ;;  %v1818_v30 = vmul.f32 %v1306_v3, %v6023_v13  ;;  %v1322_v3 = vld [vmem:[%s2870_s28 + $0xf48] sm:$0xff]  ;;  %v6039_v13 = vld [vmem:[#allocation216_spill] sm:$0xff] }
 0x2d7   : > { %2315 = vst [vmem:[%s2934_s21 + $0xe50] sm:$0xff] %v1803_v19  ;;  %v1819_v19 = vmul.f32 %v1307_v12, %v6024_v35  ;;  %v1323_v12 = vld [vmem:[%s2870_s28 + $0xf50] sm:$0xff]  ;;  %v6040_v35 = vld [vmem:[#allocation217_spill] sm:$0xff] }
 0x2d8   : > { %2316 = vst [vmem:[%s2934_s21 + $0xe58] sm:$0xff] %v1804_v48  ;;  %v1820_v48 = vmul.f32 %v1308_v24, %v6025_v16  ;;  %v1324_v24 = vld [vmem:[%s2870_s28 + $0xf58] sm:$0xff]  ;;  %v6041_v16 = vld [vmem:[#allocation218_spill] sm:$0xff] }
 0x2d9   : > { %2317 = vst [vmem:[%s2934_s21 + $0xe60] sm:$0xff] %v1805_v1  ;;  %v1821_v1 = vmul.f32 %v1309_v36, %v6026_v52  ;;  %v1325_v36 = vld [vmem:[%s2870_s28 + $0xf60] sm:$0xff]  ;;  %v6042_v52 = vld [vmem:[#allocation219_spill] sm:$0xff] }
 0x2da   : > { %2318 = vst [vmem:[%s2934_s21 + $0xe68] sm:$0xff] %v1806_v60  ;;  %v1822_v60 = vmul.f32 %v1310_v43, %v6027_v28  ;;  %v1326_v43 = vld [vmem:[%s2870_s28 + $0xf68] sm:$0xff]  ;;  %v6043_v28 = vld [vmem:[#allocation220_spill] sm:$0xff] }
 0x2db   : > { %2319 = vst [vmem:[%s2934_s21 + $0xe70] sm:$0xff] %v1807_v31  ;;  %v1823_v31 = vmul.f32 %v1311_v27, %v6028_v2  ;;  %v1327_v27 = vld [vmem:[%s2870_s28 + $0xf70] sm:$0xff]  ;;  %v6044_v2 = vld [vmem:[#allocation221_spill] sm:$0xff] }
 0x2dc   : > { %2320 = vst [vmem:[%s2934_s21 + $0xe78] sm:$0xff] %v1808_v17  ;;  %v1824_v17 = vmul.f32 %v1312_v56, %v6029_v11  ;;  %v1328_v56 = vld [vmem:[%s2870_s28 + $0xf78] sm:$0xff]  ;;  %v6045_v11 = vld [vmem:[#allocation222_spill] sm:$0xff] }
 0x2dd   : > { %2321 = vst [vmem:[%s2934_s21 + $0xe80] sm:$0xff] %v1809_v14  ;;  %v1825_v14 = vmul.f32 %v1313_v47, %v6030_v26  ;;  %v1329_v47 = vld [vmem:[%s2870_s28 + $0xf80] sm:$0xff] }
 0x2de   : > { %2322 = vst [vmem:[%s2934_s21 + $0xe88] sm:$0xff] %v1810_v40  ;;  %v1826_v40 = vmul.f32 %v1314_v9, %v6031_v42  ;;  %v1330_v9 = vld [vmem:[%s2870_s28 + $0xf88] sm:$0xff]  ;;  %v1841_v26 = vmul.f32 %v1329_v47, %v4506_v45  ;;  %v1333_v42 = vld [vmem:[%s2870_s28 + $0xfa0] sm:$0xff]  ;;  %v1335_v45 = vld [vmem:[%s2870_s28 + $0xfb0] sm:$0xff] }
 0x2df   : > { %2323 = vst [vmem:[%s2934_s21 + $0xe90] sm:$0xff] %v1811_v32  ;;  %v1827_v32 = vmul.f32 %v1315_v41, %v6032_v38  ;;  %v1331_v41 = vld [vmem:[%s2870_s28 + $0xf90] sm:$0xff] }
 0x2e0   : > { %2324 = vst [vmem:[%s2934_s21 + $0xe98] sm:$0xff] %v1812_v22  ;;  %v1828_v22 = vmul.f32 %v1316_v34, %v6033_v39  ;;  %v1842_v34 = vmul.f32 %v1330_v9, %v4512_v23  ;;  %v1336_v23 = vld [vmem:[%s2870_s28 + $0xfb8] sm:$0xff]  ;;  %v1847_v39 = vmul.f32 %v1335_v45, %v4542_v51 }
 0x2e1   : > { %2325 = vst [vmem:[%s2934_s21 + $0xea0] sm:$0xff] %v1813_v29  ;;  %v1829_v29 = vmul.f32 %v1317_v46, %v6034_v44  ;;  %v1334_v46 = vld [vmem:[%s2870_s28 + $0xfa8] sm:$0xff] }
 0x2e2   : > { %2326 = vst [vmem:[%s2934_s21 + $0xea8] sm:$0xff] %v1814_v57  ;;  %v1830_v57 = vmul.f32 %v1318_v0, %v6035_v21  ;;  %v1846_v0 = vmul.f32 %v1334_v46, %v4536_v54  ;;  %v1340_v54 = vld [vmem:[%s2870_s28 + $0xfd8] sm:$0xff] }
 0x2e3   : > { %2327 = vst [vmem:[%s2934_s21 + $0xeb0] sm:$0xff] %v1815_v50  ;;  %v1831_v50 = vmul.f32 %v1319_v59, %v6036_v61 }
 0x2e4   : > { %2328 = vst [vmem:[%s2934_s21 + $0xeb8] sm:$0xff] %v1816_v10  ;;  %v1832_v10 = vmul.f32 %v1320_v55, %v6037_v20  ;;  %v1852_v55 = vmul.f32 %v1340_v54, %v4572_v5 }
 0x2e5   : > { %2329 = vst [vmem:[%s2934_s21 + $0xec0] sm:$0xff] %v1817_v53  ;;  %v1833_v53 = vmul.f32 %v1321_v62, %v6038_v15 }
 0x2e6   : > { %2330 = vst [vmem:[%s2934_s21 + $0xec8] sm:$0xff] %v1818_v30  ;;  %v1834_v30 = vmul.f32 %v1322_v3, %v6039_v13 }
 0x2e7   : > { %2331 = vst [vmem:[%s2934_s21 + $0xed0] sm:$0xff] %v1819_v19  ;;  %v1835_v19 = vmul.f32 %v1323_v12, %v6040_v35 }
 0x2e8   : > { %2332 = vst [vmem:[%s2934_s21 + $0xed8] sm:$0xff] %v1820_v48  ;;  %v1836_v48 = vmul.f32 %v1324_v24, %v6041_v16 }
 0x2e9   : > { %2333 = vst [vmem:[%s2934_s21 + $0xee0] sm:$0xff] %v1821_v1  ;;  %v1837_v1 = vmul.f32 %v1325_v36, %v6042_v52 }
 0x2ea   : > { %2334 = vst [vmem:[%s2934_s21 + $0xee8] sm:$0xff] %v1822_v60  ;;  %v1838_v60 = vmul.f32 %v1326_v43, %v6043_v28 }
 0x2eb   : > { %2335 = vst [vmem:[%s2934_s21 + $0xef0] sm:$0xff] %v1823_v31  ;;  %v1839_v31 = vmul.f32 %v1327_v27, %v6044_v2 }
 0x2ec   : > { %2336 = vst [vmem:[%s2934_s21 + $0xef8] sm:$0xff] %v1824_v17  ;;  %v1840_v17 = vmul.f32 %v1328_v56, %v6045_v11 }
 0x2ed   : > { %2337 = vst [vmem:[%s2934_s21 + $0xf00] sm:$0xff] %v1825_v14  ;;  %v1332_v14 = vld [vmem:[%s2870_s28 + $0xf98] sm:$0xff] }
 0x2ee   : > { %2338 = vst [vmem:[%s2934_s21 + $0xf08] sm:$0xff] %v1826_v40  ;;  %v1843_v40 = vmul.f32 %v1331_v41, %v4518_v4  ;;  %v1844_v38 = vmul.f32 %v1332_v14, %v4524_v58  ;;  %v1337_v4 = vld [vmem:[%s2870_s28 + $0xfc0] sm:$0xff]  ;;  %v1338_v58 = vld [vmem:[%s2870_s28 + $0xfc8] sm:$0xff] }
 0x2ef   : > { %2339 = vst [vmem:[%s2934_s21 + $0xf10] sm:$0xff] %v1827_v32  ;;  %v1845_v32 = vmul.f32 %v1333_v42, %v4530_v18  ;;  %v1339_v18 = vld [vmem:[%s2870_s28 + $0xfd0] sm:$0xff]  ;;  %v1849_v59 = vmul.f32 %v1337_v4, %v4554_v7  ;;  %v1850_v44 = vmul.f32 %v1338_v58, %v4560_v63 }
 0x2f0   : > { %2340 = vst [vmem:[%s2934_s21 + $0xf18] sm:$0xff] %v1828_v22  ;;  %v1848_v22 = vmul.f32 %v1336_v23, %v4548_v49  ;;  %v1851_v51 = vmul.f32 %v1339_v18, %v4566_v6  ;;  %v1342_v49 = vld [vmem:[%s2870_s28 + $0xfe8] sm:$0xff]  ;;  %v1343_v7 = vld [vmem:[%s2870_s28 + $0xff0] sm:$0xff] }
 0x2f1   : > { %2341 = vst [vmem:[%s2934_s21 + $0xf20] sm:$0xff] %v1829_v29  ;;  %v1341_v29 = vld [vmem:[%s2870_s28 + $0xfe0] sm:$0xff]  ;;  %v1854_v63 = vmul.f32 %v1342_v49, %v4583_v8  ;;  %v1855_v62 = vmul.f32 %v1343_v7, %v4588_v37 }
 0x2f2   : > { %2342 = vst [vmem:[%s2934_s21 + $0xf28] sm:$0xff] %v1830_v57  ;;  %v1853_v21 = vmul.f32 %v1341_v29, %v4578_v25  ;;  %v1344_v57 = vld [vmem:[%s2870_s28 + $0xff8] sm:$0xff] }
 0x2f3   : > { %2343 = vst [vmem:[%s2934_s21 + $0xf30] sm:$0xff] %v1831_v50  ;;  %v1856_v6 = vmul.f32 %v1344_v57, %v4593_v33 }
 0x2f4   : > { %2344 = vst [vmem:[%s2934_s21 + $0xf38] sm:$0xff] %v1832_v10 }
 0x2f5   : > { %2345 = vst [vmem:[%s2934_s21 + $0xf40] sm:$0xff] %v1833_v53 }
 0x2f6   : > { %2346 = vst [vmem:[%s2934_s21 + $0xf48] sm:$0xff] %v1834_v30 }
 0x2f7   : > { %2347 = vst [vmem:[%s2934_s21 + $0xf50] sm:$0xff] %v1835_v19 }
 0x2f8   : > { %2348 = vst [vmem:[%s2934_s21 + $0xf58] sm:$0xff] %v1836_v48 }
 0x2f9   : > { %2349 = vst [vmem:[%s2934_s21 + $0xf60] sm:$0xff] %v1837_v1 }
 0x2fa   : > { %2350 = vst [vmem:[%s2934_s21 + $0xf68] sm:$0xff] %v1838_v60 }
 0x2fb   : > { %2351 = vst [vmem:[%s2934_s21 + $0xf70] sm:$0xff] %v1839_v31 }
 0x2fc   : > { %2352 = vst [vmem:[%s2934_s21 + $0xf78] sm:$0xff] %v1840_v17 }
 0x2fd   : > { %2353 = vst [vmem:[%s2934_s21 + $0xf80] sm:$0xff] %v1841_v26 }
 0x2fe   : > { %2354 = vst [vmem:[%s2934_s21 + $0xf88] sm:$0xff] %v1842_v34 }
 0x2ff   : > { %2355 = vst [vmem:[%s2934_s21 + $0xf90] sm:$0xff] %v1843_v40 }
 0x300   : > { %2356 = vst [vmem:[%s2934_s21 + $0xf98] sm:$0xff] %v1844_v38 }
 0x301   : > { %2357 = vst [vmem:[%s2934_s21 + $0xfa0] sm:$0xff] %v1845_v32 }
 0x302   : > { %2358 = vst [vmem:[%s2934_s21 + $0xfa8] sm:$0xff] %v1846_v0 }
 0x303   : > { %2359 = vst [vmem:[%s2934_s21 + $0xfb0] sm:$0xff] %v1847_v39 }
 0x304   : > { %2360 = vst [vmem:[%s2934_s21 + $0xfb8] sm:$0xff] %v1848_v22 }
 0x305   : > { %2361 = vst [vmem:[%s2934_s21 + $0xfc0] sm:$0xff] %v1849_v59 }
 0x306   : > { %2362 = vst [vmem:[%s2934_s21 + $0xfc8] sm:$0xff] %v1850_v44 }
 0x307   : > { %2363 = vst [vmem:[%s2934_s21 + $0xfd0] sm:$0xff] %v1851_v51 }
 0x308   : > { %2364 = vst [vmem:[%s2934_s21 + $0xfd8] sm:$0xff] %v1852_v55 }
 0x309   : > { %2365 = vst [vmem:[%s2934_s21 + $0xfe0] sm:$0xff] %v1853_v21 }
 0x30a   : > { %2366 = vst [vmem:[%s2934_s21 + $0xfe8] sm:$0xff] %v1854_v63 }
 0x30b   : > { %2367 = vst [vmem:[%s2934_s21 + $0xff0] sm:$0xff] %v1855_v62 }
 0x30c   : > { %2368 = vst [vmem:[%s2934_s21 + $0xff8] sm:$0xff] %v1856_v6 }
 0x30d   : > { %s2551_s4 = sshll.u32 %s2717_s12, 11  ;;  %s2396_s5 = sshll.u32 %s2934_s21, 4  ;;  %s2397_s5 = int_to_ptr.vmem [resolvable:$true] %s2396_s5 }
 0x30e   : > { %s2385_s8 = scalar_lea.hbm %s5420_s2, %s2551_s4  ;;  %s2735_s16 = smov 32768  }
 0x30f   : > { %s2398_s15 = sshll.u32 %s2385_s8, 4  ;;  %2563 = sst [smem:[#allocation11]] (%p2808_p9), %s2735_s16  ;;  %s2399_s15 = int_to_ptr.hbm [resolvable:$true] %s2398_s15 }
 0x310   : > { %s2736_s18 = smov 131072   ;;  %s2737_s20 = smov 32  }
 0x311   : > { %2564 = sst [smem:[#allocation11 + $0x1]] (%p2808_p9), %s2736_s18  ;;  %s2738_s12 = smov 1024  }
 0x312   : > { %2565 = sst [smem:[#allocation11 + $0x2]] (%p2808_p9), %s2737_s20  ;;  %s2739_s26 = smov 64  }
 0x313   : > { %2566 = sst [smem:[#allocation11 + $0x3]] (%p2808_p9), %s2738_s12  ;;  %s2740_s27 = smov [#allocation10]  }
 0x314   : > { %2567 = sst [smem:[#allocation11 + $0x4]] (%p2808_p9), %s2738_s12  ;;  %s2741_s29 = smov 0  }
 0x315   : > { %2568 = sst [smem:[#allocation11 + $0x5]] (%p2808_p9), %s2739_s26 }
 0x316   : > { %2569 = dma.general (%p2808_p9), %s2397_s5, 65536, %s2399_s15, %s2370_s30, %s2740_s27, [#allocation11], %s2741_s29, 0  }
 0x317 PF: > { %p2575_p2 = scmp.ge.s32.totalorder %s2725_s14, 2  ;;  %s2426_s3 = sand.u32 1, %s2705_s9  }
 0x318   : > { %s2427_s19 = scalar_lea.sflag [#allocation4], %s2426_s3 }
 0x319   : > { %p2572_p3 = pnand %p2575_p2, %p2815_p11 }
 0x31b   : > { %p2573_p4 = pneg %p2572_p3 }
 0x31d   : > { %2700 = dma.done.wait (%p2573_p4), %s2427_s19, 65536  }
 0x31e   : > { %2702 = vsyncadd (%p2573_p4), %s2427_s19, 4294901760  ;;  %s21_s14 = sadd.s32 1, %s2725_s14   ;;  %s6046_s9 = smov %s2709_s10 }
 0x31f   : > { %p18_p5 = scmp.ge.s32.totalorder %s21_s14, 6   ;;  %s6047_s10 = smov %s2713_s11 }
 0x320   : > { %s6048_s11 = smov %s2813_s23  ;;  %s6049_s12 = smov %s2721_s13 }
 0x321   : > { %s6050_s13 = smov %s6052_s17  ;;  %20 = sbr.rel (!%p18_p5) target bundleno = 8 (0x8), region = 96 }
 0x326   :  { %2433 = vsyncpa [#allocation3], 1 }
 0x327   :  { %2435 = vsyncpa [#allocation3 + $0x1], 1 }
 0x328   :  { %2436 = vsyncpa [#allocation6], 1 }
 0x329   :  { %2438 = vsyncpa [#allocation6 + $0x1], 1 }
 0x32a   :  { %2439 = vsyncpa [#allocation4], 1 }
 0x32b   :  { %2441 = vsyncpa [#allocation4 + $0x1], 1 }

</bundles_post_ra>
